<compile_context>
chip_gen: v7x
topology: tpu7x:2x2x1
jax: 0.10.0
libtpu: 0.0.40
codegen_flags: <defaults>
</compile_context>

<pallas_src>
import functools
import math

import jax
import jax.numpy as jnp
from jax import lax
from jax.experimental import pallas as pl
from jax.experimental.pallas import tpu as pltpu


def _rbf_kernel(x_ref, o_ref, *, num_grids, pack, grid_min, grid_step,
                neg_inv_denom_sq):
    # x_ref: (TR, pack)          input dtype
    # o_ref: (TR, pack*G)        output dtype (row-major view of (TR*pack, G))
    tr = x_ref.shape[0]
    lane_width = pack * num_grids

    x = x_ref[...].astype(jnp.float32)                           # (TR, pack)
    # Replicate each x value across its G consecutive lanes:
    # (TR, pack) -> (TR, pack, G) -> (TR, pack*G).
    xb = jnp.broadcast_to(x[:, :, None], (tr, pack, num_grids))
    xb = xb.reshape(tr, lane_width)

    # RBF centers laid out to match the packed lanes: lane l -> grid[l % G].
    lane = lax.broadcasted_iota(jnp.int32, (1, lane_width), 1)
    g = grid_min + (lane % num_grids).astype(jnp.float32) * grid_step

    d = xb - g
    o_ref[...] = jnp.exp(neg_inv_denom_sq * (d * d)).astype(o_ref.dtype)


def radial_basis_function(
    x,
    grid_min: float = -2.0,
    grid_max: float = 2.0,
    num_grids: int = 8,
    denominator: float = None,
    tile_rows: int = 4096,
):
    """Pallas TPU implementation of RadialBasisFunction.forward."""
    if num_grids > 1:
        default_denom = (grid_max - grid_min) / (num_grids - 1)
        grid_step = (grid_max - grid_min) / (num_grids - 1)
    else:
        default_denom = 1.0
        grid_step = 0.0
    if denominator is None:
        denominator = default_denom
    neg_inv_denom_sq = -1.0 / (denominator * denominator)

    orig_shape = x.shape
    out_dtype = x.dtype if jnp.issubdtype(x.dtype, jnp.floating) else jnp.float32

    # Pack the flat x so the packed output lane width is a multiple of 128.
    lane_width = (128 // math.gcd(128, num_grids)) * num_grids   # lcm(G, 128)
    pack = lane_width // num_grids

    in_item = jnp.dtype(x.dtype).itemsize
    out_item = jnp.dtype(out_dtype).itemsize
    # Sublane alignment for the narrowest dtype touched (8 f32 / 16 bf16 ...).
    sub_align = max(8, 32 // max(1, min(in_item, out_item)))

    M = int(math.prod(orig_shape)) if orig_shape else 1
    xf = x.reshape(-1)
    row_elems = pack * sub_align
    M_pad = ((M + row_elems - 1) // row_elems) * row_elems
    if M_pad != M:
        xf = jnp.pad(xf, (0, M_pad - M))
    rows = M_pad // pack
    x2 = xf.reshape(rows, pack)

    tr = min(tile_rows, rows)
    tr = max(sub_align, (tr // sub_align) * sub_align)
    grid_steps = pl.cdiv(rows, tr)

    kernel = functools.partial(
        _rbf_kernel,
        num_grids=num_grids,
        pack=pack,
        grid_min=float(grid_min),
        grid_step=float(grid_step),
        neg_inv_denom_sq=float(neg_inv_denom_sq),
    )

    out = pl.pallas_call(
        kernel,
        out_shape=jax.ShapeDtypeStruct((rows, lane_width), out_dtype),
        grid_spec=pltpu.PrefetchScalarGridSpec(
            num_scalar_prefetch=0,
            grid=(grid_steps,),
            in_specs=[pl.BlockSpec((tr, pack), lambda i: (i, 0))],
            out_specs=pl.BlockSpec((tr, lane_width), lambda i: (i, 0)),
        ),
        compiler_params=pltpu.CompilerParams(
            dimension_semantics=("parallel",),
        ),
    )(x2)

    # (rows, pack*G) row-major is bit-identical to (M_pad, G) row-major.
    out_flat = out.reshape(M_pad, num_grids)
    if M_pad != M:
        out_flat = out_flat[:M]
    return out_flat.reshape(orig_shape + (num_grids,))


def _reference(x, grid_min=-2.0, grid_max=2.0, num_grids=8, denominator=None):
    if denominator is None:
        denominator = (grid_max - grid_min) / (num_grids - 1)
    grid = jnp.linspace(grid_min, grid_max, num_grids, dtype=jnp.float32)
    xf = x.astype(jnp.float32)
    return jnp.exp(-(((xf[..., None] - grid) / denominator) ** 2))


if __name__ == "__main__":
    key = jax.random.PRNGKey(0)

    # Main case: aligned element count -> no pad, no slice, no wrapper casts.
    x = jax.random.normal(key, (2, 4, 16, 16), dtype=jnp.float32) * 2.5
    out = jax.block_until_ready(radial_basis_function(x))
    ref = _reference(x)
    assert out.shape == x.shape + (8,), out.shape
    assert out.dtype == x.dtype
    assert jnp.allclose(out, ref, atol=1e-5, rtol=1e-5), float(
        jnp.max(jnp.abs(out - ref)))

    # Multi-step grid path (rows > tile_rows), still fully lane-dense.
    x2 = jax.random.normal(jax.random.PRNGKey(1), (4, 64, 32), dtype=jnp.float32)
    out2 = jax.block_until_ready(radial_basis_function(x2, tile_rows=128))
    ref2 = _reference(x2)
    assert jnp.allclose(out2, ref2, atol=1e-5, rtol=1e-5)

    # Non-aligned element count exercises the small pad/slice tail path.
    x3 = jax.random.normal(jax.random.PRNGKey(2), (3, 7, 9), dtype=jnp.float32) * 2.0
    out3 = jax.block_until_ready(radial_basis_function(x3))
    ref3 = _reference(x3)
    assert out3.shape == x3.shape + (8,)
    assert jnp.allclose(out3, ref3, atol=1e-5, rtol=1e-5)

    # bf16 in -> bf16 out (in-kernel cast, halved store bytes).
    xb = (jax.random.normal(jax.random.PRNGKey(3), (2, 4, 16, 16)) * 2.5
          ).astype(jnp.bfloat16)
    outb = jax.block_until_ready(radial_basis_function(xb))
    refb = _reference(xb)
    assert outb.dtype == jnp.bfloat16
    assert jnp.allclose(outb.astype(jnp.float32), refb, atol=5e-3, rtol=5e-3)

    # Non-default RBF parameters (different grid range / count / denominator).
    x4 = jax.random.normal(jax.random.PRNGKey(4), (2, 48), dtype=jnp.float32)
    out4 = jax.block_until_ready(
        radial_basis_function(x4, grid_min=-1.0, grid_max=3.0, num_grids=16,
                              denominator=0.5))
    ref4 = _reference(x4, grid_min=-1.0, grid_max=3.0, num_grids=16,
                      denominator=0.5)
    assert out4.shape == x4.shape + (16,)
    assert jnp.allclose(out4, ref4, atol=1e-5, rtol=1e-5)

    print("KERNEL_OK")
</pallas_src>

<mosaic_0001>
module attributes {stable_mosaic.version = 11 : i64} {
  func.func @_rbf_kernel(%arg0: i32, %arg1: memref<128x16xf32, #tpu.memory_space<vmem>>, %arg2: memref<128x128xf32, #tpu.memory_space<vmem>>) attributes {dimension_semantics = [#tpu.dimension_semantics<parallel>], iteration_bounds = array<i64: 1>, scalar_prefetch = 0 : i64, scratch_operands = 0 : i64, tpu.core_type = #tpu.core_type<tc>, window_params = [{transform_indices = @transform_0, window_bounds = array<i64: 128, 16>}, {transform_indices = @transform_1, window_bounds = array<i64: 128, 128>}]} {
    %c0 = arith.constant 0 : index
    %c0_0 = arith.constant 0 : index
    %0 = vector.load %arg1[%c0, %c0_0] : memref<128x16xf32, #tpu.memory_space<vmem>>, vector<128x16xf32>
    %1 = vector.shape_cast %0 : vector<128x16xf32> to vector<128x16x1xf32>
    %2 = vector.shape_cast %1 : vector<128x16x1xf32> to vector<128x16x1xf32>
    %3 = vector.broadcast %2 : vector<128x16x1xf32> to vector<128x16x8xf32>
    %4 = vector.shape_cast %3 : vector<128x16x8xf32> to vector<128x128xf32>
    %5 = tpu.iota {dimensions = array<i32: 1>} : vector<1x128xi32>
    %c8_i32 = arith.constant 8 : i32
    %c0_i32 = arith.constant 0 : i32
    %6 = arith.cmpi eq, %c8_i32, %c0_i32 : i32
    %c1_i32 = arith.constant 1 : i32
    %7 = arith.select %6, %c1_i32, %c8_i32 : i32
    %8 = vector.broadcast %7 : i32 to vector<1x128xi32>
    %9 = arith.remsi %5, %8 : vector<1x128xi32>
    %c0_i32_1 = arith.constant 0 : i32
    %10 = vector.broadcast %c0_i32_1 : i32 to vector<1x128xi32>
    %11 = arith.cmpi ne, %9, %10 : vector<1x128xi32>
    %c0_i32_2 = arith.constant 0 : i32
    %12 = vector.broadcast %c0_i32_2 : i32 to vector<1x128xi32>
    %13 = arith.cmpi slt, %9, %12 : vector<1x128xi32>
    %c0_i32_3 = arith.constant 0 : i32
    %14 = arith.cmpi slt, %7, %c0_i32_3 : i32
    %15 = vector.broadcast %14 : i1 to vector<1x128xi1>
    %16 = vector.broadcast %15 : vector<1x128xi1> to vector<1x128xi1>
    %17 = arith.xori %13, %16 : vector<1x128xi1>
    %18 = arith.andi %17, %11 : vector<1x128xi1>
    %19 = vector.broadcast %7 : i32 to vector<1x128xi32>
    %20 = arith.addi %9, %19 : vector<1x128xi32>
    %21 = arith.select %18, %20, %9 : vector<1x128xi1>, vector<1x128xi32>
    %22 = arith.sitofp %21 : vector<1x128xi32> to vector<1x128xf32>
    %cst = arith.constant 0.571428597 : f32
    %23 = vector.broadcast %cst : f32 to vector<1x128xf32>
    %24 = arith.mulf %22, %23 : vector<1x128xf32>
    %cst_4 = arith.constant -2.000000e+00 : f32
    %25 = vector.broadcast %cst_4 : f32 to vector<1x128xf32>
    %26 = arith.addf %25, %24 : vector<1x128xf32>
    %27 = vector.broadcast %26 : vector<1x128xf32> to vector<128x128xf32>
    %28 = arith.subf %4, %27 : vector<128x128xf32>
    %29 = arith.mulf %28, %28 : vector<128x128xf32>
    %cst_5 = arith.constant -3.062500e+00 : f32
    %30 = vector.broadcast %cst_5 : f32 to vector<128x128xf32>
    %31 = arith.mulf %30, %29 : vector<128x128xf32>
    %32 = math.exp %31 : vector<128x128xf32>
    %c0_6 = arith.constant 0 : index
    %c0_7 = arith.constant 0 : index
    %33 = vector.load %arg2[%c0_6, %c0_7] : memref<128x128xf32, #tpu.memory_space<vmem>>, vector<128x128xf32>
    tpu.vector_store %arg2[%c0_6, %c0_7], %32 {strides = array<i32>} : memref<128x128xf32, #tpu.memory_space<vmem>>, vector<128x128xf32>,
    return
  }
  func.func @transform_0(%arg0: i32) -> (i32, i32) {
    %c0_i32 = arith.constant 0 : i32
    %c0_i32_0 = arith.constant 0 : i32
    return %arg0, %c0_i32 : i32, i32
  }
  func.func @transform_1(%arg0: i32) -> (i32, i32) {
    %c0_i32 = arith.constant 0 : i32
    %c0_i32_0 = arith.constant 0 : i32
    return %arg0, %c0_i32 : i32, i32
  }
}

</mosaic_0001>

<bundles_post_ra>
// kernel: tpu_custom_call.1
= control target key start
LH: loop header
LB: loop body
LE: loop exit
PB: predicated region body
PF: predicated region fallthrough
CT: control target
= control target key end

     0   :  { %v11392_v0 = vlaneseq  ;;  %s11390_s0 = inlined_call_operand.vmem [shape: f32[128,16], index: 0, kind: input, shape index: {}]   ;;  %s11391_s1 = inlined_call_operand.hbm [shape: f32[128,128], index: 1, kind: output, shape index: {}]  }
   0x1   :  { %6 = vsyncpa [#allocation3], 0  ;;  %v9_v2 = vld [vmem:[%s11390_s0] sm:$0xff]  ;;  %v10_v19 = vld [vmem:[%s11390_s0 + $0x8] sm:$0xff]  ;;  %v7204_v46 = vmov 1983009808  }
   0x2   :  { %v7234_v1 = vshrl.u32 %v11392_v0, 7  ;;  %v11_v28 = vld [vmem:[%s11390_s0 + $0x10] sm:$0xff]  ;;  %v12_v37 = vld [vmem:[%s11390_s0 + $0x18] sm:$0xff]  ;;  %v1436_v47 = vunpack.c.l.s4 %v7204_v46  ;;  %v7307_v53 = vld [vmem:[%s11390_s0 + $0x20] sm:$0xff]  ;;  %s7207_s9 = smov 16   ;;  %s7208_s10 = smov 24  }
   0x3   :  { %s7209_s11 = smov 32   ;;  %s7210_s12 = smov 40   ;;  %vm6745_vm0 = vcmask 64512   ;;  %vm6762_vm1 = vcmask 130048   ;;  %vm6779_vm2 = vcmask 195584   ;;  %vm6796_vm3 = vcmask 261120  }
   0x4   :  { %v7240_v3 = vsub.s32 1, %v7234_v1  ;;  %v7243_v4 = vsub.s32 0, %v7234_v1  ;;  %v7248_v7 = vsub.s32 2, %v7234_v1  ;;  %v7252_v9 = vsub.s32 3, %v7234_v1  ;;  %s7211_s13 = smov 48   ;;  %s7212_s14 = smov 56  }
   0x5   :  { %v7256_v11 = vsub.s32 4, %v7234_v1  ;;  %v7260_v13 = vsub.s32 5, %v7234_v1  ;;  %v7264_v15 = vsub.s32 6, %v7234_v1  ;;  %v7268_v17 = vsub.s32 7, %v7234_v1  ;;  %s7213_s15 = smov 64   ;;  %s7214_s16 = smov 72  }
   0x6   :  { %v39_v5 = vrot.slane %v9_v2, %v7240_v3  ;;  %v28_v6 = vrot.slane %v9_v2, %v7243_v4  ;;  %v50_v8 = vrot.slane %v9_v2, %v7248_v7  ;;  %v61_v10 = vrot.slane %v9_v2, %v7252_v9  ;;  %s7215_s17 = smov 80   ;;  %s7216_s18 = smov 88  }
   0x7   :  { %v72_v12 = vrot.slane %v9_v2, %v7256_v11  ;;  %v83_v14 = vrot.slane %v9_v2, %v7260_v13  ;;  %v94_v16 = vrot.slane %v9_v2, %v7264_v15  ;;  %v105_v18 = vrot.slane %v9_v2, %v7268_v17  ;;  %s7217_s19 = smov 96   ;;  %s7218_s20 = smov 104  }
   0x8   :  { %41 = vbcast.lane.b32.xlu1 %v39_v5, 256  ;;  %30 = vbcast.lane.b32.xlu0 %v28_v6, 256  ;;  %v116_v20 = vrot.slane %v10_v19, %v7243_v4  ;;  %v127_v21 = vrot.slane %v10_v19, %v7240_v3  ;;  %v138_v22 = vrot.slane %v10_v19, %v7248_v7  ;;  %v1437_v51 = vunpack.c.0.s8 %v1436_v47  ;;  %s7219_s21 = smov 112   ;;  %s7220_s22 = smov 120  }
   0x9   :  { %v149_v23 = vrot.slane %v10_v19, %v7252_v9  ;;  %v160_v24 = vrot.slane %v10_v19, %v7256_v11  ;;  %v171_v25 = vrot.slane %v10_v19, %v7260_v13  ;;  %v182_v26 = vrot.slane %v10_v19, %v7264_v15  ;;  %s7221_s23 = smov [#allocation2]  }
   0xa   :  { %v193_v27 = vrot.slane %v10_v19, %v7268_v17  ;;  %v204_v29 = vrot.slane %v11_v28, %v7243_v4  ;;  %v215_v30 = vrot.slane %v11_v28, %v7240_v3  ;;  %v226_v31 = vrot.slane %v11_v28, %v7248_v7  ;;  %s7118_s24 = sshll.u32 %s7221_s23, 4  ;;  %s7119_s24 = int_to_ptr.vmem [resolvable:$true] %s7118_s24 }
   0xb   :  { %v237_v32 = vrot.slane %v11_v28, %v7252_v9  ;;  %v248_v33 = vrot.slane %v11_v28, %v7256_v11  ;;  %v259_v34 = vrot.slane %v11_v28, %v7260_v13  ;;  %v270_v35 = vrot.slane %v11_v28, %v7264_v15  ;;  %s7180_s25 = scalar_lea.vmem %s7119_s24, 2048  ;;  %p7185_p1 = scmp.lt.s32.totalorder %s7119_s24, %s7119_s24 }
   0xc   :  { %45 = vbcast.lane.b32.xlu1 %v39_v5, 264  ;;  %34 = vbcast.lane.b32.xlu0 %v28_v6, 264  ;;  %v281_v36 = vrot.slane %v11_v28, %v7268_v17  ;;  %v292_v38 = vrot.slane %v12_v37, %v7243_v4  ;;  %v303_v39 = vrot.slane %v12_v37, %v7240_v3  ;;  %vm6813_vm4 = vcmask 326656   ;;  %p7181_p0 = scmp.ne.s32.totalorder %s7119_s24, %s7180_s25  ;;  %p7186_p2 = scmp.lt.s32.totalorder %s7180_s25, %s7180_s25 }
   0xd   :  { %v314_v40 = vrot.slane %v12_v37, %v7248_v7  ;;  %v325_v41 = vrot.slane %v12_v37, %v7252_v9  ;;  %v336_v42 = vrot.slane %v12_v37, %v7256_v11  ;;  %v347_v43 = vrot.slane %v12_v37, %v7260_v13 }
   0xe   :  { %v358_v48 = vrot.slane %v12_v37, %v7264_v15  ;;  %v369_v52 = vrot.slane %v12_v37, %v7268_v17  ;;  %v7310_v56 = vsub.s32 %v1437_v51, %v7234_v1  ;;  %v380_v59 = vrot.slane %v7307_v53, %v7243_v4  ;;  %p7187_p3 = por %p7186_p2, %p7185_p1 }
   0xf   :  { %vm6830_vm5 = vcmask 392192   ;;  %vm6847_vm6 = vcmask 457728   ;;  %vm6864_vm7 = vcmask 523264   ;;  %vm6881_vm8 = vcmask 588800  }
  0x10   :  { %56 = vbcast.lane.b32.xlu1 %v50_v8, 264  ;;  %52 = vbcast.lane.b32.xlu0 %v50_v8, 256  ;;  %vm6898_vm9 = vcmask 654336   ;;  %vm6915_vm10 = vcmask 719872   ;;  %vm6932_vm11 = vcmask 785408   ;;  %vm6949_vm12 = vcmask 850944   ;;  %p7188_p4 = pnand %p7187_p3, %p7181_p0 }
  0x11   :  { %vm6966_vm13 = vcmask 916480   ;;  %vm6983_vm14 = vcmask 982016  }
  0x14   :  { %67 = vbcast.lane.b32.xlu1 %v61_v10, 264  ;;  %63 = vbcast.lane.b32.xlu0 %v61_v10, 256 }
  0x18   :  { %78 = vbcast.lane.b32.xlu1 %v72_v12, 264  ;;  %74 = vbcast.lane.b32.xlu0 %v72_v12, 256 }
  0x1c   :  { %89 = vbcast.lane.b32.xlu1 %v83_v14, 264  ;;  %85 = vbcast.lane.b32.xlu0 %v83_v14, 256  ;;  %v391_v14 = vrot.slane %v7307_v53, %v7240_v3 }
  0x20   :  { %100 = vbcast.lane.b32.xlu1 %v94_v16, 264  ;;  %96 = vbcast.lane.b32.xlu0 %v94_v16, 256 }
  0x24   :  { %111 = vbcast.lane.b32.xlu1 %v105_v18, 264  ;;  %107 = vbcast.lane.b32.xlu0 %v105_v18, 256 }
  0x28   :  { %122 = vbcast.lane.b32.xlu1 %v116_v20, 264  ;;  %118 = vbcast.lane.b32.xlu0 %v116_v20, 256 }
  0x2c   :  { %133 = vbcast.lane.b32.xlu1 %v127_v21, 264  ;;  %129 = vbcast.lane.b32.xlu0 %v127_v21, 256 }
  0x30   :  { %144 = vbcast.lane.b32.xlu1 %v138_v22, 264  ;;  %140 = vbcast.lane.b32.xlu0 %v138_v22, 256 }
  0x34   :  { %155 = vbcast.lane.b32.xlu1 %v149_v23, 264  ;;  %151 = vbcast.lane.b32.xlu0 %v149_v23, 256 }
  0x38   :  { %166 = vbcast.lane.b32.xlu1 %v160_v24, 264  ;;  %162 = vbcast.lane.b32.xlu0 %v160_v24, 256 }
  0x3c   :  { %177 = vbcast.lane.b32.xlu1 %v171_v25, 264  ;;  %173 = vbcast.lane.b32.xlu0 %v171_v25, 256 }
  0x40   :  { %188 = vbcast.lane.b32.xlu1 %v182_v26, 264  ;;  %184 = vbcast.lane.b32.xlu0 %v182_v26, 256 }
  0x44   :  { %199 = vbcast.lane.b32.xlu1 %v193_v27, 264  ;;  %195 = vbcast.lane.b32.xlu0 %v193_v27, 256 }
  0x48   :  { %210 = vbcast.lane.b32.xlu1 %v204_v29, 264  ;;  %206 = vbcast.lane.b32.xlu0 %v204_v29, 256  ;;  %v402_v29 = vrot.slane %v7307_v53, %v7248_v7 }
  0x4c   :  { %221 = vbcast.lane.b32.xlu1 %v215_v30, 264  ;;  %217 = vbcast.lane.b32.xlu0 %v215_v30, 256 }
  0x50   :  { %232 = vbcast.lane.b32.xlu1 %v226_v31, 264  ;;  %228 = vbcast.lane.b32.xlu0 %v226_v31, 256 }
  0x54   :  { %243 = vbcast.lane.b32.xlu1 %v237_v32, 264  ;;  %239 = vbcast.lane.b32.xlu0 %v237_v32, 256  ;;  %v7205_v32 = vmov 1934713408  }
  0x58   :  { %254 = vbcast.lane.b32.xlu1 %v248_v33, 264  ;;  %250 = vbcast.lane.b32.xlu0 %v248_v33, 256  ;;  %v1500_v33 = vunpack.c.l.s4 %v7205_v32 }
  0x5c   :  { %265 = vbcast.lane.b32.xlu1 %v259_v34, 264  ;;  %261 = vbcast.lane.b32.xlu0 %v259_v34, 256  ;;  %v413_v34 = vrot.slane %v7307_v53, %v7252_v9 }
  0x60   :  { %276 = vbcast.lane.b32.xlu1 %v270_v35, 264  ;;  %272 = vbcast.lane.b32.xlu0 %v270_v35, 256 }
  0x64   :  { %287 = vbcast.lane.b32.xlu1 %v281_v36, 264  ;;  %283 = vbcast.lane.b32.xlu0 %v281_v36, 256 }
  0x68   :  { %298 = vbcast.lane.b32.xlu1 %v292_v38, 264  ;;  %294 = vbcast.lane.b32.xlu0 %v292_v38, 256 }
  0x6c   :  { %309 = vbcast.lane.b32.xlu1 %v303_v39, 264  ;;  %305 = vbcast.lane.b32.xlu0 %v303_v39, 256  ;;  %v1501_v39 = vunpack.c.0.s8 %v1500_v33 }
  0x6e   :  { %v7361_v51 = vsub.s32 %v1501_v39, %v7234_v1 }
  0x70   :  { %320 = vbcast.lane.b32.xlu1 %v314_v40, 264  ;;  %316 = vbcast.lane.b32.xlu0 %v314_v40, 256  ;;  %v424_v40 = vrot.slane %v7307_v53, %v7256_v11 }
  0x74   :  { %331 = vbcast.lane.b32.xlu1 %v325_v41, 264  ;;  %327 = vbcast.lane.b32.xlu0 %v325_v41, 256 }
  0x78   :  { %342 = vbcast.lane.b32.xlu1 %v336_v42, 264  ;;  %338 = vbcast.lane.b32.xlu0 %v336_v42, 256 }
  0x7a   :  { %v42_v44 = vpop.permute.xlu1 %41  ;;  %v31_v45 = vpop.permute.xlu0 %30 }
  0x7c   :  { %353 = vbcast.lane.b32.xlu1 %v347_v43, 264  ;;  %349 = vbcast.lane.b32.xlu0 %v347_v43, 256 }
  0x7e   :  { %v46_v49 = vpop.permute.xlu1 %45  ;;  %v35_v50 = vpop.permute.xlu0 %34 }
  0x80   :  { %364 = vbcast.lane.b32.xlu1 %v358_v48, 264  ;;  %360 = vbcast.lane.b32.xlu0 %v358_v48, 256 }
  0x82   :  { %v57_v54 = vpop.permute.xlu1 %56  ;;  %v53_v55 = vpop.permute.xlu0 %52 }
  0x83   :  { %v3609_v57 = vcombine.low %v35_v50, %v57_v54  ;;  %v3610_v58 = vcombine.high %v35_v50, %v57_v54  ;;  %v1433_v60 = vcombine.low %v31_v45, %v53_v55  ;;  %v1434_v61 = vcombine.high %v31_v45, %v53_v55 }
  0x84   :  { %375 = vbcast.lane.b32.xlu1 %v369_v52, 264  ;;  %371 = vbcast.lane.b32.xlu0 %v369_v52, 256  ;;  %v435_v54 = vrot.slane %v7307_v53, %v7260_v13 }
  0x85   :  { %v7315_v10 = vrot.slane %v3609_v57, %v7310_v56  ;;  %v7318_v12 = vrot.slane %v3610_v58, %v7310_v56  ;;  %v7335_v21 = vrot.slane %v1433_v60, %v7310_v56  ;;  %v7338_v22 = vrot.slane %v1434_v61, %v7310_v56 }
  0x86   :  { %v68_v62 = vpop.permute.xlu1 %67  ;;  %v64_v63 = vpop.permute.xlu0 %63 }
  0x87   :  { %v3625_v2 = vcombine.low %v46_v49, %v68_v62  ;;  %v3626_v5 = vcombine.high %v46_v49, %v68_v62  ;;  %v1449_v6 = vcombine.low %v42_v44, %v64_v63  ;;  %v1450_v8 = vcombine.high %v42_v44, %v64_v63  ;;  %11804 = vst [vmem:[#allocation5_spill] sm:$0xff] %v7315_v10 }
  0x88   :  { %11805 = vst [vmem:[#allocation6_spill] sm:$0xff] %v7318_v12  ;;  %386 = vbcast.lane.b32.xlu1 %v380_v59, 264  ;;  %382 = vbcast.lane.b32.xlu0 %v380_v59, 256  ;;  %11809 = vst [vmem:[#allocation10_spill] sm:$0xff] %v7338_v22 }
  0x89   :  { %v7323_v16 = vrot.slane %v3625_v2, %v7310_v56  ;;  %v7326_v18 = vrot.slane %v3626_v5, %v7310_v56  ;;  %v7329_v19 = vrot.slane %v1449_v6, %v7310_v56  ;;  %v7332_v20 = vrot.slane %v1450_v8, %v7310_v56 }
  0x8a   :  { %v79_v23 = vpop.permute.xlu1 %78  ;;  %v75_v24 = vpop.permute.xlu0 %74 }
  0x8b   :  { %11806 = vst [vmem:[#allocation7_spill] sm:$0xff] %v7323_v16  ;;  %11807 = vst [vmem:[#allocation8_spill] sm:$0xff] %v7326_v18  ;;  %v3674_v25 = vcombine.high %v7315_v10, %v7323_v16  ;;  %v3690_v26 = vcombine.high %v7318_v12, %v7326_v18  ;;  %v1498_v27 = vcombine.high %v7335_v21, %v7329_v19 }
  0x8c   :  { %11808 = vst [vmem:[#allocation9_spill] sm:$0xff] %v7332_v20  ;;  %v1514_v28 = vcombine.high %v7338_v22, %v7332_v20  ;;  %397 = vbcast.lane.b32.xlu1 %v391_v14, 264  ;;  %393 = vbcast.lane.b32.xlu0 %v391_v14, 256  ;;  %v1497_v52 = vcombine.low %v7335_v21, %v7329_v19 }
  0x8d   :  { %v446_v14 = vrot.slane %v7307_v53, %v7264_v15  ;;  %v7393_v21 = vrot.slane %v3674_v25, %v7361_v51 }
  0x8e   :  { %v90_v30 = vpop.permute.xlu1 %89  ;;  %v86_v31 = vpop.permute.xlu0 %85  ;;  %v7390_v19 = vrot.slane %v1497_v52, %v7361_v51  ;;  %v7411_v25 = vrot.slane %v1514_v28, %v7361_v51  ;;  %v7426_v28 = vld [vmem:[%s11390_s0 + $0x28] sm:$0xff] }
  0x8f   :  { %11817 = vst [vmem:[#allocation18_spill] sm:$0xff] %v7393_v21 }
  0x90   :  { %408 = vbcast.lane.b32.xlu1 %v402_v29, 264  ;;  %404 = vbcast.lane.b32.xlu0 %v402_v29, 256  ;;  %11816 = vst [vmem:[#allocation17_spill] sm:$0xff] %v7390_v19  ;;  %11821 = vst [vmem:[#allocation22_spill] sm:$0xff] %v7411_v25 }
  0x92   :  { %v101_v35 = vpop.permute.xlu1 %100  ;;  %v97_v36 = vpop.permute.xlu0 %96 }
  0x93   :  { %v3641_v37 = vcombine.low %v79_v23, %v101_v35  ;;  %v3642_v38 = vcombine.high %v79_v23, %v101_v35  ;;  %v1465_v43 = vcombine.low %v75_v24, %v97_v36  ;;  %v1466_v44 = vcombine.high %v75_v24, %v97_v36 }
  0x94   :  { %419 = vbcast.lane.b32.xlu1 %v413_v34, 264  ;;  %415 = vbcast.lane.b32.xlu0 %v413_v34, 256  ;;  %v457_v35 = vrot.slane %v7307_v53, %v7268_v17 }
  0x95   :  { %v7355_v41 = vrot.slane %v3641_v37, %v7310_v56  ;;  %v7358_v42 = vrot.slane %v3642_v38, %v7310_v56  ;;  %v1473_v1 = vrot.slane %v1465_v43, %v7310_v56  ;;  %v7379_v60 = vrot.slane %v1466_v44, %v7310_v56 }
  0x96   :  { %v112_v45 = vpop.permute.xlu1 %111  ;;  %v108_v46 = vpop.permute.xlu0 %107  ;;  %v7438_v44 = vrot.slane %v3690_v26, %v7361_v51 }
  0x97   :  { %11810 = vst [vmem:[#allocation11_spill] sm:$0xff] %v7355_v41  ;;  %11811 = vst [vmem:[#allocation12_spill] sm:$0xff] %v7358_v42  ;;  %v3657_v47 = vcombine.low %v90_v30, %v112_v45  ;;  %v3658_v48 = vcombine.high %v90_v30, %v112_v45  ;;  %v1481_v49 = vcombine.low %v86_v31, %v108_v46 }
  0x98   :  { %v1482_v50 = vcombine.high %v86_v31, %v108_v46  ;;  %430 = vbcast.lane.b32.xlu1 %v424_v40, 264  ;;  %426 = vbcast.lane.b32.xlu0 %v424_v40, 256  ;;  %11815 = vst [vmem:[#allocation16_spill] sm:$0xff] %v7379_v60  ;;  %v7402_v31 = vrot.slane %v1498_v27, %v7361_v51  ;;  %11822 = vst [vmem:[#allocation23_spill] sm:$0xff] %v7438_v44 }
  0x99   :  { %v7368_v55 = vrot.slane %v3657_v47, %v7310_v56  ;;  %v7371_v57 = vrot.slane %v3658_v48, %v7310_v56  ;;  %v1489_v58 = vrot.slane %v1481_v49, %v7310_v56  ;;  %v468_v48 = vrot.slane %v7426_v28, %v7243_v4 }
  0x9a   :  { %v7375_v59 = vrot.slane %v1482_v50, %v7310_v56  ;;  %v123_v61 = vpop.permute.xlu1 %122  ;;  %v119_v62 = vpop.permute.xlu0 %118  ;;  %v512_v49 = vrot.slane %v7426_v28, %v7256_v11 }
  0x9b   :  { %11812 = vst [vmem:[#allocation13_spill] sm:$0xff] %v7368_v55  ;;  %11813 = vst [vmem:[#allocation14_spill] sm:$0xff] %v7371_v57  ;;  %v3706_v63 = vcombine.high %v7355_v41, %v7368_v55  ;;  %v3722_v2 = vcombine.high %v7358_v42, %v7371_v57  ;;  %v1529_v5 = vcombine.low %v1473_v1, %v1489_v58 }
  0x9c   :  { %11814 = vst [vmem:[#allocation15_spill] sm:$0xff] %v7375_v59  ;;  %v1530_v6 = vcombine.high %v1473_v1, %v1489_v58  ;;  %v1546_v8 = vcombine.high %v7379_v60, %v7375_v59  ;;  %441 = vbcast.lane.b32.xlu1 %v435_v54, 264  ;;  %437 = vbcast.lane.b32.xlu0 %v435_v54, 256 }
  0x9d   :  { %v7396_v23 = vrot.slane %v3706_v63, %v7361_v51  ;;  %v7399_v30 = vrot.slane %v1529_v5, %v7361_v51  ;;  %v7441_v45 = vrot.slane %v3722_v2, %v7361_v51 }
  0x9e   :  { %v134_v24 = vpop.permute.xlu1 %133  ;;  %v130_v29 = vpop.permute.xlu0 %129  ;;  %v7405_v32 = vrot.slane %v1530_v6, %v7361_v51  ;;  %v7408_v33 = vrot.slane %v1546_v8, %v7361_v51  ;;  %v479_v8 = vrot.slane %v7426_v28, %v7240_v3 }
  0x9f   :  { %11818 = vst [vmem:[#allocation19_spill] sm:$0xff] %v7396_v23  ;;  %11819 = vst [vmem:[#allocation20_spill] sm:$0xff] %v7399_v30 }
  0xa0   :  { %11820 = vst [vmem:[#allocation21_spill] sm:$0xff] %v7408_v33  ;;  %452 = vbcast.lane.b32.xlu1 %v446_v14, 264  ;;  %448 = vbcast.lane.b32.xlu0 %v446_v14, 256  ;;  %11823 = vst [vmem:[#allocation24_spill] sm:$0xff] %v7441_v45 }
  0xa2   :  { %v145_v39 = vpop.permute.xlu1 %144  ;;  %v141_v40 = vpop.permute.xlu0 %140 }
  0xa3   :  { %v3745_v46 = vcombine.low %v123_v61, %v145_v39  ;;  %v3746_v47 = vcombine.high %v123_v61, %v145_v39  ;;  %v1569_v54 = vcombine.low %v119_v62, %v141_v40  ;;  %v1570_v58 = vcombine.high %v119_v62, %v141_v40 }
  0xa4   :  { %463 = vbcast.lane.b32.xlu1 %v457_v35, 264  ;;  %459 = vbcast.lane.b32.xlu0 %v457_v35, 256 }
  0xa5   :  { %v7450_v52 = vrot.slane %v3745_v46, %v7310_v56  ;;  %v7453_v26 = vrot.slane %v3746_v47, %v7310_v56 }
  0xa6   :  { %v156_v1 = vpop.permute.xlu1 %155  ;;  %v152_v61 = vpop.permute.xlu0 %151 }
  0xa7   :  { %11824 = vst [vmem:[#allocation25_spill] sm:$0xff] %v7450_v52  ;;  %11825 = vst [vmem:[#allocation26_spill] sm:$0xff] %v7453_v26  ;;  %v3761_v63 = vcombine.low %v134_v24, %v156_v1  ;;  %v3762_v2 = vcombine.high %v134_v24, %v156_v1  ;;  %v1585_v5 = vcombine.low %v130_v29, %v152_v61 }
  0xa8   :  { %v1586_v6 = vcombine.high %v130_v29, %v152_v61  ;;  %474 = vbcast.lane.b32.xlu1 %v468_v48, 264  ;;  %470 = vbcast.lane.b32.xlu0 %v468_v48, 256  ;;  %v1577_v24 = vrot.slane %v1569_v54, %v7310_v56  ;;  %v7471_v29 = vrot.slane %v1570_v58, %v7310_v56 }
  0xa9   :  { %v7458_v14 = vrot.slane %v3761_v63, %v7310_v56  ;;  %v7461_v35 = vrot.slane %v3762_v2, %v7310_v56  ;;  %v7464_v39 = vrot.slane %v1585_v5, %v7310_v56  ;;  %v490_v48 = vrot.slane %v7426_v28, %v7248_v7 }
  0xaa   :  { %v7467_v62 = vrot.slane %v1586_v6, %v7310_v56  ;;  %11829 = vst [vmem:[#allocation30_spill] sm:$0xff] %v7471_v29  ;;  %v167_v40 = vpop.permute.xlu1 %166  ;;  %v163_v46 = vpop.permute.xlu0 %162  ;;  %v501_v2 = vrot.slane %v7426_v28, %v7252_v9 }
  0xab   :  { %11826 = vst [vmem:[#allocation27_spill] sm:$0xff] %v7458_v14  ;;  %11827 = vst [vmem:[#allocation28_spill] sm:$0xff] %v7461_v35  ;;  %v3810_v47 = vcombine.high %v7450_v52, %v7458_v14  ;;  %v1634_v61 = vcombine.high %v1577_v24, %v7464_v39 }
  0xac   :  { %11828 = vst [vmem:[#allocation29_spill] sm:$0xff] %v7467_v62  ;;  %v1650_v63 = vcombine.high %v7471_v29, %v7467_v62  ;;  %485 = vbcast.lane.b32.xlu1 %v479_v8, 264  ;;  %481 = vbcast.lane.b32.xlu0 %v479_v8, 256 }
  0xae   :  { %v178_v54 = vpop.permute.xlu1 %177  ;;  %v174_v58 = vpop.permute.xlu0 %173 }
  0xb0   :  { %496 = vbcast.lane.b32.xlu1 %v490_v48, 264  ;;  %492 = vbcast.lane.b32.xlu0 %v490_v48, 256 }
  0xb2   :  { %v189_v5 = vpop.permute.xlu1 %188  ;;  %v185_v6 = vpop.permute.xlu0 %184 }
  0xb3   :  { %v3777_v0 = vcombine.low %v167_v40, %v189_v5  ;;  %v3778_v50 = vcombine.high %v167_v40, %v189_v5  ;;  %v1601_v43 = vcombine.low %v163_v46, %v185_v6  ;;  %v1602_v34 = vcombine.high %v163_v46, %v185_v6 }
  0xb4   :  { %507 = vbcast.lane.b32.xlu1 %v501_v2, 264  ;;  %503 = vbcast.lane.b32.xlu0 %v501_v2, 256  ;;  %v1633_v40 = vcombine.low %v1577_v24, %v7464_v39  ;;  %v523_v2 = vrot.slane %v7426_v28, %v7260_v13 }
  0xb5   :  { %v7487_v36 = vrot.slane %v3777_v0, %v7310_v56  ;;  %v7490_v8 = vrot.slane %v3778_v50, %v7310_v56 }
  0xb6   :  { %v200_v53 = vpop.permute.xlu1 %199  ;;  %v196_v38 = vpop.permute.xlu0 %195 }
  0xb7   :  { %11830 = vst [vmem:[#allocation31_spill] sm:$0xff] %v7487_v36  ;;  %11831 = vst [vmem:[#allocation32_spill] sm:$0xff] %v7490_v8  ;;  %v3793_v48 = vcombine.low %v178_v54, %v200_v53  ;;  %v3794_v37 = vcombine.high %v178_v54, %v200_v53  ;;  %v1617_v27 = vcombine.low %v174_v58, %v196_v38 }
  0xb8   :  { %v1618_v1 = vcombine.high %v174_v58, %v196_v38  ;;  %518 = vbcast.lane.b32.xlu1 %v512_v49, 264  ;;  %514 = vbcast.lane.b32.xlu0 %v512_v49, 256  ;;  %v1609_v38 = vrot.slane %v1601_v43, %v7310_v56  ;;  %v7507_v53 = vrot.slane %v1602_v34, %v7310_v56 }
  0xb9   :  { %v7496_v0 = vrot.slane %v3793_v48, %v7310_v56  ;;  %v7499_v50 = vrot.slane %v3794_v37, %v7310_v56  ;;  %v1625_v46 = vrot.slane %v1617_v27, %v7310_v56  ;;  %v7514_v58 = vrot.slane %v3810_v47, %v7361_v51 }
  0xba   :  { %v7503_v5 = vrot.slane %v1618_v1, %v7310_v56  ;;  %11835 = vst [vmem:[#allocation36_spill] sm:$0xff] %v7507_v53  ;;  %v211_v39 = vpop.permute.xlu1 %210  ;;  %v207_v24 = vpop.permute.xlu0 %206  ;;  %v534_v34 = vrot.slane %v7426_v28, %v7264_v15  ;;  %v7521_v43 = vrot.slane %v1633_v40, %v7361_v51  ;;  %v545_v40 = vrot.slane %v7426_v28, %v7268_v17 }
  0xbb   :  { %11832 = vst [vmem:[#allocation33_spill] sm:$0xff] %v7496_v0  ;;  %11833 = vst [vmem:[#allocation34_spill] sm:$0xff] %v7499_v50  ;;  %v3842_v54 = vcombine.high %v7487_v36, %v7496_v0  ;;  %v3858_v37 = vcombine.high %v7490_v8, %v7499_v50  ;;  %v1665_v27 = vcombine.low %v1609_v38, %v1625_v46 }
  0xbc   :  { %11834 = vst [vmem:[#allocation35_spill] sm:$0xff] %v7503_v5  ;;  %11836 = vst [vmem:[#allocation37_spill] sm:$0xff] %v7514_v58  ;;  %v1666_v1 = vcombine.high %v1609_v38, %v1625_v46  ;;  %v1682_v49 = vcombine.high %v7507_v53, %v7503_v5  ;;  %529 = vbcast.lane.b32.xlu1 %v523_v2, 264  ;;  %525 = vbcast.lane.b32.xlu0 %v523_v2, 256 }
  0xbd   :  { %11837 = vst [vmem:[#allocation38_spill] sm:$0xff] %v7521_v43  ;;  %v7524_v6 = vrot.slane %v3842_v54, %v7361_v51  ;;  %v7527_v47 = vrot.slane %v1665_v27, %v7361_v51  ;;  %v7530_v46 = vrot.slane %v1634_v61, %v7361_v51  ;;  %v7541_v2 = vrot.slane %v1650_v63, %v7361_v51  ;;  %v7560_v63 = vld [vmem:[%s11390_s0 + $0x30] sm:$0xff] }
  0xbe   :  { %v222_v48 = vpop.permute.xlu1 %221  ;;  %v218_v45 = vpop.permute.xlu0 %217  ;;  %v7533_v38 = vrot.slane %v1666_v1, %v7361_v51  ;;  %v7536_v44 = vrot.slane %v1682_v49, %v7361_v51  ;;  %v11844_v28 = vcombine.high %v7453_v26, %v7461_v35  ;;  %v556_v26 = vrot.slane %v7560_v63, %v7243_v4 }
  0xbf   :  { %11838 = vst [vmem:[#allocation39_spill] sm:$0xff] %v7524_v6  ;;  %11839 = vst [vmem:[#allocation40_spill] sm:$0xff] %v7527_v47  ;;  %v567_v61 = vrot.slane %v7560_v63, %v7240_v3  ;;  %v600_v58 = vrot.slane %v7560_v63, %v7256_v11 }
  0xc0   :  { %11840 = vst [vmem:[#allocation41_spill] sm:$0xff] %v7530_v46  ;;  %11841 = vst [vmem:[#allocation42_spill] sm:$0xff] %v7533_v38  ;;  %540 = vbcast.lane.b32.xlu1 %v534_v34, 264  ;;  %v7555_v49 = vrot.slane %v11844_v28, %v7361_v51  ;;  %536 = vbcast.lane.b32.xlu0 %v534_v34, 256  ;;  %v7569_v28 = vrot.slane %v3858_v37, %v7361_v51 }
  0xc1   :  { %11842 = vst [vmem:[#allocation43_spill] sm:$0xff] %v7536_v44  ;;  %11843 = vst [vmem:[#allocation44_spill] sm:$0xff] %v7541_v2 }
  0xc2   :  { %11845 = vst [vmem:[#allocation45_spill] sm:$0xff] %v7555_v49  ;;  %v233_v27 = vpop.permute.xlu1 %232  ;;  %v229_v1 = vpop.permute.xlu0 %228  ;;  %11846 = vst [vmem:[#allocation46_spill] sm:$0xff] %v7569_v28 }
  0xc3   :  { %v3881_v34 = vcombine.low %v211_v39, %v233_v27  ;;  %v3882_v50 = vcombine.high %v211_v39, %v233_v27  ;;  %v1705_v37 = vcombine.low %v207_v24, %v229_v1  ;;  %v1706_v12 = vcombine.high %v207_v24, %v229_v1 }
  0xc4   :  { %551 = vbcast.lane.b32.xlu1 %v545_v40, 264  ;;  %547 = vbcast.lane.b32.xlu0 %v545_v40, 256 }
  0xc5   :  { %v7578_v35 = vrot.slane %v3881_v34, %v7310_v56  ;;  %v7581_v8 = vrot.slane %v3882_v50, %v7310_v56 }
  0xc6   :  { %v244_v39 = vpop.permute.xlu1 %243  ;;  %v240_v27 = vpop.permute.xlu0 %239 }
  0xc7   :  { %11847 = vst [vmem:[#allocation47_spill] sm:$0xff] %v7578_v35  ;;  %11848 = vst [vmem:[#allocation48_spill] sm:$0xff] %v7581_v8  ;;  %v3897_v18 = vcombine.low %v222_v48, %v244_v39  ;;  %v3898_v42 = vcombine.high %v222_v48, %v244_v39  ;;  %v1721_v57 = vcombine.low %v218_v45, %v240_v27 }
  0xc8   :  { %v1722_v6 = vcombine.high %v218_v45, %v240_v27  ;;  %562 = vbcast.lane.b32.xlu1 %v556_v26, 264  ;;  %558 = vbcast.lane.b32.xlu0 %v556_v26, 256  ;;  %v1713_v48 = vrot.slane %v1705_v37, %v7310_v56  ;;  %v7599_v45 = vrot.slane %v1706_v12, %v7310_v56 }
  0xc9   :  { %v7586_v40 = vrot.slane %v3897_v18, %v7310_v56  ;;  %v7589_v34 = vrot.slane %v3898_v42, %v7310_v56  ;;  %v7592_v50 = vrot.slane %v1721_v57, %v7310_v56  ;;  %v578_v26 = vrot.slane %v7560_v63, %v7248_v7 }
  0xca   :  { %v7595_v24 = vrot.slane %v1722_v6, %v7310_v56  ;;  %11852 = vst [vmem:[#allocation52_spill] sm:$0xff] %v7599_v45  ;;  %v255_v1 = vpop.permute.xlu1 %254  ;;  %v251_v39 = vpop.permute.xlu0 %250  ;;  %v589_v27 = vrot.slane %v7560_v63, %v7252_v9 }
  0xcb   :  { %11849 = vst [vmem:[#allocation49_spill] sm:$0xff] %v7586_v40  ;;  %11850 = vst [vmem:[#allocation50_spill] sm:$0xff] %v7589_v34  ;;  %v3946_v18 = vcombine.high %v7578_v35, %v7586_v40  ;;  %v1770_v57 = vcombine.high %v1713_v48, %v7592_v50 }
  0xcc   :  { %11851 = vst [vmem:[#allocation51_spill] sm:$0xff] %v7595_v24  ;;  %v1786_v6 = vcombine.high %v7599_v45, %v7595_v24  ;;  %573 = vbcast.lane.b32.xlu1 %v567_v61, 264  ;;  %569 = vbcast.lane.b32.xlu0 %v567_v61, 256 }
  0xce   :  { %v266_v12 = vpop.permute.xlu1 %265  ;;  %v262_v37 = vpop.permute.xlu0 %261 }
  0xd0   :  { %584 = vbcast.lane.b32.xlu1 %v578_v26, 264  ;;  %580 = vbcast.lane.b32.xlu0 %v578_v26, 256 }
  0xd2   :  { %v277_v54 = vpop.permute.xlu1 %276  ;;  %v273_v28 = vpop.permute.xlu0 %272 }
  0xd3   :  { %v3913_v42 = vcombine.low %v255_v1, %v277_v54  ;;  %v3914_v49 = vcombine.high %v255_v1, %v277_v54  ;;  %v1737_v21 = vcombine.low %v251_v39, %v273_v28  ;;  %v1738_v36 = vcombine.high %v251_v39, %v273_v28 }
  0xd4   :  { %595 = vbcast.lane.b32.xlu1 %v589_v27, 264  ;;  %591 = vbcast.lane.b32.xlu0 %v589_v27, 256  ;;  %v1769_v54 = vcombine.low %v1713_v48, %v7592_v50  ;;  %v611_v1 = vrot.slane %v7560_v63, %v7260_v13 }
  0xd5   :  { %v7615_v23 = vrot.slane %v3913_v42, %v7310_v56  ;;  %v7618_v61 = vrot.slane %v3914_v49, %v7310_v56 }
  0xd6   :  { %v288_v0 = vpop.permute.xlu1 %287  ;;  %v284_v52 = vpop.permute.xlu0 %283 }
  0xd7   :  { %11853 = vst [vmem:[#allocation53_spill] sm:$0xff] %v7615_v23  ;;  %11854 = vst [vmem:[#allocation54_spill] sm:$0xff] %v7618_v61  ;;  %v3929_v26 = vcombine.low %v266_v12, %v288_v0  ;;  %v3930_v14 = vcombine.high %v266_v12, %v288_v0  ;;  %v1753_v35 = vcombine.low %v262_v37, %v284_v52 }
  0xd8   :  { %v1754_v40 = vcombine.high %v262_v37, %v284_v52  ;;  %606 = vbcast.lane.b32.xlu1 %v600_v58, 264  ;;  %602 = vbcast.lane.b32.xlu0 %v600_v58, 256  ;;  %v1745_v52 = vrot.slane %v1737_v21, %v7310_v56  ;;  %v7635_v0 = vrot.slane %v1738_v36, %v7310_v56 }
  0xd9   :  { %v7624_v42 = vrot.slane %v3929_v26, %v7310_v56  ;;  %v7627_v49 = vrot.slane %v3930_v14, %v7310_v56  ;;  %v1761_v28 = vrot.slane %v1753_v35, %v7310_v56  ;;  %v7642_v37 = vrot.slane %v3946_v18, %v7361_v51 }
  0xda   :  { %v7631_v39 = vrot.slane %v1754_v40, %v7310_v56  ;;  %11858 = vst [vmem:[#allocation58_spill] sm:$0xff] %v7635_v0  ;;  %v299_v50 = vpop.permute.xlu1 %298  ;;  %v295_v48 = vpop.permute.xlu0 %294  ;;  %v622_v21 = vrot.slane %v7560_v63, %v7264_v15  ;;  %v7649_v36 = vrot.slane %v1769_v54, %v7361_v51  ;;  %v633_v54 = vrot.slane %v7560_v63, %v7268_v17 }
  0xdb   :  { %11855 = vst [vmem:[#allocation55_spill] sm:$0xff] %v7624_v42  ;;  %11856 = vst [vmem:[#allocation56_spill] sm:$0xff] %v7627_v49  ;;  %v3978_v12 = vcombine.high %v7615_v23, %v7624_v42  ;;  %v3994_v14 = vcombine.high %v7618_v61, %v7627_v49  ;;  %v1801_v35 = vcombine.low %v1745_v52, %v1761_v28 }
  0xdc   :  { %11857 = vst [vmem:[#allocation57_spill] sm:$0xff] %v7631_v39  ;;  %11859 = vst [vmem:[#allocation59_spill] sm:$0xff] %v7642_v37  ;;  %v1802_v40 = vcombine.high %v1745_v52, %v1761_v28  ;;  %v1818_v58 = vcombine.high %v7635_v0, %v7631_v39  ;;  %617 = vbcast.lane.b32.xlu1 %v611_v1, 264  ;;  %613 = vbcast.lane.b32.xlu0 %v611_v1, 256 }
  0xdd   :  { %11860 = vst [vmem:[#allocation60_spill] sm:$0xff] %v7649_v36  ;;  %v7652_v27 = vrot.slane %v3978_v12, %v7361_v51  ;;  %v7655_v18 = vrot.slane %v1801_v35, %v7361_v51  ;;  %v7658_v28 = vrot.slane %v1770_v57, %v7361_v51  ;;  %v7669_v1 = vrot.slane %v1786_v6, %v7361_v51  ;;  %v7688_v6 = vld [vmem:[%s11390_s0 + $0x38] sm:$0xff] }
  0xde   :  { %v310_v26 = vpop.permute.xlu1 %309  ;;  %v306_v61 = vpop.permute.xlu0 %305  ;;  %v7661_v52 = vrot.slane %v1802_v40, %v7361_v51  ;;  %v7664_v49 = vrot.slane %v1818_v58, %v7361_v51  ;;  %v11865_v63 = vcombine.high %v7581_v8, %v7589_v34  ;;  %v644_v34 = vrot.slane %v7688_v6, %v7243_v4 }
  0xdf   :  { %11861 = vst [vmem:[#allocation61_spill] sm:$0xff] %v7652_v27  ;;  %11862 = vst [vmem:[#allocation62_spill] sm:$0xff] %v7655_v18  ;;  %v655_v12 = vrot.slane %v7688_v6, %v7240_v3 }
  0xe0   :  { %11863 = vst [vmem:[#allocation63_spill] sm:$0xff] %v7664_v49  ;;  %11864 = vst [vmem:[#allocation64_spill] sm:$0xff] %v7669_v1  ;;  %628 = vbcast.lane.b32.xlu1 %v622_v21, 264  ;;  %v7683_v58 = vrot.slane %v11865_v63, %v7361_v51  ;;  %624 = vbcast.lane.b32.xlu0 %v622_v21, 256  ;;  %v7697_v63 = vrot.slane %v3994_v14, %v7361_v51 }
  0xe2   :  { %11866 = vst [vmem:[#allocation65_spill] sm:$0xff] %v7683_v58  ;;  %v321_v57 = vpop.permute.xlu1 %320  ;;  %v317_v40 = vpop.permute.xlu0 %316  ;;  %11867 = vst [vmem:[#allocation66_spill] sm:$0xff] %v7697_v63 }
  0xe3   :  { %v4017_v21 = vcombine.low %v299_v50, %v321_v57  ;;  %v4018_v8 = vcombine.high %v299_v50, %v321_v57  ;;  %v1841_v14 = vcombine.low %v295_v48, %v317_v40  ;;  %v1842_v27 = vcombine.high %v295_v48, %v317_v40 }
  0xe4   :  { %639 = vbcast.lane.b32.xlu1 %v633_v54, 264  ;;  %635 = vbcast.lane.b32.xlu0 %v633_v54, 256 }
  0xe5   :  { %v7706_v42 = vrot.slane %v4017_v21, %v7310_v56  ;;  %v7709_v23 = vrot.slane %v4018_v8, %v7310_v56 }
  0xe6   :  { %v332_v50 = vpop.permute.xlu1 %331  ;;  %v328_v57 = vpop.permute.xlu0 %327 }
  0xe7   :  { %11868 = vst [vmem:[#allocation67_spill] sm:$0xff] %v7706_v42  ;;  %11869 = vst [vmem:[#allocation68_spill] sm:$0xff] %v7709_v23  ;;  %v4033_v37 = vcombine.low %v310_v26, %v332_v50  ;;  %v4034_v10 = vcombine.high %v310_v26, %v332_v50  ;;  %v1857_v16 = vcombine.low %v306_v61, %v328_v57 }
  0xe8   :  { %v1858_v41 = vcombine.high %v306_v61, %v328_v57  ;;  %650 = vbcast.lane.b32.xlu1 %v644_v34, 264  ;;  %646 = vbcast.lane.b32.xlu0 %v644_v34, 256  ;;  %v1849_v26 = vrot.slane %v1841_v14, %v7310_v56  ;;  %v7725_v61 = vrot.slane %v1842_v27, %v7310_v56 }
  0xe9   :  { %v7714_v54 = vrot.slane %v4033_v37, %v7310_v56  ;;  %v7717_v21 = vrot.slane %v4034_v10, %v7310_v56  ;;  %v1865_v8 = vrot.slane %v1857_v16, %v7310_v56  ;;  %v677_v14 = vrot.slane %v7688_v6, %v7252_v9 }
  0xea   :  { %v7721_v48 = vrot.slane %v1858_v41, %v7310_v56  ;;  %11873 = vst [vmem:[#allocation72_spill] sm:$0xff] %v7725_v61  ;;  %v343_v40 = vpop.permute.xlu1 %342  ;;  %v339_v50 = vpop.permute.xlu0 %338  ;;  %v666_v41 = vrot.slane %v7688_v6, %v7248_v7 }
  0xeb   :  { %11870 = vst [vmem:[#allocation69_spill] sm:$0xff] %v7714_v54  ;;  %11871 = vst [vmem:[#allocation70_spill] sm:$0xff] %v7717_v21  ;;  %v4082_v37 = vcombine.high %v7706_v42, %v7714_v54  ;;  %v1906_v57 = vcombine.high %v1849_v26, %v1865_v8  ;;  %v688_v42 = vrot.slane %v7688_v6, %v7256_v11 }
  0xec   :  { %11872 = vst [vmem:[#allocation71_spill] sm:$0xff] %v7721_v48  ;;  %v1922_v16 = vcombine.high %v7725_v61, %v7721_v48  ;;  %661 = vbcast.lane.b32.xlu1 %v655_v12, 264  ;;  %657 = vbcast.lane.b32.xlu0 %v655_v12, 256 }
  0xee   :  { %v354_v34 = vpop.permute.xlu1 %353  ;;  %v350_v27 = vpop.permute.xlu0 %349 }
  0xf0   :  { %672 = vbcast.lane.b32.xlu1 %v666_v41, 264  ;;  %668 = vbcast.lane.b32.xlu0 %v666_v41, 256 }
  0xf2   :  { %v365_v35 = vpop.permute.xlu1 %364  ;;  %v361_v63 = vpop.permute.xlu0 %360 }
  0xf3   :  { %v4049_v58 = vcombine.low %v343_v40, %v365_v35  ;;  %v4050_v10 = vcombine.high %v343_v40, %v365_v35  ;;  %v1873_v55 = vcombine.low %v339_v50, %v361_v63  ;;  %v1874_v44 = vcombine.high %v339_v50, %v361_v63 }
  0xf4   :  { %683 = vbcast.lane.b32.xlu1 %v677_v14, 264  ;;  %679 = vbcast.lane.b32.xlu0 %v677_v14, 256  ;;  %v1905_v35 = vcombine.low %v1849_v26, %v1865_v8  ;;  %v699_v40 = vrot.slane %v7688_v6, %v7260_v13 }
  0xf5   :  { %v7740_v54 = vrot.slane %v4049_v58, %v7310_v56  ;;  %v7743_v12 = vrot.slane %v4050_v10, %v7310_v56 }
  0xf6   :  { %v376_v2 = vpop.permute.xlu1 %375  ;;  %v372_v49 = vpop.permute.xlu0 %371 }
  0xf7   :  { %11874 = vst [vmem:[#allocation73_spill] sm:$0xff] %v7740_v54  ;;  %11875 = vst [vmem:[#allocation74_spill] sm:$0xff] %v7743_v12  ;;  %v4065_v41 = vcombine.low %v354_v34, %v376_v2  ;;  %v4066_v1 = vcombine.high %v354_v34, %v376_v2  ;;  %v1889_v33 = vcombine.low %v350_v27, %v372_v49 }
  0xf8   :  { %v1890_v25 = vcombine.high %v350_v27, %v372_v49  ;;  %694 = vbcast.lane.b32.xlu1 %v688_v42, 264  ;;  %690 = vbcast.lane.b32.xlu0 %v688_v42, 256  ;;  %v1881_v2 = vrot.slane %v1873_v55, %v7310_v56  ;;  %v7759_v49 = vrot.slane %v1874_v44, %v7310_v56 }
  0xf9   :  { %v7748_v14 = vrot.slane %v4065_v41, %v7310_v56  ;;  %v7751_v58 = vrot.slane %v4066_v1, %v7310_v56  ;;  %v1897_v10 = vrot.slane %v1889_v33, %v7310_v56  ;;  %v7766_v34 = vrot.slane %v4082_v37, %v7361_v51 }
  0xfa   :  { %v7755_v63 = vrot.slane %v1890_v25, %v7310_v56  ;;  %11879 = vst [vmem:[#allocation78_spill] sm:$0xff] %v7759_v49  ;;  %v387_v8 = vpop.permute.xlu1 %386  ;;  %v383_v26 = vpop.permute.xlu0 %382  ;;  %v710_v55 = vrot.slane %v7688_v6, %v7264_v15  ;;  %v7773_v44 = vrot.slane %v1905_v35, %v7361_v51  ;;  %v721_v35 = vrot.slane %v7688_v6, %v7268_v17 }
  0xfb   :  { %11876 = vst [vmem:[#allocation75_spill] sm:$0xff] %v7748_v14  ;;  %11877 = vst [vmem:[#allocation76_spill] sm:$0xff] %v7751_v58  ;;  %v4114_v50 = vcombine.high %v7740_v54, %v7748_v14  ;;  %v4130_v1 = vcombine.high %v7743_v12, %v7751_v58  ;;  %v1937_v33 = vcombine.low %v1881_v2, %v1897_v10 }
  0xfc   :  { %11878 = vst [vmem:[#allocation77_spill] sm:$0xff] %v7755_v63  ;;  %11880 = vst [vmem:[#allocation79_spill] sm:$0xff] %v7766_v34  ;;  %v1938_v25 = vcombine.high %v1881_v2, %v1897_v10  ;;  %v1954_v42 = vcombine.high %v7759_v49, %v7755_v63  ;;  %705 = vbcast.lane.b32.xlu1 %v699_v40, 264  ;;  %701 = vbcast.lane.b32.xlu0 %v699_v40, 256 }
  0xfd   :  { %11881 = vst [vmem:[#allocation80_spill] sm:$0xff] %v7773_v44  ;;  %v7776_v27 = vrot.slane %v4114_v50, %v7361_v51  ;;  %v7779_v37 = vrot.slane %v1937_v33, %v7361_v51  ;;  %v7782_v10 = vrot.slane %v1906_v57, %v7361_v51  ;;  %v7793_v50 = vrot.slane %v1922_v16, %v7361_v51  ;;  %v7812_v16 = vld [vmem:[%s11390_s0 + $0x40] sm:$0xff] }
  0xfe   :  { %v398_v41 = vpop.permute.xlu1 %397  ;;  %v7785_v2 = vrot.slane %v1938_v25, %v7361_v51  ;;  %v7788_v12 = vrot.slane %v1954_v42, %v7361_v51  ;;  %v394_v40 = vpop.permute.xlu0 %393  ;;  %v11888_v6 = vcombine.high %v7709_v23, %v7717_v21  ;;  %v7821_v23 = vrot.slane %v4130_v1, %v7361_v51 }
  0xff   :  { %11882 = vst [vmem:[#allocation81_spill] sm:$0xff] %v7776_v27  ;;  %11883 = vst [vmem:[#allocation82_spill] sm:$0xff] %v7779_v37  ;;  %v732_v54 = vrot.slane %v7812_v16, %v7243_v4  ;;  %v743_v57 = vrot.slane %v7812_v16, %v7240_v3 }
 0x100   :  { %11884 = vst [vmem:[#allocation83_spill] sm:$0xff] %v7782_v10  ;;  %11885 = vst [vmem:[#allocation84_spill] sm:$0xff] %v7785_v2  ;;  %716 = vbcast.lane.b32.xlu1 %v710_v55, 264  ;;  %v7807_v58 = vrot.slane %v11888_v6, %v7361_v51  ;;  %712 = vbcast.lane.b32.xlu0 %v710_v55, 256 }
 0x101   :  { %11886 = vst [vmem:[#allocation85_spill] sm:$0xff] %v7788_v12  ;;  %11887 = vst [vmem:[#allocation86_spill] sm:$0xff] %v7793_v50 }
 0x102   :  { %11889 = vst [vmem:[#allocation87_spill] sm:$0xff] %v7807_v58  ;;  %v409_v25 = vpop.permute.xlu1 %408  ;;  %11890 = vst [vmem:[#allocation88_spill] sm:$0xff] %v7821_v23  ;;  %v405_v21 = vpop.permute.xlu0 %404 }
 0x103   :  { %v4153_v6 = vcombine.low %v387_v8, %v409_v25  ;;  %v4154_v55 = vcombine.high %v387_v8, %v409_v25  ;;  %v1977_v14 = vcombine.low %v383_v26, %v405_v21  ;;  %v1978_v12 = vcombine.high %v383_v26, %v405_v21 }
 0x104   :  { %727 = vbcast.lane.b32.xlu1 %v721_v35, 264  ;;  %723 = vbcast.lane.b32.xlu0 %v721_v35, 256 }
 0x105   :  { %v7830_v1 = vrot.slane %v4153_v6, %v7310_v56  ;;  %v7833_v8 = vrot.slane %v4154_v55, %v7310_v56  ;;  %v1985_v26 = vrot.slane %v1977_v14, %v7310_v56  ;;  %v7845_v6 = vrot.slane %v1978_v12, %v7310_v56 }
 0x106   :  { %v420_v42 = vpop.permute.xlu1 %419  ;;  %v416_v34 = vpop.permute.xlu0 %415  ;;  %v754_v12 = vrot.slane %v7812_v16, %v7248_v7 }
 0x107   :  { %11891 = vst [vmem:[#allocation89_spill] sm:$0xff] %v7830_v1  ;;  %11892 = vst [vmem:[#allocation90_spill] sm:$0xff] %v7833_v8  ;;  %v4169_v25 = vcombine.low %v398_v41, %v420_v42  ;;  %v4170_v27 = vcombine.high %v398_v41, %v420_v42  ;;  %v1993_v50 = vcombine.low %v394_v40, %v416_v34 }
 0x108   :  { %v1994_v61 = vcombine.high %v394_v40, %v416_v34  ;;  %738 = vbcast.lane.b32.xlu1 %v732_v54, 264  ;;  %734 = vbcast.lane.b32.xlu0 %v732_v54, 256  ;;  %11895 = vst [vmem:[#allocation93_spill] sm:$0xff] %v7845_v6 }
 0x109   :  { %v7838_v35 = vrot.slane %v4169_v25, %v7310_v56  ;;  %v7841_v21 = vrot.slane %v4170_v27, %v7310_v56  ;;  %v2001_v41 = vrot.slane %v1993_v50, %v7310_v56  ;;  %v765_v50 = vrot.slane %v7812_v16, %v7252_v9 }
 0x10a   :  { %v7849_v34 = vrot.slane %v1994_v61, %v7310_v56  ;;  %v431_v40 = vpop.permute.xlu1 %430  ;;  %v427_v27 = vpop.permute.xlu0 %426 }
 0x10b   :  { %11893 = vst [vmem:[#allocation91_spill] sm:$0xff] %v7838_v35  ;;  %11894 = vst [vmem:[#allocation92_spill] sm:$0xff] %v7841_v21  ;;  %v4218_v42 = vcombine.high %v7830_v1, %v7838_v35  ;;  %v2042_v25 = vcombine.high %v1985_v26, %v2001_v41  ;;  %v776_v1 = vrot.slane %v7812_v16, %v7256_v11 }
 0x10c   :  { %11896 = vst [vmem:[#allocation94_spill] sm:$0xff] %v7849_v34  ;;  %v2058_v54 = vcombine.high %v7845_v6, %v7849_v34  ;;  %749 = vbcast.lane.b32.xlu1 %v743_v57, 264  ;;  %745 = vbcast.lane.b32.xlu0 %v743_v57, 256  ;;  %v2041_v5 = vcombine.low %v1985_v26, %v2001_v41 }
 0x10e   :  { %v442_v14 = vpop.permute.xlu1 %441  ;;  %v438_v61 = vpop.permute.xlu0 %437 }
 0x110   :  { %760 = vbcast.lane.b32.xlu1 %v754_v12, 264  ;;  %756 = vbcast.lane.b32.xlu0 %v754_v12, 256 }
 0x112   :  { %v453_v33 = vpop.permute.xlu1 %452  ;;  %v449_v58 = vpop.permute.xlu0 %448 }
 0x113   :  { %v4185_v23 = vcombine.low %v431_v40, %v453_v33  ;;  %v4186_v55 = vcombine.high %v431_v40, %v453_v33  ;;  %v2009_v35 = vcombine.low %v427_v27, %v449_v58  ;;  %v2010_v48 = vcombine.high %v427_v27, %v449_v58 }
 0x114   :  { %771 = vbcast.lane.b32.xlu1 %v765_v50, 264  ;;  %767 = vbcast.lane.b32.xlu0 %v765_v50, 256  ;;  %v787_v40 = vrot.slane %v7812_v16, %v7260_v13 }
 0x115   :  { %v7864_v57 = vrot.slane %v4185_v23, %v7310_v56  ;;  %v7867_v63 = vrot.slane %v4186_v55, %v7310_v56  ;;  %v2017_v23 = vrot.slane %v2009_v35, %v7310_v56  ;;  %v7879_v55 = vrot.slane %v2010_v48, %v7310_v56 }
 0x116   :  { %v464_v49 = vpop.permute.xlu1 %463  ;;  %v460_v62 = vpop.permute.xlu0 %459 }
 0x117   :  { %11897 = vst [vmem:[#allocation95_spill] sm:$0xff] %v7864_v57  ;;  %11898 = vst [vmem:[#allocation96_spill] sm:$0xff] %v7867_v63  ;;  %v4201_v29 = vcombine.low %v442_v14, %v464_v49  ;;  %v4202_v12 = vcombine.high %v442_v14, %v464_v49  ;;  %v2025_v53 = vcombine.low %v438_v61, %v460_v62 }
 0x118   :  { %v2026_v33 = vcombine.high %v438_v61, %v460_v62  ;;  %782 = vbcast.lane.b32.xlu1 %v776_v1, 264  ;;  %778 = vbcast.lane.b32.xlu0 %v776_v1, 256  ;;  %11901 = vst [vmem:[#allocation99_spill] sm:$0xff] %v7879_v55  ;;  %v7890_v1 = vrot.slane %v4218_v42, %v7361_v51 }
 0x119   :  { %v7872_v50 = vrot.slane %v4201_v29, %v7310_v56  ;;  %v7875_v58 = vrot.slane %v4202_v12, %v7310_v56  ;;  %v2033_v49 = vrot.slane %v2025_v53, %v7310_v56  ;;  %v798_v53 = vrot.slane %v7812_v16, %v7264_v15 }
 0x11a   :  { %v7883_v62 = vrot.slane %v2026_v33, %v7310_v56  ;;  %v475_v27 = vpop.permute.xlu1 %474  ;;  %v471_v41 = vpop.permute.xlu0 %470  ;;  %11903 = vst [vmem:[#allocation101_spill] sm:$0xff] %v7890_v1  ;;  %v7897_v61 = vrot.slane %v2041_v5, %v7361_v51  ;;  %v809_v5 = vrot.slane %v7812_v16, %v7268_v17  ;;  %v11909_v16 = vcombine.high %v7833_v8, %v7841_v21 }
 0x11b   :  { %11899 = vst [vmem:[#allocation97_spill] sm:$0xff] %v7872_v50  ;;  %11900 = vst [vmem:[#allocation98_spill] sm:$0xff] %v7875_v58  ;;  %v4250_v26 = vcombine.high %v7864_v57, %v7872_v50  ;;  %v4266_v29 = vcombine.high %v7867_v63, %v7875_v58  ;;  %v2073_v35 = vcombine.low %v2017_v23, %v2033_v49 }
 0x11c   :  { %11902 = vst [vmem:[#allocation100_spill] sm:$0xff] %v7883_v62  ;;  %v2074_v14 = vcombine.high %v2017_v23, %v2033_v49  ;;  %v2090_v48 = vcombine.high %v7879_v55, %v7883_v62  ;;  %793 = vbcast.lane.b32.xlu1 %v787_v40, 264  ;;  %789 = vbcast.lane.b32.xlu0 %v787_v40, 256  ;;  %11904 = vst [vmem:[#allocation102_spill] sm:$0xff] %v7897_v61 }
 0x11d   :  { %v7900_v12 = vrot.slane %v4250_v26, %v7361_v51  ;;  %v7903_v42 = vrot.slane %v2073_v35, %v7361_v51  ;;  %v7906_v23 = vrot.slane %v2042_v25, %v7361_v51  ;;  %v7917_v26 = vrot.slane %v2058_v54, %v7361_v51  ;;  %v7936_v54 = vld [vmem:[%s11390_s0 + $0x48] sm:$0xff] }
 0x11e   :  { %v486_v33 = vpop.permute.xlu1 %485  ;;  %v7909_v49 = vrot.slane %v2074_v14, %v7361_v51  ;;  %v7912_v63 = vrot.slane %v2090_v48, %v7361_v51  ;;  %v482_v40 = vpop.permute.xlu0 %481  ;;  %v7931_v58 = vrot.slane %v11909_v16, %v7361_v51  ;;  %v7945_v8 = vrot.slane %v4266_v29, %v7361_v51 }
 0x11f   :  { %11905 = vst [vmem:[#allocation103_spill] sm:$0xff] %v7900_v12  ;;  %11906 = vst [vmem:[#allocation104_spill] sm:$0xff] %v7903_v42  ;;  %v820_v57 = vrot.slane %v7936_v54, %v7243_v4  ;;  %v831_v35 = vrot.slane %v7936_v54, %v7240_v3 }
 0x120   :  { %11907 = vst [vmem:[#allocation105_spill] sm:$0xff] %v7912_v63  ;;  %11908 = vst [vmem:[#allocation106_spill] sm:$0xff] %v7917_v26  ;;  %804 = vbcast.lane.b32.xlu1 %v798_v53, 264  ;;  %800 = vbcast.lane.b32.xlu0 %v798_v53, 256 }
 0x121   :  { %11910 = vst [vmem:[#allocation107_spill] sm:$0xff] %v7931_v58  ;;  %11911 = vst [vmem:[#allocation108_spill] sm:$0xff] %v7945_v8 }
 0x122   :  { %v497_v25 = vpop.permute.xlu1 %496  ;;  %v493_v21 = vpop.permute.xlu0 %492 }
 0x123   :  { %v4289_v16 = vcombine.low %v475_v27, %v497_v25  ;;  %v4290_v53 = vcombine.high %v475_v27, %v497_v25  ;;  %v2113_v50 = vcombine.low %v471_v41, %v493_v21  ;;  %v2114_v63 = vcombine.high %v471_v41, %v493_v21 }
 0x124   :  { %815 = vbcast.lane.b32.xlu1 %v809_v5, 264  ;;  %811 = vbcast.lane.b32.xlu0 %v809_v5, 256 }
 0x125   :  { %v7954_v29 = vrot.slane %v4289_v16, %v7310_v56  ;;  %v7957_v27 = vrot.slane %v4290_v53, %v7310_v56  ;;  %v2121_v41 = vrot.slane %v2113_v50, %v7310_v56  ;;  %v7969_v16 = vrot.slane %v2114_v63, %v7310_v56 }
 0x126   :  { %v508_v48 = vpop.permute.xlu1 %507  ;;  %v504_v1 = vpop.permute.xlu0 %503  ;;  %v842_v63 = vrot.slane %v7936_v54, %v7248_v7 }
 0x127   :  { %11912 = vst [vmem:[#allocation109_spill] sm:$0xff] %v7954_v29  ;;  %11913 = vst [vmem:[#allocation110_spill] sm:$0xff] %v7957_v27  ;;  %v4305_v25 = vcombine.low %v486_v33, %v508_v48  ;;  %v4306_v12 = vcombine.high %v486_v33, %v508_v48  ;;  %v2129_v26 = vcombine.low %v482_v40, %v504_v1 }
 0x128   :  { %v2130_v6 = vcombine.high %v482_v40, %v504_v1  ;;  %826 = vbcast.lane.b32.xlu1 %v820_v57, 264  ;;  %822 = vbcast.lane.b32.xlu0 %v820_v57, 256  ;;  %11916 = vst [vmem:[#allocation113_spill] sm:$0xff] %v7969_v16 }
 0x129   :  { %v7962_v5 = vrot.slane %v4305_v25, %v7310_v56  ;;  %v7965_v21 = vrot.slane %v4306_v12, %v7310_v56  ;;  %v2137_v33 = vrot.slane %v2129_v26, %v7310_v56  ;;  %v853_v26 = vrot.slane %v7936_v54, %v7252_v9 }
 0x12a   :  { %v7973_v1 = vrot.slane %v2130_v6, %v7310_v56  ;;  %v519_v40 = vpop.permute.xlu1 %518  ;;  %v515_v12 = vpop.permute.xlu0 %514 }
 0x12b   :  { %11914 = vst [vmem:[#allocation111_spill] sm:$0xff] %v7962_v5  ;;  %11915 = vst [vmem:[#allocation112_spill] sm:$0xff] %v7965_v21  ;;  %v4354_v48 = vcombine.high %v7954_v29, %v7962_v5  ;;  %v2178_v25 = vcombine.high %v2121_v41, %v2137_v33  ;;  %v864_v29 = vrot.slane %v7936_v54, %v7256_v11 }
 0x12c   :  { %11917 = vst [vmem:[#allocation114_spill] sm:$0xff] %v7973_v1  ;;  %v2194_v57 = vcombine.high %v7969_v16, %v7973_v1  ;;  %837 = vbcast.lane.b32.xlu1 %v831_v35, 264  ;;  %833 = vbcast.lane.b32.xlu0 %v831_v35, 256  ;;  %v2177_v24 = vcombine.low %v2121_v41, %v2137_v33 }
 0x12e   :  { %v530_v50 = vpop.permute.xlu1 %529  ;;  %v526_v6 = vpop.permute.xlu0 %525 }
 0x130   :  { %848 = vbcast.lane.b32.xlu1 %v842_v63, 264  ;;  %844 = vbcast.lane.b32.xlu0 %v842_v63, 256 }
 0x132   :  { %v541_v14 = vpop.permute.xlu1 %540  ;;  %v537_v58 = vpop.permute.xlu0 %536 }
 0x133   :  { %v4321_v8 = vcombine.low %v519_v40, %v541_v14  ;;  %v4322_v53 = vcombine.high %v519_v40, %v541_v14  ;;  %v2145_v5 = vcombine.low %v515_v12, %v537_v58  ;;  %v2146_v16 = vcombine.high %v515_v12, %v537_v58 }
 0x134   :  { %859 = vbcast.lane.b32.xlu1 %v853_v26, 264  ;;  %855 = vbcast.lane.b32.xlu0 %v853_v26, 256  ;;  %v875_v40 = vrot.slane %v7936_v54, %v7260_v13 }
 0x135   :  { %v7988_v35 = vrot.slane %v4321_v8, %v7310_v56  ;;  %v7991_v34 = vrot.slane %v4322_v53, %v7310_v56  ;;  %v2153_v8 = vrot.slane %v2145_v5, %v7310_v56  ;;  %v8003_v53 = vrot.slane %v2146_v16, %v7310_v56 }
 0x136   :  { %v552_v1 = vpop.permute.xlu1 %551  ;;  %v548_v62 = vpop.permute.xlu0 %547 }
 0x137   :  { %11918 = vst [vmem:[#allocation115_spill] sm:$0xff] %v7988_v35  ;;  %11919 = vst [vmem:[#allocation116_spill] sm:$0xff] %v7991_v34  ;;  %v4337_v55 = vcombine.low %v530_v50, %v552_v1  ;;  %v4338_v63 = vcombine.high %v530_v50, %v552_v1  ;;  %v2161_v45 = vcombine.low %v526_v6, %v548_v62 }
 0x138   :  { %v2162_v14 = vcombine.high %v526_v6, %v548_v62  ;;  %870 = vbcast.lane.b32.xlu1 %v864_v29, 264  ;;  %866 = vbcast.lane.b32.xlu0 %v864_v29, 256  ;;  %11922 = vst [vmem:[#allocation119_spill] sm:$0xff] %v8003_v53  ;;  %v8014_v29 = vrot.slane %v4354_v48, %v7361_v51 }
 0x139   :  { %v7996_v26 = vrot.slane %v4337_v55, %v7310_v56  ;;  %v7999_v58 = vrot.slane %v4338_v63, %v7310_v56  ;;  %v2169_v1 = vrot.slane %v2161_v45, %v7310_v56  ;;  %v886_v45 = vrot.slane %v7936_v54, %v7264_v15 }
 0x13a   :  { %v8007_v62 = vrot.slane %v2162_v14, %v7310_v56  ;;  %v563_v12 = vpop.permute.xlu1 %562  ;;  %v559_v33 = vpop.permute.xlu0 %558  ;;  %11924 = vst [vmem:[#allocation121_spill] sm:$0xff] %v8014_v29  ;;  %v8021_v6 = vrot.slane %v2177_v24, %v7361_v51  ;;  %v897_v24 = vrot.slane %v7936_v54, %v7268_v17  ;;  %v11932_v54 = vcombine.high %v7957_v27, %v7965_v21 }
 0x13b   :  { %11920 = vst [vmem:[#allocation117_spill] sm:$0xff] %v7996_v26  ;;  %11921 = vst [vmem:[#allocation118_spill] sm:$0xff] %v7999_v58  ;;  %v4386_v41 = vcombine.high %v7988_v35, %v7996_v26  ;;  %v4402_v55 = vcombine.high %v7991_v34, %v7999_v58  ;;  %v2209_v5 = vcombine.low %v2153_v8, %v2169_v1 }
 0x13c   :  { %11923 = vst [vmem:[#allocation120_spill] sm:$0xff] %v8007_v62  ;;  %v2210_v50 = vcombine.high %v2153_v8, %v2169_v1  ;;  %v2226_v16 = vcombine.high %v8003_v53, %v8007_v62  ;;  %881 = vbcast.lane.b32.xlu1 %v875_v40, 264  ;;  %877 = vbcast.lane.b32.xlu0 %v875_v40, 256  ;;  %11925 = vst [vmem:[#allocation122_spill] sm:$0xff] %v8021_v6 }
 0x13d   :  { %v8024_v63 = vrot.slane %v4386_v41, %v7361_v51  ;;  %v8027_v48 = vrot.slane %v2209_v5, %v7361_v51  ;;  %v8030_v8 = vrot.slane %v2178_v25, %v7361_v51  ;;  %v8041_v41 = vrot.slane %v2194_v57, %v7361_v51  ;;  %v8060_v57 = vld [vmem:[%s11390_s0 + $0x50] sm:$0xff] }
 0x13e   :  { %v574_v14 = vpop.permute.xlu1 %573  ;;  %v8033_v1 = vrot.slane %v2210_v50, %v7361_v51  ;;  %v8036_v34 = vrot.slane %v2226_v16, %v7361_v51  ;;  %v570_v40 = vpop.permute.xlu0 %569  ;;  %v8055_v58 = vrot.slane %v11932_v54, %v7361_v51  ;;  %v8069_v27 = vrot.slane %v4402_v55, %v7361_v51 }
 0x13f   :  { %11926 = vst [vmem:[#allocation123_spill] sm:$0xff] %v8024_v63  ;;  %11927 = vst [vmem:[#allocation124_spill] sm:$0xff] %v8027_v48  ;;  %v908_v35 = vrot.slane %v8060_v57, %v7243_v4  ;;  %v919_v25 = vrot.slane %v8060_v57, %v7240_v3 }
 0x140   :  { %11928 = vst [vmem:[#allocation125_spill] sm:$0xff] %v8030_v8  ;;  %11929 = vst [vmem:[#allocation126_spill] sm:$0xff] %v8033_v1  ;;  %892 = vbcast.lane.b32.xlu1 %v886_v45, 264  ;;  %888 = vbcast.lane.b32.xlu0 %v886_v45, 256 }
 0x141   :  { %11930 = vst [vmem:[#allocation127_spill] sm:$0xff] %v8036_v34  ;;  %11931 = vst [vmem:[#allocation128_spill] sm:$0xff] %v8041_v41 }
 0x142   :  { %11933 = vst [vmem:[#allocation129_spill] sm:$0xff] %v8055_v58  ;;  %v585_v50 = vpop.permute.xlu1 %584  ;;  %11934 = vst [vmem:[#allocation130_spill] sm:$0xff] %v8069_v27  ;;  %v581_v21 = vpop.permute.xlu0 %580 }
 0x143   :  { %v4425_v54 = vcombine.low %v563_v12, %v585_v50  ;;  %v4426_v45 = vcombine.high %v563_v12, %v585_v50  ;;  %v2249_v26 = vcombine.low %v559_v33, %v581_v21  ;;  %v2250_v34 = vcombine.high %v559_v33, %v581_v21 }
 0x144   :  { %903 = vbcast.lane.b32.xlu1 %v897_v24, 264  ;;  %899 = vbcast.lane.b32.xlu0 %v897_v24, 256 }
 0x145   :  { %v8078_v55 = vrot.slane %v4425_v54, %v7310_v56  ;;  %v8081_v12 = vrot.slane %v4426_v45, %v7310_v56  ;;  %v2257_v33 = vrot.slane %v2249_v26, %v7310_v56  ;;  %v8093_v54 = vrot.slane %v2250_v34, %v7310_v56 }
 0x146   :  { %v596_v16 = vpop.permute.xlu1 %595  ;;  %v592_v29 = vpop.permute.xlu0 %591  ;;  %v930_v34 = vrot.slane %v8060_v57, %v7248_v7 }
 0x147   :  { %11935 = vst [vmem:[#allocation131_spill] sm:$0xff] %v8078_v55  ;;  %11936 = vst [vmem:[#allocation132_spill] sm:$0xff] %v8081_v12  ;;  %v4441_v50 = vcombine.low %v574_v14, %v596_v16  ;;  %v4442_v63 = vcombine.high %v574_v14, %v596_v16  ;;  %v2265_v41 = vcombine.low %v570_v40, %v592_v29 }
 0x148   :  { %v2266_v53 = vcombine.high %v570_v40, %v592_v29  ;;  %914 = vbcast.lane.b32.xlu1 %v908_v35, 264  ;;  %910 = vbcast.lane.b32.xlu0 %v908_v35, 256  ;;  %11939 = vst [vmem:[#allocation135_spill] sm:$0xff] %v8093_v54 }
 0x149   :  { %v8086_v24 = vrot.slane %v4441_v50, %v7310_v56  ;;  %v8089_v21 = vrot.slane %v4442_v63, %v7310_v56  ;;  %v2273_v14 = vrot.slane %v2265_v41, %v7310_v56  ;;  %v941_v41 = vrot.slane %v8060_v57, %v7252_v9 }
 0x14a   :  { %v8097_v29 = vrot.slane %v2266_v53, %v7310_v56  ;;  %v607_v40 = vpop.permute.xlu1 %606  ;;  %v603_v63 = vpop.permute.xlu0 %602 }
 0x14b   :  { %11937 = vst [vmem:[#allocation133_spill] sm:$0xff] %v8086_v24  ;;  %11938 = vst [vmem:[#allocation134_spill] sm:$0xff] %v8089_v21  ;;  %v4490_v16 = vcombine.high %v8078_v55, %v8086_v24  ;;  %v2314_v50 = vcombine.high %v2257_v33, %v2273_v14  ;;  %v952_v55 = vrot.slane %v8060_v57, %v7256_v11 }
 0x14c   :  { %11940 = vst [vmem:[#allocation136_spill] sm:$0xff] %v8097_v29  ;;  %v2330_v35 = vcombine.high %v8093_v54, %v8097_v29  ;;  %925 = vbcast.lane.b32.xlu1 %v919_v25, 264  ;;  %921 = vbcast.lane.b32.xlu0 %v919_v25, 256  ;;  %v2313_v20 = vcombine.low %v2257_v33, %v2273_v14 }
 0x14e   :  { %v618_v26 = vpop.permute.xlu1 %617  ;;  %v614_v53 = vpop.permute.xlu0 %613 }
 0x150   :  { %936 = vbcast.lane.b32.xlu1 %v930_v34, 264  ;;  %932 = vbcast.lane.b32.xlu0 %v930_v34, 256 }
 0x152   :  { %v629_v5 = vpop.permute.xlu1 %628  ;;  %v625_v58 = vpop.permute.xlu0 %624 }
 0x153   :  { %v4457_v27 = vcombine.low %v607_v40, %v629_v5  ;;  %v4458_v45 = vcombine.high %v607_v40, %v629_v5  ;;  %v2281_v24 = vcombine.low %v603_v63, %v625_v58  ;;  %v2282_v62 = vcombine.high %v603_v63, %v625_v58 }
 0x154   :  { %947 = vbcast.lane.b32.xlu1 %v941_v41, 264  ;;  %943 = vbcast.lane.b32.xlu0 %v941_v41, 256  ;;  %v963_v40 = vrot.slane %v8060_v57, %v7260_v13 }
 0x155   :  { %v8112_v25 = vrot.slane %v4457_v27, %v7310_v56  ;;  %v8115_v29 = vrot.slane %v4458_v45, %v7310_v56  ;;  %v2289_v27 = vrot.slane %v2281_v24, %v7310_v56  ;;  %v8127_v45 = vrot.slane %v2282_v62, %v7310_v56 }
 0x156   :  { %v640_v54 = vpop.permute.xlu1 %639  ;;  %v636_v39 = vpop.permute.xlu0 %635 }
 0x157   :  { %11941 = vst [vmem:[#allocation137_spill] sm:$0xff] %v8112_v25  ;;  %11942 = vst [vmem:[#allocation138_spill] sm:$0xff] %v8115_v29  ;;  %v4473_v0 = vcombine.low %v618_v26, %v640_v54  ;;  %v4474_v34 = vcombine.high %v618_v26, %v640_v54  ;;  %v2297_v22 = vcombine.low %v614_v53, %v636_v39 }
 0x158   :  { %v2298_v5 = vcombine.high %v614_v53, %v636_v39  ;;  %958 = vbcast.lane.b32.xlu1 %v952_v55, 264  ;;  %954 = vbcast.lane.b32.xlu0 %v952_v55, 256  ;;  %11945 = vst [vmem:[#allocation141_spill] sm:$0xff] %v8127_v45  ;;  %v8138_v55 = vrot.slane %v4490_v16, %v7361_v51 }
 0x159   :  { %v8120_v41 = vrot.slane %v4473_v0, %v7310_v56  ;;  %v8123_v58 = vrot.slane %v4474_v34, %v7310_v56  ;;  %v2305_v54 = vrot.slane %v2297_v22, %v7310_v56  ;;  %v974_v22 = vrot.slane %v8060_v57, %v7264_v15 }
 0x15a   :  { %v8131_v39 = vrot.slane %v2298_v5, %v7310_v56  ;;  %v651_v63 = vpop.permute.xlu1 %650  ;;  %v647_v14 = vpop.permute.xlu0 %646  ;;  %11947 = vst [vmem:[#allocation143_spill] sm:$0xff] %v8138_v55  ;;  %v8145_v53 = vrot.slane %v2313_v20, %v7361_v51  ;;  %v985_v20 = vrot.slane %v8060_v57, %v7268_v17  ;;  %v11954_v57 = vcombine.high %v8081_v12, %v8089_v21 }
 0x15b   :  { %11943 = vst [vmem:[#allocation139_spill] sm:$0xff] %v8120_v41  ;;  %11944 = vst [vmem:[#allocation140_spill] sm:$0xff] %v8123_v58  ;;  %v4522_v33 = vcombine.high %v8112_v25, %v8120_v41  ;;  %v4538_v0 = vcombine.high %v8115_v29, %v8123_v58  ;;  %v2345_v24 = vcombine.low %v2289_v27, %v2305_v54 }
 0x15c   :  { %11946 = vst [vmem:[#allocation142_spill] sm:$0xff] %v8131_v39  ;;  %v2346_v26 = vcombine.high %v2289_v27, %v2305_v54  ;;  %v2362_v62 = vcombine.high %v8127_v45, %v8131_v39  ;;  %969 = vbcast.lane.b32.xlu1 %v963_v40, 264  ;;  %965 = vbcast.lane.b32.xlu0 %v963_v40, 256  ;;  %11948 = vst [vmem:[#allocation144_spill] sm:$0xff] %v8145_v53 }
 0x15d   :  { %v8148_v34 = vrot.slane %v4522_v33, %v7361_v51  ;;  %v8151_v16 = vrot.slane %v2345_v24, %v7361_v51  ;;  %v8154_v27 = vrot.slane %v2314_v50, %v7361_v51  ;;  %v8165_v33 = vrot.slane %v2330_v35, %v7361_v51  ;;  %v8184_v35 = vld [vmem:[%s11390_s0 + $0x58] sm:$0xff] }
 0x15e   :  { %v662_v5 = vpop.permute.xlu1 %661  ;;  %v8157_v54 = vrot.slane %v2346_v26, %v7361_v51  ;;  %v8160_v29 = vrot.slane %v2362_v62, %v7361_v51  ;;  %v658_v40 = vpop.permute.xlu0 %657  ;;  %v8179_v58 = vrot.slane %v11954_v57, %v7361_v51  ;;  %v8193_v12 = vrot.slane %v4538_v0, %v7361_v51 }
 0x15f   :  { %11949 = vst [vmem:[#allocation145_spill] sm:$0xff] %v8148_v34  ;;  %11950 = vst [vmem:[#allocation146_spill] sm:$0xff] %v8151_v16  ;;  %v996_v25 = vrot.slane %v8184_v35, %v7243_v4  ;;  %v1007_v24 = vrot.slane %v8184_v35, %v7240_v3 }
 0x160   :  { %11951 = vst [vmem:[#allocation147_spill] sm:$0xff] %v8157_v54  ;;  %11952 = vst [vmem:[#allocation148_spill] sm:$0xff] %v8160_v29  ;;  %980 = vbcast.lane.b32.xlu1 %v974_v22, 264  ;;  %976 = vbcast.lane.b32.xlu0 %v974_v22, 256 }
 0x161   :  { %11953 = vst [vmem:[#allocation149_spill] sm:$0xff] %v8165_v33  ;;  %11955 = vst [vmem:[#allocation150_spill] sm:$0xff] %v8179_v58 }
 0x162   :  { %v673_v50 = vpop.permute.xlu1 %672  ;;  %11956 = vst [vmem:[#allocation151_spill] sm:$0xff] %v8193_v12  ;;  %v669_v21 = vpop.permute.xlu0 %668 }
 0x163   :  { %v4561_v57 = vcombine.low %v651_v63, %v673_v50  ;;  %v4562_v22 = vcombine.high %v651_v63, %v673_v50  ;;  %v2385_v41 = vcombine.low %v647_v14, %v669_v21  ;;  %v2386_v29 = vcombine.high %v647_v14, %v669_v21 }
 0x164   :  { %991 = vbcast.lane.b32.xlu1 %v985_v20, 264  ;;  %987 = vbcast.lane.b32.xlu0 %v985_v20, 256 }
 0x165   :  { %v8202_v0 = vrot.slane %v4561_v57, %v7310_v56  ;;  %v8205_v63 = vrot.slane %v4562_v22, %v7310_v56  ;;  %v2393_v14 = vrot.slane %v2385_v41, %v7310_v56  ;;  %v8217_v57 = vrot.slane %v2386_v29, %v7310_v56 }
 0x166   :  { %v684_v62 = vpop.permute.xlu1 %683  ;;  %v680_v55 = vpop.permute.xlu0 %679  ;;  %v1018_v29 = vrot.slane %v8184_v35, %v7248_v7 }
 0x167   :  { %11957 = vst [vmem:[#allocation152_spill] sm:$0xff] %v8202_v0  ;;  %11958 = vst [vmem:[#allocation153_spill] sm:$0xff] %v8205_v63  ;;  %v4577_v50 = vcombine.low %v662_v5, %v684_v62  ;;  %v4578_v34 = vcombine.high %v662_v5, %v684_v62  ;;  %v2401_v33 = vcombine.low %v658_v40, %v680_v55 }
 0x168   :  { %v2402_v45 = vcombine.high %v658_v40, %v680_v55  ;;  %1002 = vbcast.lane.b32.xlu1 %v996_v25, 264  ;;  %998 = vbcast.lane.b32.xlu0 %v996_v25, 256  ;;  %11961 = vst [vmem:[#allocation156_spill] sm:$0xff] %v8217_v57 }
 0x169   :  { %v8210_v20 = vrot.slane %v4577_v50, %v7310_v56  ;;  %v8213_v21 = vrot.slane %v4578_v34, %v7310_v56  ;;  %v2409_v5 = vrot.slane %v2401_v33, %v7310_v56  ;;  %v1029_v33 = vrot.slane %v8184_v35, %v7252_v9 }
 0x16a   :  { %v8221_v55 = vrot.slane %v2402_v45, %v7310_v56  ;;  %v695_v40 = vpop.permute.xlu1 %694  ;;  %v691_v34 = vpop.permute.xlu0 %690 }
 0x16b   :  { %11959 = vst [vmem:[#allocation154_spill] sm:$0xff] %v8210_v20  ;;  %11960 = vst [vmem:[#allocation155_spill] sm:$0xff] %v8213_v21  ;;  %v4626_v62 = vcombine.high %v8202_v0, %v8210_v20  ;;  %v2450_v50 = vcombine.high %v2393_v14, %v2409_v5  ;;  %v1040_v0 = vrot.slane %v8184_v35, %v7256_v11 }
 0x16c   :  { %11962 = vst [vmem:[#allocation157_spill] sm:$0xff] %v8221_v55  ;;  %v2466_v25 = vcombine.high %v8217_v57, %v8221_v55  ;;  %1013 = vbcast.lane.b32.xlu1 %v1007_v24, 264  ;;  %1009 = vbcast.lane.b32.xlu0 %v1007_v24, 256  ;;  %v2449_v8 = vcombine.low %v2393_v14, %v2409_v5 }
 0x16e   :  { %v706_v41 = vpop.permute.xlu1 %705  ;;  %v702_v45 = vpop.permute.xlu0 %701 }
 0x170   :  { %1024 = vbcast.lane.b32.xlu1 %v1018_v29, 264  ;;  %1020 = vbcast.lane.b32.xlu0 %v1018_v29, 256 }
 0x172   :  { %v717_v26 = vpop.permute.xlu1 %716  ;;  %v713_v58 = vpop.permute.xlu0 %712 }
 0x173   :  { %v4593_v12 = vcombine.low %v695_v40, %v717_v26  ;;  %v4594_v22 = vcombine.high %v695_v40, %v717_v26  ;;  %v2417_v20 = vcombine.low %v691_v34, %v713_v58  ;;  %v2418_v57 = vcombine.high %v691_v34, %v713_v58 }
 0x174   :  { %1035 = vbcast.lane.b32.xlu1 %v1029_v33, 264  ;;  %1031 = vbcast.lane.b32.xlu0 %v1029_v33, 256  ;;  %v1051_v40 = vrot.slane %v8184_v35, %v7260_v13 }
 0x175   :  { %v8236_v24 = vrot.slane %v4593_v12, %v7310_v56  ;;  %v8239_v39 = vrot.slane %v4594_v22, %v7310_v56  ;;  %v2425_v12 = vrot.slane %v2417_v20, %v7310_v56  ;;  %v8251_v22 = vrot.slane %v2418_v57, %v7310_v56 }
 0x176   :  { %v728_v55 = vpop.permute.xlu1 %727  ;;  %v724_v59 = vpop.permute.xlu0 %723 }
 0x177   :  { %11963 = vst [vmem:[#allocation158_spill] sm:$0xff] %v8236_v24  ;;  %11964 = vst [vmem:[#allocation159_spill] sm:$0xff] %v8239_v39  ;;  %v4609_v60 = vcombine.low %v706_v41, %v728_v55  ;;  %v4610_v29 = vcombine.high %v706_v41, %v728_v55  ;;  %v2433_v1 = vcombine.low %v702_v45, %v724_v59 }
 0x178   :  { %v2434_v26 = vcombine.high %v702_v45, %v724_v59  ;;  %1046 = vbcast.lane.b32.xlu1 %v1040_v0, 264  ;;  %1042 = vbcast.lane.b32.xlu0 %v1040_v0, 256  ;;  %11967 = vst [vmem:[#allocation162_spill] sm:$0xff] %v8251_v22  ;;  %v8262_v0 = vrot.slane %v4626_v62, %v7361_v51 }
 0x179   :  { %v8244_v33 = vrot.slane %v4609_v60, %v7310_v56  ;;  %v8247_v58 = vrot.slane %v4610_v29, %v7310_v56  ;;  %v2441_v55 = vrot.slane %v2433_v1, %v7310_v56  ;;  %v1062_v1 = vrot.slane %v8184_v35, %v7264_v15 }
 0x17a   :  { %v8255_v59 = vrot.slane %v2434_v26, %v7310_v56  ;;  %v739_v34 = vpop.permute.xlu1 %738  ;;  %v735_v5 = vpop.permute.xlu0 %734  ;;  %11969 = vst [vmem:[#allocation164_spill] sm:$0xff] %v8262_v0  ;;  %v8269_v45 = vrot.slane %v2449_v8, %v7361_v51  ;;  %v1073_v8 = vrot.slane %v8184_v35, %v7268_v17  ;;  %v11977_v35 = vcombine.high %v8205_v63, %v8213_v21 }
 0x17b   :  { %11965 = vst [vmem:[#allocation160_spill] sm:$0xff] %v8244_v33  ;;  %11966 = vst [vmem:[#allocation161_spill] sm:$0xff] %v8247_v58  ;;  %v4658_v14 = vcombine.high %v8236_v24, %v8244_v33  ;;  %v4674_v60 = vcombine.high %v8239_v39, %v8247_v58  ;;  %v2481_v20 = vcombine.low %v2425_v12, %v2441_v55 }
 0x17c   :  { %11968 = vst [vmem:[#allocation163_spill] sm:$0xff] %v8255_v59  ;;  %v2482_v41 = vcombine.high %v2425_v12, %v2441_v55  ;;  %v2498_v57 = vcombine.high %v8251_v22, %v8255_v59  ;;  %1057 = vbcast.lane.b32.xlu1 %v1051_v40, 264  ;;  %1053 = vbcast.lane.b32.xlu0 %v1051_v40, 256  ;;  %11970 = vst [vmem:[#allocation165_spill] sm:$0xff] %v8269_v45 }
 0x17d   :  { %v8272_v29 = vrot.slane %v4658_v14, %v7361_v51  ;;  %v8275_v62 = vrot.slane %v2481_v20, %v7361_v51  ;;  %v8278_v12 = vrot.slane %v2450_v50, %v7361_v51  ;;  %v8289_v14 = vrot.slane %v2466_v25, %v7361_v51  ;;  %v8308_v25 = vld [vmem:[%s11390_s0 + $0x60] sm:$0xff] }
 0x17e   :  { %v750_v26 = vpop.permute.xlu1 %749  ;;  %v8281_v55 = vrot.slane %v2482_v41, %v7361_v51  ;;  %v8284_v39 = vrot.slane %v2498_v57, %v7361_v51  ;;  %v746_v40 = vpop.permute.xlu0 %745  ;;  %v8303_v58 = vrot.slane %v11977_v35, %v7361_v51  ;;  %v8317_v63 = vrot.slane %v4674_v60, %v7361_v51 }
 0x17f   :  { %11971 = vst [vmem:[#allocation166_spill] sm:$0xff] %v8272_v29  ;;  %11972 = vst [vmem:[#allocation167_spill] sm:$0xff] %v8275_v62  ;;  %v1084_v24 = vrot.slane %v8308_v25, %v7243_v4  ;;  %v1095_v50 = vrot.slane %v8308_v25, %v7240_v3 }
 0x180   :  { %11973 = vst [vmem:[#allocation168_spill] sm:$0xff] %v8278_v12  ;;  %11974 = vst [vmem:[#allocation169_spill] sm:$0xff] %v8281_v55  ;;  %1068 = vbcast.lane.b32.xlu1 %v1062_v1, 264  ;;  %1064 = vbcast.lane.b32.xlu0 %v1062_v1, 256 }
 0x181   :  { %11975 = vst [vmem:[#allocation170_spill] sm:$0xff] %v8284_v39  ;;  %11976 = vst [vmem:[#allocation171_spill] sm:$0xff] %v8289_v14 }
 0x182   :  { %11978 = vst [vmem:[#allocation172_spill] sm:$0xff] %v8303_v58  ;;  %v761_v41 = vpop.permute.xlu1 %760  ;;  %11979 = vst [vmem:[#allocation173_spill] sm:$0xff] %v8317_v63  ;;  %v757_v21 = vpop.permute.xlu0 %756 }
 0x183   :  { %v4697_v35 = vcombine.low %v739_v34, %v761_v41  ;;  %v4698_v1 = vcombine.high %v739_v34, %v761_v41  ;;  %v2521_v33 = vcombine.low %v735_v5, %v757_v21  ;;  %v2522_v39 = vcombine.high %v735_v5, %v757_v21 }
 0x184   :  { %1079 = vbcast.lane.b32.xlu1 %v1073_v8, 264  ;;  %1075 = vbcast.lane.b32.xlu0 %v1073_v8, 256 }
 0x185   :  { %v8326_v60 = vrot.slane %v4697_v35, %v7310_v56  ;;  %v8329_v34 = vrot.slane %v4698_v1, %v7310_v56  ;;  %v2529_v5 = vrot.slane %v2521_v33, %v7310_v56  ;;  %v8341_v35 = vrot.slane %v2522_v39, %v7310_v56 }
 0x186   :  { %v772_v57 = vpop.permute.xlu1 %771  ;;  %v768_v0 = vpop.permute.xlu0 %767  ;;  %v1106_v39 = vrot.slane %v8308_v25, %v7248_v7 }
 0x187   :  { %11980 = vst [vmem:[#allocation174_spill] sm:$0xff] %v8326_v60  ;;  %11981 = vst [vmem:[#allocation175_spill] sm:$0xff] %v8329_v34  ;;  %v4713_v41 = vcombine.low %v750_v26, %v772_v57  ;;  %v4714_v29 = vcombine.high %v750_v26, %v772_v57  ;;  %v2537_v14 = vcombine.low %v746_v40, %v768_v0 }
 0x188   :  { %v2538_v22 = vcombine.high %v746_v40, %v768_v0  ;;  %1090 = vbcast.lane.b32.xlu1 %v1084_v24, 264  ;;  %1086 = vbcast.lane.b32.xlu0 %v1084_v24, 256  ;;  %11984 = vst [vmem:[#allocation178_spill] sm:$0xff] %v8341_v35 }
 0x189   :  { %v8334_v8 = vrot.slane %v4713_v41, %v7310_v56  ;;  %v8337_v21 = vrot.slane %v4714_v29, %v7310_v56  ;;  %v2545_v26 = vrot.slane %v2537_v14, %v7310_v56  ;;  %v1117_v14 = vrot.slane %v8308_v25, %v7252_v9 }
 0x18a   :  { %v8345_v0 = vrot.slane %v2538_v22, %v7310_v56  ;;  %v783_v40 = vpop.permute.xlu1 %782  ;;  %v779_v29 = vpop.permute.xlu0 %778 }
 0x18b   :  { %11982 = vst [vmem:[#allocation176_spill] sm:$0xff] %v8334_v8  ;;  %11983 = vst [vmem:[#allocation177_spill] sm:$0xff] %v8337_v21  ;;  %v4762_v57 = vcombine.high %v8326_v60, %v8334_v8  ;;  %v4778_v1 = vcombine.high %v8329_v34, %v8337_v21  ;;  %v2586_v41 = vcombine.high %v2529_v5, %v2545_v26 }
 0x18c   :  { %11985 = vst [vmem:[#allocation179_spill] sm:$0xff] %v8345_v0  ;;  %v2602_v24 = vcombine.high %v8341_v35, %v8345_v0  ;;  %1101 = vbcast.lane.b32.xlu1 %v1095_v50, 264  ;;  %1097 = vbcast.lane.b32.xlu0 %v1095_v50, 256  ;;  %v1128_v21 = vrot.slane %v8308_v25, %v7256_v11 }
 0x18d   :  { %v2585_v2 = vcombine.low %v2529_v5, %v2545_v26 }
 0x18e   :  { %v794_v33 = vpop.permute.xlu1 %793  ;;  %v790_v22 = vpop.permute.xlu0 %789 }
 0x190   :  { %1112 = vbcast.lane.b32.xlu1 %v1106_v39, 264  ;;  %1108 = vbcast.lane.b32.xlu0 %v1106_v39, 256 }
 0x192   :  { %v805_v20 = vpop.permute.xlu1 %804  ;;  %v801_v34 = vpop.permute.xlu0 %800 }
 0x193   :  { %v4729_v63 = vcombine.low %v783_v40, %v805_v20  ;;  %v4730_v58 = vcombine.high %v783_v40, %v805_v20  ;;  %v2553_v60 = vcombine.low %v779_v29, %v801_v34  ;;  %v2554_v8 = vcombine.high %v779_v29, %v801_v34 }
 0x194   :  { %1123 = vbcast.lane.b32.xlu1 %v1117_v14, 264  ;;  %1119 = vbcast.lane.b32.xlu0 %v1117_v14, 256  ;;  %v1139_v40 = vrot.slane %v8308_v25, %v7260_v13 }
 0x195   :  { %v8360_v50 = vrot.slane %v4729_v63, %v7310_v56  ;;  %v8363_v35 = vrot.slane %v4730_v58, %v7310_v56  ;;  %v2561_v63 = vrot.slane %v2553_v60, %v7310_v56  ;;  %v8375_v58 = vrot.slane %v2554_v8, %v7310_v56 }
 0x196   :  { %v816_v59 = vpop.permute.xlu1 %815  ;;  %v812_v55 = vpop.permute.xlu0 %811 }
 0x197   :  { %11986 = vst [vmem:[#allocation180_spill] sm:$0xff] %v8360_v50  ;;  %11987 = vst [vmem:[#allocation181_spill] sm:$0xff] %v8363_v35  ;;  %v4745_v0 = vcombine.low %v794_v33, %v816_v59  ;;  %v4746_v39 = vcombine.high %v794_v33, %v816_v59  ;;  %v2569_v12 = vcombine.low %v790_v22, %v812_v55 }
 0x198   :  { %v2570_v20 = vcombine.high %v790_v22, %v812_v55  ;;  %1134 = vbcast.lane.b32.xlu1 %v1128_v21, 264  ;;  %1130 = vbcast.lane.b32.xlu0 %v1128_v21, 256  ;;  %11990 = vst [vmem:[#allocation184_spill] sm:$0xff] %v8375_v58  ;;  %v8386_v21 = vrot.slane %v4762_v57, %v7361_v51 }
 0x199   :  { %v8368_v14 = vrot.slane %v4745_v0, %v7310_v56  ;;  %v8371_v34 = vrot.slane %v4746_v39, %v7310_v56  ;;  %v2577_v59 = vrot.slane %v2569_v12, %v7310_v56  ;;  %v1150_v12 = vrot.slane %v8308_v25, %v7264_v15 }
 0x19a   :  { %v8379_v55 = vrot.slane %v2570_v20, %v7310_v56  ;;  %v827_v29 = vpop.permute.xlu1 %826  ;;  %v823_v0 = vpop.permute.xlu0 %822  ;;  %11992 = vst [vmem:[#allocation186_spill] sm:$0xff] %v8386_v21  ;;  %v8393_v22 = vrot.slane %v2585_v2, %v7361_v51  ;;  %v8396_v39 = vrot.slane %v2586_v41, %v7361_v51  ;;  %v8402_v57 = vrot.slane %v4778_v1, %v7361_v51  ;;  %v8434_v1 = vld [vmem:[%s11390_s0 + $0x68] sm:$0xff] }
 0x19b   :  { %11988 = vst [vmem:[#allocation182_spill] sm:$0xff] %v8368_v14  ;;  %11989 = vst [vmem:[#allocation183_spill] sm:$0xff] %v8371_v34  ;;  %v4794_v5 = vcombine.high %v8360_v50, %v8368_v14  ;;  %v4810_v26 = vcombine.high %v8363_v35, %v8371_v34  ;;  %v2617_v60 = vcombine.low %v2561_v63, %v2577_v59 }
 0x19c   :  { %11991 = vst [vmem:[#allocation185_spill] sm:$0xff] %v8379_v55  ;;  %v2618_v33 = vcombine.high %v2561_v63, %v2577_v59  ;;  %v2634_v8 = vcombine.high %v8375_v58, %v8379_v55  ;;  %1145 = vbcast.lane.b32.xlu1 %v1139_v40, 264  ;;  %1141 = vbcast.lane.b32.xlu0 %v1139_v40, 256  ;;  %11993 = vst [vmem:[#allocation187_spill] sm:$0xff] %v8393_v22 }
 0x19d   :  { %11994 = vst [vmem:[#allocation188_spill] sm:$0xff] %v8396_v39  ;;  %v8399_v20 = vrot.slane %v4794_v5, %v7361_v51  ;;  %11996 = vst [vmem:[#allocation190_spill] sm:$0xff] %v8402_v57  ;;  %v8405_v59 = vrot.slane %v2617_v60, %v7361_v51  ;;  %v8414_v2 = vrot.slane %v4810_v26, %v7361_v51 }
 0x19e   :  { %v838_v63 = vpop.permute.xlu1 %837  ;;  %v8408_v35 = vrot.slane %v2618_v33, %v7361_v51  ;;  %v8411_v40 = vrot.slane %v2634_v8, %v7361_v51  ;;  %v834_v41 = vpop.permute.xlu0 %833  ;;  %v8417_v5 = vrot.slane %v2602_v24, %v7361_v51  ;;  %v1161_v33 = vrot.slane %v8308_v25, %v7268_v17 }
 0x19f   :  { %11995 = vst [vmem:[#allocation189_spill] sm:$0xff] %v8399_v20  ;;  %11997 = vst [vmem:[#allocation191_spill] sm:$0xff] %v8405_v59  ;;  %v1172_v21 = vrot.slane %v8434_v1, %v7243_v4 }
 0x1a0   :  { %11998 = vst [vmem:[#allocation192_spill] sm:$0xff] %v8408_v35  ;;  %11999 = vst [vmem:[#allocation193_spill] sm:$0xff] %v8411_v40  ;;  %1156 = vbcast.lane.b32.xlu1 %v1150_v12, 264  ;;  %1152 = vbcast.lane.b32.xlu0 %v1150_v12, 256 }
 0x1a1   :  { %12000 = vst [vmem:[#allocation194_spill] sm:$0xff] %v8414_v2  ;;  %12001 = vst [vmem:[#allocation195_spill] sm:$0xff] %v8417_v5 }
 0x1a2   :  { %v849_v34 = vpop.permute.xlu1 %848  ;;  %v845_v20 = vpop.permute.xlu0 %844 }
 0x1a3   :  { %v4833_v24 = vcombine.low %v827_v29, %v849_v34  ;;  %v4834_v12 = vcombine.high %v827_v29, %v849_v34  ;;  %v2657_v50 = vcombine.low %v823_v0, %v845_v20  ;;  %v2658_v60 = vcombine.high %v823_v0, %v845_v20 }
 0x1a4   :  { %1167 = vbcast.lane.b32.xlu1 %v1161_v33, 264  ;;  %1163 = vbcast.lane.b32.xlu0 %v1161_v33, 256  ;;  %v1183_v29 = vrot.slane %v8434_v1, %v7240_v3 }
 0x1a5   :  { %v8447_v25 = vrot.slane %v4833_v24, %v7310_v56  ;;  %v8450_v40 = vrot.slane %v4834_v12, %v7310_v56  ;;  %v2665_v20 = vrot.slane %v2657_v50, %v7310_v56  ;;  %v8462_v24 = vrot.slane %v2658_v60, %v7310_v56 }
 0x1a6   :  { %v860_v14 = vpop.permute.xlu1 %859  ;;  %v856_v26 = vpop.permute.xlu0 %855 }
 0x1a7   :  { %12002 = vst [vmem:[#allocation196_spill] sm:$0xff] %v8447_v25  ;;  %12003 = vst [vmem:[#allocation197_spill] sm:$0xff] %v8450_v40  ;;  %v4849_v8 = vcombine.low %v838_v63, %v860_v14  ;;  %v4850_v5 = vcombine.high %v838_v63, %v860_v14  ;;  %v2673_v2 = vcombine.low %v834_v41, %v856_v26 }
 0x1a8   :  { %v2674_v34 = vcombine.high %v834_v41, %v856_v26  ;;  %1178 = vbcast.lane.b32.xlu1 %v1172_v21, 264  ;;  %1174 = vbcast.lane.b32.xlu0 %v1172_v21, 256  ;;  %12006 = vst [vmem:[#allocation200_spill] sm:$0xff] %v8462_v24  ;;  %v1194_v21 = vrot.slane %v8434_v1, %v7248_v7 }
 0x1a9   :  { %v8455_v33 = vrot.slane %v4849_v8, %v7310_v56  ;;  %v8458_v0 = vrot.slane %v4850_v5, %v7310_v56  ;;  %v2681_v14 = vrot.slane %v2673_v2, %v7310_v56 }
 0x1aa   :  { %v8466_v63 = vrot.slane %v2674_v34, %v7310_v56  ;;  %v871_v41 = vpop.permute.xlu1 %870  ;;  %v867_v5 = vpop.permute.xlu0 %866  ;;  %v1205_v34 = vrot.slane %v8434_v1, %v7252_v9 }
 0x1ab   :  { %12004 = vst [vmem:[#allocation198_spill] sm:$0xff] %v8455_v33  ;;  %12005 = vst [vmem:[#allocation199_spill] sm:$0xff] %v8458_v0  ;;  %v4898_v26 = vcombine.high %v8447_v25, %v8455_v33  ;;  %v4914_v8 = vcombine.high %v8450_v40, %v8458_v0  ;;  %v2722_v12 = vcombine.high %v2665_v20, %v2681_v14 }
 0x1ac   :  { %12007 = vst [vmem:[#allocation201_spill] sm:$0xff] %v8466_v63  ;;  %v2738_v50 = vcombine.high %v8462_v24, %v8466_v63  ;;  %1189 = vbcast.lane.b32.xlu1 %v1183_v29, 264  ;;  %1185 = vbcast.lane.b32.xlu0 %v1183_v29, 256  ;;  %v1216_v33 = vrot.slane %v8434_v1, %v7256_v11 }
 0x1ad   :  { %v2721_v35 = vcombine.low %v2665_v20, %v2681_v14 }
 0x1ae   :  { %v882_v2 = vpop.permute.xlu1 %881  ;;  %v878_v60 = vpop.permute.xlu0 %877 }
 0x1b0   :  { %1200 = vbcast.lane.b32.xlu1 %v1194_v21, 264  ;;  %1196 = vbcast.lane.b32.xlu0 %v1194_v21, 256 }
 0x1b2   :  { %v893_v57 = vpop.permute.xlu1 %892  ;;  %v889_v0 = vpop.permute.xlu0 %888 }
 0x1b3   :  { %v4865_v25 = vcombine.low %v871_v41, %v893_v57  ;;  %v4866_v40 = vcombine.high %v871_v41, %v893_v57  ;;  %v2689_v24 = vcombine.low %v867_v5, %v889_v0  ;;  %v2690_v63 = vcombine.high %v867_v5, %v889_v0 }
 0x1b4   :  { %1211 = vbcast.lane.b32.xlu1 %v1205_v34, 264  ;;  %1207 = vbcast.lane.b32.xlu0 %v1205_v34, 256  ;;  %v1227_v41 = vrot.slane %v8434_v1, %v7260_v13 }
 0x1b5   :  { %v8481_v29 = vrot.slane %v4865_v25, %v7310_v56  ;;  %v8484_v55 = vrot.slane %v4866_v40, %v7310_v56  ;;  %v2697_v40 = vrot.slane %v2689_v24, %v7310_v56  ;;  %v8496_v25 = vrot.slane %v2690_v63, %v7310_v56 }
 0x1b6   :  { %v904_v58 = vpop.permute.xlu1 %903  ;;  %v900_v38 = vpop.permute.xlu0 %899 }
 0x1b7   :  { %12008 = vst [vmem:[#allocation202_spill] sm:$0xff] %v8481_v29  ;;  %12009 = vst [vmem:[#allocation203_spill] sm:$0xff] %v8484_v55  ;;  %v4881_v10 = vcombine.low %v882_v2, %v904_v58  ;;  %v4882_v21 = vcombine.high %v882_v2, %v904_v58  ;;  %v2705_v46 = vcombine.low %v878_v60, %v900_v38 }
 0x1b8   :  { %v2706_v57 = vcombine.high %v878_v60, %v900_v38  ;;  %1222 = vbcast.lane.b32.xlu1 %v1216_v33, 264  ;;  %1218 = vbcast.lane.b32.xlu0 %v1216_v33, 256  ;;  %12012 = vst [vmem:[#allocation206_spill] sm:$0xff] %v8496_v25  ;;  %v8507_v33 = vrot.slane %v4898_v26, %v7361_v51 }
 0x1b9   :  { %v8489_v34 = vrot.slane %v4881_v10, %v7310_v56  ;;  %v8492_v0 = vrot.slane %v4882_v21, %v7310_v56  ;;  %v2713_v58 = vrot.slane %v2705_v46, %v7310_v56  ;;  %v1238_v46 = vrot.slane %v8434_v1, %v7264_v15 }
 0x1ba   :  { %v8500_v38 = vrot.slane %v2706_v57, %v7310_v56  ;;  %v915_v5 = vpop.permute.xlu1 %914  ;;  %v911_v14 = vpop.permute.xlu0 %910  ;;  %12014 = vst [vmem:[#allocation208_spill] sm:$0xff] %v8507_v33  ;;  %v8514_v60 = vrot.slane %v2721_v35, %v7361_v51  ;;  %v8517_v21 = vrot.slane %v2722_v12, %v7361_v51  ;;  %v8523_v26 = vrot.slane %v4914_v8, %v7361_v51  ;;  %v8555_v8 = vld [vmem:[%s11390_s0 + $0x70] sm:$0xff] }
 0x1bb   :  { %12010 = vst [vmem:[#allocation204_spill] sm:$0xff] %v8489_v34  ;;  %12011 = vst [vmem:[#allocation205_spill] sm:$0xff] %v8492_v0  ;;  %v4930_v20 = vcombine.high %v8481_v29, %v8489_v34  ;;  %v4946_v10 = vcombine.high %v8484_v55, %v8492_v0  ;;  %v2753_v24 = vcombine.low %v2697_v40, %v2713_v58 }
 0x1bc   :  { %12013 = vst [vmem:[#allocation207_spill] sm:$0xff] %v8500_v38  ;;  %v2754_v2 = vcombine.high %v2697_v40, %v2713_v58  ;;  %v2770_v63 = vcombine.high %v8496_v25, %v8500_v38  ;;  %1233 = vbcast.lane.b32.xlu1 %v1227_v41, 264  ;;  %1229 = vbcast.lane.b32.xlu0 %v1227_v41, 256  ;;  %12015 = vst [vmem:[#allocation209_spill] sm:$0xff] %v8514_v60 }
 0x1bd   :  { %12016 = vst [vmem:[#allocation210_spill] sm:$0xff] %v8517_v21  ;;  %v8520_v57 = vrot.slane %v4930_v20, %v7361_v51  ;;  %12018 = vst [vmem:[#allocation212_spill] sm:$0xff] %v8523_v26  ;;  %v8526_v58 = vrot.slane %v2753_v24, %v7361_v51  ;;  %v8535_v35 = vrot.slane %v4946_v10, %v7361_v51 }
 0x1be   :  { %v926_v40 = vpop.permute.xlu1 %925  ;;  %v8529_v55 = vrot.slane %v2754_v2, %v7361_v51  ;;  %v8532_v41 = vrot.slane %v2770_v63, %v7361_v51  ;;  %v922_v12 = vpop.permute.xlu0 %921  ;;  %v8538_v20 = vrot.slane %v2738_v50, %v7361_v51  ;;  %v1249_v2 = vrot.slane %v8434_v1, %v7268_v17 }
 0x1bf   :  { %12017 = vst [vmem:[#allocation211_spill] sm:$0xff] %v8520_v57  ;;  %12019 = vst [vmem:[#allocation213_spill] sm:$0xff] %v8526_v58  ;;  %v1260_v33 = vrot.slane %v8555_v8, %v7243_v4 }
 0x1c0   :  { %12020 = vst [vmem:[#allocation214_spill] sm:$0xff] %v8529_v55  ;;  %12021 = vst [vmem:[#allocation215_spill] sm:$0xff] %v8532_v41  ;;  %1244 = vbcast.lane.b32.xlu1 %v1238_v46, 264  ;;  %1240 = vbcast.lane.b32.xlu0 %v1238_v46, 256 }
 0x1c1   :  { %12022 = vst [vmem:[#allocation216_spill] sm:$0xff] %v8535_v35  ;;  %12023 = vst [vmem:[#allocation217_spill] sm:$0xff] %v8538_v20 }
 0x1c2   :  { %v937_v0 = vpop.permute.xlu1 %936  ;;  %v933_v57 = vpop.permute.xlu0 %932 }
 0x1c3   :  { %v4969_v50 = vcombine.low %v915_v5, %v937_v0  ;;  %v4970_v46 = vcombine.high %v915_v5, %v937_v0  ;;  %v2793_v29 = vcombine.low %v911_v14, %v933_v57  ;;  %v2794_v24 = vcombine.high %v911_v14, %v933_v57 }
 0x1c4   :  { %1255 = vbcast.lane.b32.xlu1 %v1249_v2, 264  ;;  %1251 = vbcast.lane.b32.xlu0 %v1249_v2, 256  ;;  %v1271_v5 = vrot.slane %v8555_v8, %v7240_v3 }
 0x1c5   :  { %v8568_v1 = vrot.slane %v4969_v50, %v7310_v56  ;;  %v8571_v41 = vrot.slane %v4970_v46, %v7310_v56  ;;  %v2801_v57 = vrot.slane %v2793_v29, %v7310_v56  ;;  %v8583_v50 = vrot.slane %v2794_v24, %v7310_v56 }
 0x1c6   :  { %v948_v34 = vpop.permute.xlu1 %947  ;;  %v944_v10 = vpop.permute.xlu0 %943 }
 0x1c7   :  { %12024 = vst [vmem:[#allocation218_spill] sm:$0xff] %v8568_v1  ;;  %12025 = vst [vmem:[#allocation219_spill] sm:$0xff] %v8571_v41  ;;  %v4985_v63 = vcombine.low %v926_v40, %v948_v34  ;;  %v4986_v20 = vcombine.high %v926_v40, %v948_v34  ;;  %v2809_v35 = vcombine.low %v922_v12, %v944_v10 }
 0x1c8   :  { %v2810_v0 = vcombine.high %v922_v12, %v944_v10  ;;  %1266 = vbcast.lane.b32.xlu1 %v1260_v33, 264  ;;  %1262 = vbcast.lane.b32.xlu0 %v1260_v33, 256  ;;  %12028 = vst [vmem:[#allocation222_spill] sm:$0xff] %v8583_v50  ;;  %v1282_v33 = vrot.slane %v8555_v8, %v7248_v7 }
 0x1c9   :  { %v8576_v2 = vrot.slane %v4985_v63, %v7310_v56  ;;  %v8579_v14 = vrot.slane %v4986_v20, %v7310_v56  ;;  %v2817_v34 = vrot.slane %v2809_v35, %v7310_v56 }
 0x1ca   :  { %v8587_v40 = vrot.slane %v2810_v0, %v7310_v56  ;;  %v959_v12 = vpop.permute.xlu1 %958  ;;  %v955_v20 = vpop.permute.xlu0 %954  ;;  %v1293_v0 = vrot.slane %v8555_v8, %v7252_v9 }
 0x1cb   :  { %12026 = vst [vmem:[#allocation220_spill] sm:$0xff] %v8576_v2  ;;  %12027 = vst [vmem:[#allocation221_spill] sm:$0xff] %v8579_v14  ;;  %v5034_v10 = vcombine.high %v8568_v1, %v8576_v2  ;;  %v5050_v63 = vcombine.high %v8571_v41, %v8579_v14  ;;  %v2858_v46 = vcombine.high %v2801_v57, %v2817_v34 }
 0x1cc   :  { %12029 = vst [vmem:[#allocation223_spill] sm:$0xff] %v8587_v40  ;;  %v2874_v29 = vcombine.high %v8583_v50, %v8587_v40  ;;  %1277 = vbcast.lane.b32.xlu1 %v1271_v5, 264  ;;  %1273 = vbcast.lane.b32.xlu0 %v1271_v5, 256  ;;  %v1304_v2 = vrot.slane %v8555_v8, %v7256_v11 }
 0x1cd   :  { %v2857_v54 = vcombine.low %v2801_v57, %v2817_v34 }
 0x1ce   :  { %v970_v35 = vpop.permute.xlu1 %969  ;;  %v966_v24 = vpop.permute.xlu0 %965 }
 0x1d0   :  { %1288 = vbcast.lane.b32.xlu1 %v1282_v33, 264  ;;  %1284 = vbcast.lane.b32.xlu0 %v1282_v33, 256 }
 0x1d2   :  { %v981_v26 = vpop.permute.xlu1 %980  ;;  %v977_v14 = vpop.permute.xlu0 %976 }
 0x1d3   :  { %v5001_v1 = vcombine.low %v959_v12, %v981_v26  ;;  %v5002_v41 = vcombine.high %v959_v12, %v981_v26  ;;  %v2825_v25 = vcombine.low %v955_v20, %v977_v14  ;;  %v2826_v38 = vcombine.high %v955_v20, %v977_v14 }
 0x1d4   :  { %1299 = vbcast.lane.b32.xlu1 %v1293_v0, 264  ;;  %1295 = vbcast.lane.b32.xlu0 %v1293_v0, 256  ;;  %v1315_v12 = vrot.slane %v8555_v8, %v7260_v13 }
 0x1d5   :  { %v8602_v5 = vrot.slane %v5001_v1, %v7310_v56  ;;  %v8605_v40 = vrot.slane %v5002_v41, %v7310_v56  ;;  %v2833_v41 = vrot.slane %v2825_v25, %v7310_v56  ;;  %v8617_v1 = vrot.slane %v2826_v38, %v7310_v56 }
 0x1d6   :  { %v992_v50 = vpop.permute.xlu1 %991  ;;  %v988_v21 = vpop.permute.xlu0 %987 }
 0x1d7   :  { %12030 = vst [vmem:[#allocation224_spill] sm:$0xff] %v8602_v5  ;;  %12031 = vst [vmem:[#allocation225_spill] sm:$0xff] %v8605_v40  ;;  %v5017_v55 = vcombine.low %v970_v35, %v992_v50  ;;  %v5018_v33 = vcombine.high %v970_v35, %v992_v50  ;;  %v2841_v39 = vcombine.low %v966_v24, %v988_v21 }
 0x1d8   :  { %v2842_v26 = vcombine.high %v966_v24, %v988_v21  ;;  %1310 = vbcast.lane.b32.xlu1 %v1304_v2, 264  ;;  %1306 = vbcast.lane.b32.xlu0 %v1304_v2, 256  ;;  %12034 = vst [vmem:[#allocation228_spill] sm:$0xff] %v8617_v1  ;;  %v8628_v2 = vrot.slane %v5034_v10, %v7361_v51 }
 0x1d9   :  { %v8610_v0 = vrot.slane %v5017_v55, %v7310_v56  ;;  %v8613_v14 = vrot.slane %v5018_v33, %v7310_v56  ;;  %v2849_v50 = vrot.slane %v2841_v39, %v7310_v56  ;;  %v1326_v39 = vrot.slane %v8555_v8, %v7264_v15 }
 0x1da   :  { %v8621_v21 = vrot.slane %v2842_v26, %v7310_v56  ;;  %v1003_v20 = vpop.permute.xlu1 %1002  ;;  %v999_v34 = vpop.permute.xlu0 %998  ;;  %12036 = vst [vmem:[#allocation230_spill] sm:$0xff] %v8628_v2  ;;  %v8635_v24 = vrot.slane %v2857_v54, %v7361_v51  ;;  %v8638_v33 = vrot.slane %v2858_v46, %v7361_v51  ;;  %v8644_v10 = vrot.slane %v5050_v63, %v7361_v51  ;;  %v8676_v63 = vld [vmem:[%s11390_s0 + $0x78] sm:$0xff]  ;;  %s7206_s0 = smov 8  }
 0x1db   :  { %12032 = vst [vmem:[#allocation226_spill] sm:$0xff] %v8610_v0  ;;  %12033 = vst [vmem:[#allocation227_spill] sm:$0xff] %v8613_v14  ;;  %v5066_v57 = vcombine.high %v8602_v5, %v8610_v0  ;;  %v5082_v55 = vcombine.high %v8605_v40, %v8613_v14  ;;  %v2889_v25 = vcombine.low %v2833_v41, %v2849_v50 }
 0x1dc   :  { %12035 = vst [vmem:[#allocation229_spill] sm:$0xff] %v8621_v21  ;;  %v2890_v35 = vcombine.high %v2833_v41, %v2849_v50  ;;  %v2906_v38 = vcombine.high %v8617_v1, %v8621_v21  ;;  %1321 = vbcast.lane.b32.xlu1 %v1315_v12, 264  ;;  %1317 = vbcast.lane.b32.xlu0 %v1315_v12, 256  ;;  %12037 = vst [vmem:[#allocation231_spill] sm:$0xff] %v8635_v24 }
 0x1dd   :  { %v8641_v26 = vrot.slane %v5066_v57, %v7361_v51  ;;  %12039 = vst [vmem:[#allocation233_spill] sm:$0xff] %v8644_v10  ;;  %v8647_v50 = vrot.slane %v2889_v25, %v7361_v51  ;;  %v8656_v54 = vrot.slane %v5082_v55, %v7361_v51  ;;  %v8659_v57 = vrot.slane %v2874_v29, %v7361_v51 }
 0x1de   :  { %v1014_v41 = vpop.permute.xlu1 %1013  ;;  %v8650_v40 = vrot.slane %v2890_v35, %v7361_v51  ;;  %v8653_v12 = vrot.slane %v2906_v38, %v7361_v51  ;;  %v1010_v46 = vpop.permute.xlu0 %1009  ;;  %v1337_v35 = vrot.slane %v8555_v8, %v7268_v17  ;;  %v1348_v2 = vrot.slane %v8676_v63, %v7243_v4 }
 0x1df   :  { %12038 = vst [vmem:[#allocation232_spill] sm:$0xff] %v8641_v26  ;;  %12040 = vst [vmem:[#allocation234_spill] sm:$0xff] %v8647_v50 }
 0x1e0   :  { %12041 = vst [vmem:[#allocation235_spill] sm:$0xff] %v8653_v12  ;;  %12042 = vst [vmem:[#allocation236_spill] sm:$0xff] %v8656_v54  ;;  %1332 = vbcast.lane.b32.xlu1 %v1326_v39, 264  ;;  %1328 = vbcast.lane.b32.xlu0 %v1326_v39, 256 }
 0x1e1   :  { %12043 = vst [vmem:[#allocation237_spill] sm:$0xff] %v8659_v57 }
 0x1e2   :  { %v1025_v14 = vpop.permute.xlu1 %1024  ;;  %v1021_v26 = vpop.permute.xlu0 %1020 }
 0x1e3   :  { %v5105_v29 = vcombine.low %v1003_v20, %v1025_v14  ;;  %v5106_v39 = vcombine.high %v1003_v20, %v1025_v14  ;;  %v2929_v5 = vcombine.low %v999_v34, %v1021_v26  ;;  %v2930_v25 = vcombine.high %v999_v34, %v1021_v26 }
 0x1e4   :  { %1343 = vbcast.lane.b32.xlu1 %v1337_v35, 264  ;;  %1339 = vbcast.lane.b32.xlu0 %v1337_v35, 256  ;;  %v1359_v20 = vrot.slane %v8676_v63, %v7240_v3 }
 0x1e5   :  { %v8689_v8 = vrot.slane %v5105_v29, %v7310_v56  ;;  %v8692_v12 = vrot.slane %v5106_v39, %v7310_v56  ;;  %v2937_v26 = vrot.slane %v2929_v5, %v7310_v56  ;;  %v8704_v35 = vrot.slane %v2930_v25, %v7310_v56 }
 0x1e6   :  { %v1036_v0 = vpop.permute.xlu1 %1035  ;;  %v1032_v55 = vpop.permute.xlu0 %1031  ;;  %v1381_v29 = vrot.slane %v8676_v63, %v7252_v9 }
 0x1e7   :  { %12044 = vst [vmem:[#allocation238_spill] sm:$0xff] %v8689_v8  ;;  %12045 = vst [vmem:[#allocation239_spill] sm:$0xff] %v8692_v12  ;;  %v5121_v38 = vcombine.low %v1014_v41, %v1036_v0  ;;  %v5122_v57 = vcombine.high %v1014_v41, %v1036_v0  ;;  %v2945_v54 = vcombine.low %v1010_v46, %v1032_v55 }
 0x1e8   :  { %v2946_v14 = vcombine.high %v1010_v46, %v1032_v55  ;;  %1354 = vbcast.lane.b32.xlu1 %v1348_v2, 264  ;;  %1350 = vbcast.lane.b32.xlu0 %v1348_v2, 256  ;;  %12048 = vst [vmem:[#allocation242_spill] sm:$0xff] %v8704_v35  ;;  %v1370_v2 = vrot.slane %v8676_v63, %v7248_v7 }
 0x1e9   :  { %v8697_v4 = vrot.slane %v5121_v38, %v7310_v56  ;;  %v8700_v34 = vrot.slane %v5122_v57, %v7310_v56  ;;  %v2953_v0 = vrot.slane %v2945_v54, %v7310_v56 }
 0x1ea   :  { %v8708_v41 = vrot.slane %v2946_v14, %v7310_v56  ;;  %v1047_v46 = vpop.permute.xlu1 %1046  ;;  %v1043_v57 = vpop.permute.xlu0 %1042 }
 0x1eb   :  { %12046 = vst [vmem:[#allocation240_spill] sm:$0xff] %v8697_v4  ;;  %12047 = vst [vmem:[#allocation241_spill] sm:$0xff] %v8700_v34  ;;  %v5170_v3 = vcombine.high %v8689_v8, %v8697_v4  ;;  %v2994_v55 = vcombine.high %v2937_v26, %v2953_v0  ;;  %v1392_v8 = vrot.slane %v8676_v63, %v7256_v11 }
 0x1ec   :  { %12049 = vst [vmem:[#allocation243_spill] sm:$0xff] %v8708_v41  ;;  %v3010_v5 = vcombine.high %v8704_v35, %v8708_v41  ;;  %1365 = vbcast.lane.b32.xlu1 %v1359_v20, 264  ;;  %1361 = vbcast.lane.b32.xlu0 %v1359_v20, 256  ;;  %v2993_v11 = vcombine.low %v2937_v26, %v2953_v0 }
 0x1ee   :  { %v1058_v54 = vpop.permute.xlu1 %1057  ;;  %v1054_v25 = vpop.permute.xlu0 %1053 }
 0x1f0   :  { %1376 = vbcast.lane.b32.xlu1 %v1370_v2, 264  ;;  %1372 = vbcast.lane.b32.xlu0 %v1370_v2, 256 }
 0x1f2   :  { %v1069_v39 = vpop.permute.xlu1 %1068  ;;  %v1065_v10 = vpop.permute.xlu0 %1064 }
 0x1f3   :  { %v5137_v14 = vcombine.low %v1047_v46, %v1069_v39  ;;  %v5138_v38 = vcombine.high %v1047_v46, %v1069_v39  ;;  %v2961_v4 = vcombine.low %v1043_v57, %v1065_v10  ;;  %v2962_v35 = vcombine.high %v1043_v57, %v1065_v10 }
 0x1f4   :  { %1387 = vbcast.lane.b32.xlu1 %v1381_v29, 264  ;;  %1383 = vbcast.lane.b32.xlu0 %v1381_v29, 256  ;;  %v1403_v39 = vrot.slane %v8676_v63, %v7260_v13 }
 0x1f5   :  { %v8723_v20 = vrot.slane %v5137_v14, %v7310_v56  ;;  %v8726_v41 = vrot.slane %v5138_v38, %v7310_v56  ;;  %v2969_v38 = vrot.slane %v2961_v4, %v7310_v56  ;;  %v8738_v57 = vrot.slane %v2962_v35, %v7310_v56 }
 0x1f6   :  { %v1080_v7 = vpop.permute.xlu1 %1079  ;;  %v1076_v1 = vpop.permute.xlu0 %1075 }
 0x1f7   :  { %12050 = vst [vmem:[#allocation244_spill] sm:$0xff] %v8723_v20  ;;  %12051 = vst [vmem:[#allocation245_spill] sm:$0xff] %v8726_v41  ;;  %v5153_v9 = vcombine.low %v1058_v54, %v1080_v7  ;;  %v5154_v2 = vcombine.high %v1058_v54, %v1080_v7  ;;  %v2977_v21 = vcombine.low %v1054_v25, %v1076_v1 }
 0x1f8   :  { %v2978_v46 = vcombine.high %v1054_v25, %v1076_v1  ;;  %1398 = vbcast.lane.b32.xlu1 %v1392_v8, 264  ;;  %1394 = vbcast.lane.b32.xlu0 %v1392_v8, 256  ;;  %v8749_v8 = vrot.slane %v5170_v3, %v7361_v51  ;;  %v8756_v7 = vrot.slane %v2993_v11, %v7361_v51 }
 0x1f9   :  { %v8731_v29 = vrot.slane %v5153_v9, %v7310_v56  ;;  %v8734_v10 = vrot.slane %v5154_v2, %v7310_v56  ;;  %v2985_v54 = vrot.slane %v2977_v21, %v7310_v56  ;;  %v1414_v21 = vrot.slane %v8676_v63, %v7264_v15 }
 0x1fa   :  { %v8742_v1 = vrot.slane %v2978_v46, %v7310_v56  ;;  %v1091_v25 = vpop.permute.xlu1 %1090  ;;  %v1087_v0 = vpop.permute.xlu0 %1086  ;;  %12054 = vst [vmem:[#allocation248_spill] sm:$0xff] %v8749_v8  ;;  %12055 = vst [vmem:[#allocation249_spill] sm:$0xff] %v8756_v7  ;;  %v8765_v46 = vrot.slane %v2994_v55, %v7361_v51  ;;  %v8776_v11 = vrot.slane %v3010_v5, %v7361_v51 }
 0x1fb   :  { %12052 = vst [vmem:[#allocation246_spill] sm:$0xff] %v8731_v29  ;;  %12053 = vst [vmem:[#allocation247_spill] sm:$0xff] %v8734_v10  ;;  %v5202_v13 = vcombine.high %v8723_v20, %v8731_v29  ;;  %v5218_v26 = vcombine.high %v8726_v41, %v8734_v10  ;;  %v3025_v4 = vcombine.low %v2969_v38, %v2985_v54 }
 0x1fc   :  { %v3026_v14 = vcombine.high %v2969_v38, %v2985_v54  ;;  %v3042_v35 = vcombine.high %v8738_v57, %v8742_v1  ;;  %1409 = vbcast.lane.b32.xlu1 %v1403_v39, 264  ;;  %1405 = vbcast.lane.b32.xlu0 %v1403_v39, 256  ;;  %v1425_v39 = vrot.slane %v8676_v63, %v7268_v17 }
 0x1fd   :  { %v8759_v9 = vrot.slane %v5202_v13, %v7361_v51  ;;  %v8762_v3 = vrot.slane %v3025_v4, %v7361_v51  ;;  %12059 = vst [vmem:[#allocation253_spill] sm:$0xff] %v8776_v11  ;;  %v12060_v17 = vcombine.high %v8692_v12, %v8700_v34  ;;  %v8799_v13 = vrot.slane %v5218_v26, %v7361_v51 }
 0x1fe   :  { %v1102_v2 = vpop.permute.xlu1 %1101  ;;  %v8768_v38 = vrot.slane %v3026_v14, %v7361_v51  ;;  %v8771_v54 = vrot.slane %v3042_v35, %v7361_v51  ;;  %v1098_v15 = vpop.permute.xlu0 %1097  ;;  %v1698_v55 = vcombine.high %v7521_v43, %v7527_v47  ;;  %v1562_v26 = vcombine.high %v7390_v19, %v7399_v30 }
 0x1ff   :  { %12056 = vst [vmem:[#allocation250_spill] sm:$0xff] %v8759_v9  ;;  %12057 = vst [vmem:[#allocation251_spill] sm:$0xff] %v8762_v3  ;;  %v8792_v63 = vrot.slane %v12060_v17, %v7361_v51 }
 0x200   :  { %12058 = vst [vmem:[#allocation252_spill] sm:$0xff] %v8771_v54  ;;  %1420 = vbcast.lane.b32.xlu1 %v1414_v21, 264  ;;  %1416 = vbcast.lane.b32.xlu0 %v1414_v21, 256  ;;  %12062 = vst [vmem:[#allocation255_spill] sm:$0xff] %v8799_v13 }
 0x201   :  { %12061 = vst [vmem:[#allocation254_spill] sm:$0xff] %v8792_v63  ;;  %v2106_v63 = vcombine.high %v7897_v61, %v7903_v42 }
 0x202   :  { %v1113_v4 = vpop.permute.xlu1 %1112  ;;  %v1109_v35 = vpop.permute.xlu0 %1108 }
 0x203   :  { %v5241_v14 = vcombine.low %v1091_v25, %v1113_v4  ;;  %v5242_v41 = vcombine.high %v1091_v25, %v1113_v4  ;;  %v3065_v17 = vcombine.low %v1087_v0, %v1109_v35  ;;  %v3066_v5 = vcombine.high %v1087_v0, %v1109_v35 }
 0x204   :  { %1431 = vbcast.lane.b32.xlu1 %v1425_v39, 264  ;;  %1427 = vbcast.lane.b32.xlu0 %v1425_v39, 256 }
 0x205   :  { %v8810_v25 = vrot.slane %v5241_v14, %v7310_v56  ;;  %v8813_v4 = vrot.slane %v5242_v41, %v7310_v56  ;;  %v1970_v41 = vcombine.high %v7773_v44, %v7779_v37  ;;  %v3073_v14 = vrot.slane %v3065_v17, %v7310_v56 }
 0x206   :  { %v1124_v12 = vpop.permute.xlu1 %1123  ;;  %v1120_v9 = vpop.permute.xlu0 %1119  ;;  %v2514_v44 = vcombine.high %v8269_v45, %v8275_v62 }
 0x207   :  { %12063 = vst [vmem:[#allocation256_spill] sm:$0xff] %v8810_v25  ;;  %12064 = vst [vmem:[#allocation257_spill] sm:$0xff] %v8813_v4  ;;  %v5257_v10 = vcombine.low %v1102_v2, %v1124_v12  ;;  %v5258_v34 = vcombine.high %v1102_v2, %v1124_v12  ;;  %v3081_v21 = vcombine.low %v1098_v15, %v1120_v9 }
 0x208   :  { %v3082_v39 = vcombine.high %v1098_v15, %v1120_v9  ;;  %5803 = vrot.lane.b32.xlu1 %v1698_v55, %s7206_s0  ;;  %5801 = vrot.lane.b32.xlu0 %v1562_v26, %s7206_s0  ;;  %v8827_v12 = vrot.slane %v3066_v5, %v7310_v56  ;;  %v1834_v26 = vcombine.high %v7649_v36, %v7655_v18 }
 0x209   :  { %v8817_v0 = vrot.slane %v5257_v10, %v7310_v56  ;;  %v8820_v35 = vrot.slane %v5258_v34, %v7310_v56  ;;  %v3089_v9 = vrot.slane %v3081_v21, %v7310_v56 }
 0x20a   :  { %v8831_v2 = vrot.slane %v3082_v39, %v7310_v56  ;;  %v1135_v10 = vpop.permute.xlu1 %1134  ;;  %v1131_v55 = vpop.permute.xlu0 %1130  ;;  %v2242_v39 = vcombine.high %v8021_v6, %v8027_v48 }
 0x20b   :  { %12065 = vst [vmem:[#allocation258_spill] sm:$0xff] %v8817_v0  ;;  %12066 = vst [vmem:[#allocation259_spill] sm:$0xff] %v8820_v35  ;;  %v5306_v34 = vcombine.high %v8810_v25, %v8817_v0  ;;  %v5322_v15 = vcombine.high %v8813_v4, %v8820_v35  ;;  %v3130_v17 = vcombine.high %v3073_v14, %v3089_v9  ;;  %v12116_v0 = vld [vmem:[#allocation147_spill] sm:$0xff] }
 0x20c   :  { %v3146_v5 = vcombine.high %v8827_v12, %v8831_v2  ;;  %5807 = vrot.lane.b32.xlu1 %v1970_v41, %s7206_s0  ;;  %5805 = vrot.lane.b32.xlu0 %v1834_v26, %s7206_s0  ;;  %v2378_v26 = vcombine.high %v8145_v53, %v8151_v16 }
 0x20e   :  { %v1146_v21 = vpop.permute.xlu1 %1145  ;;  %v1142_v13 = vpop.permute.xlu0 %1141 }
 0x210   :  { %5811 = vrot.lane.b32.xlu1 %v2242_v39, %s7206_s0  ;;  %5809 = vrot.lane.b32.xlu0 %v2106_v63, %s7206_s0  ;;  %v2786_v63 = vcombine.high %v8514_v60, %v8526_v58  ;;  %v2650_v39 = vcombine.high %v8393_v22, %v8405_v59 }
 0x212   :  { %v1157_v37 = vpop.permute.xlu1 %1156  ;;  %v1153_v43 = vpop.permute.xlu0 %1152 }
 0x213   :  { %v5273_v47 = vcombine.low %v1135_v10, %v1157_v37  ;;  %v5274_v41 = vcombine.high %v1135_v10, %v1157_v37  ;;  %v3097_v48 = vcombine.low %v1131_v55, %v1153_v43  ;;  %v3098_v6 = vcombine.high %v1131_v55, %v1153_v43 }
 0x214   :  { %5815 = vrot.lane.b32.xlu1 %v2514_v44, %s7206_s0  ;;  %5813 = vrot.lane.b32.xlu0 %v2378_v26, %s7206_s0  ;;  %v3129_v43 = vcombine.low %v3073_v14, %v3089_v9 }
 0x215   :  { %v8860_v62 = vrot.slane %v5273_v47, %v7310_v56  ;;  %v8863_v37 = vrot.slane %v5274_v41, %v7310_v56  ;;  %v3058_v47 = vcombine.high %v8756_v7, %v8762_v3  ;;  %v3105_v41 = vrot.slane %v3097_v48, %v7310_v56 }
 0x216   :  { %v1168_v42 = vpop.permute.xlu1 %1167  ;;  %v1164_v44 = vpop.permute.xlu0 %1163  ;;  %v8890_v48 = vrot.slane %v5306_v34, %v7361_v51  ;;  %v8906_v34 = vrot.slane %v5322_v15, %v7361_v51 }
 0x217   :  { %12067 = vst [vmem:[#allocation260_spill] sm:$0xff] %v8860_v62  ;;  %12068 = vst [vmem:[#allocation261_spill] sm:$0xff] %v8863_v37  ;;  %v5289_v10 = vcombine.low %v1146_v21, %v1168_v42  ;;  %v5290_v45 = vcombine.high %v1146_v21, %v1168_v42  ;;  %v3113_v16 = vcombine.low %v1142_v13, %v1164_v44 }
 0x218   :  { %v3114_v26 = vcombine.high %v1142_v13, %v1164_v44  ;;  %5819 = vrot.lane.b32.xlu1 %v2786_v63, %s7206_s0  ;;  %5817 = vrot.lane.b32.xlu0 %v2650_v39, %s7206_s0  ;;  %v8877_v42 = vrot.slane %v3098_v6, %v7310_v56  ;;  %v2922_v39 = vcombine.high %v8635_v24, %v8647_v50 }
 0x219   :  { %v8867_v55 = vrot.slane %v5289_v10, %v7310_v56  ;;  %v8870_v58 = vrot.slane %v5290_v45, %v7310_v56  ;;  %v3121_v13 = vrot.slane %v3113_v16, %v7310_v56  ;;  %12071 = vst [vmem:[#allocation264_spill] sm:$0xff] %v8890_v48  ;;  %v8897_v44 = vrot.slane %v3129_v43, %v7361_v51 }
 0x21a   :  { %v8881_v14 = vrot.slane %v3114_v26, %v7310_v56  ;;  %v1179_v9 = vpop.permute.xlu1 %1178  ;;  %v1175_v63 = vpop.permute.xlu0 %1174  ;;  %v8900_v26 = vrot.slane %v3130_v17, %v7361_v51  ;;  %12074 = vst [vmem:[#allocation267_spill] sm:$0xff] %v8906_v34 }
 0x21b   :  { %12069 = vst [vmem:[#allocation262_spill] sm:$0xff] %v8867_v55  ;;  %12070 = vst [vmem:[#allocation263_spill] sm:$0xff] %v8870_v58  ;;  %v5338_v45 = vcombine.high %v8860_v62, %v8867_v55  ;;  %v5354_v21 = vcombine.high %v8863_v37, %v8870_v58  ;;  %v3161_v6 = vcombine.low %v3105_v41, %v3121_v13 }
 0x21c   :  { %v3162_v10 = vcombine.high %v3105_v41, %v3121_v13  ;;  %v3178_v16 = vcombine.high %v8877_v42, %v8881_v14  ;;  %5823 = vrot.lane.b32.xlu1 %v3058_v47, %s7206_s0  ;;  %5821 = vrot.lane.b32.xlu0 %v2922_v39, %s7206_s0  ;;  %12072 = vst [vmem:[#allocation265_spill] sm:$0xff] %v8897_v44 }
 0x21d   :  { %v8903_v3 = vrot.slane %v5338_v45, %v7361_v51  ;;  %v8909_v13 = vrot.slane %v3161_v6, %v7361_v51  ;;  %v8918_v43 = vrot.slane %v5354_v21, %v7361_v51  ;;  %v8921_v45 = vrot.slane %v3146_v5, %v7361_v51 }
 0x21e   :  { %v1190_v41 = vpop.permute.xlu1 %1189  ;;  %v8912_v47 = vrot.slane %v3162_v10, %v7361_v51  ;;  %v8915_v39 = vrot.slane %v3178_v16, %v7361_v51  ;;  %v1186_v17 = vpop.permute.xlu0 %1185 }
 0x21f   :  { %12073 = vst [vmem:[#allocation266_spill] sm:$0xff] %v8903_v3  ;;  %12075 = vst [vmem:[#allocation268_spill] sm:$0xff] %v8909_v13  ;;  %v3194_v10 = vcombine.high %v8897_v44, %v8909_v13 }
 0x220   :  { %12076 = vst [vmem:[#allocation269_spill] sm:$0xff] %v8918_v43 }
 0x221   :  { %5825 = vrot.lane.b32.xlu0 %v3194_v10, %s7206_s0 }
 0x222   :  { %v1201_v6 = vpop.permute.xlu1 %1200  ;;  %v1197_v13 = vpop.permute.xlu0 %1196 }
 0x223   :  { %v5377_v50 = vcombine.low %v1179_v9, %v1201_v6  ;;  %v5378_v21 = vcombine.high %v1179_v9, %v1201_v6  ;;  %v3201_v44 = vcombine.low %v1175_v63, %v1197_v13  ;;  %v3202_v7 = vcombine.high %v1175_v63, %v1197_v13 }
 0x225   :  { %v8945_v5 = vrot.slane %v5377_v50, %v7310_v56  ;;  %v8948_v15 = vrot.slane %v5378_v21, %v7310_v56  ;;  %v3209_v63 = vrot.slane %v3201_v44, %v7310_v56  ;;  %v8958_v13 = vrot.slane %v3202_v7, %v7310_v56 }
 0x226   :  { %v1212_v24 = vpop.permute.xlu1 %1211  ;;  %v1208_v22 = vpop.permute.xlu0 %1207 }
 0x227   :  { %12077 = vst [vmem:[#allocation270_spill] sm:$0xff] %v8945_v5  ;;  %12078 = vst [vmem:[#allocation271_spill] sm:$0xff] %v8948_v15  ;;  %v5393_v10 = vcombine.low %v1190_v41, %v1212_v24  ;;  %v5394_v59 = vcombine.high %v1190_v41, %v1212_v24  ;;  %v3217_v53 = vcombine.low %v1186_v17, %v1208_v22 }
 0x228   :  { %v3218_v60 = vcombine.high %v1186_v17, %v1208_v22 }
 0x229   :  { %v8951_v61 = vrot.slane %v5393_v10, %v7310_v56  ;;  %v8954_v9 = vrot.slane %v5394_v59, %v7310_v56  ;;  %v3225_v50 = vrot.slane %v3217_v53, %v7310_v56 }
 0x22a   :  { %v8962_v6 = vrot.slane %v3218_v60, %v7310_v56  ;;  %v1223_v24 = vpop.permute.xlu1 %1222  ;;  %v1219_v17 = vpop.permute.xlu0 %1218 }
 0x22b   :  { %12079 = vst [vmem:[#allocation272_spill] sm:$0xff] %v8951_v61  ;;  %12080 = vst [vmem:[#allocation273_spill] sm:$0xff] %v8954_v9  ;;  %v5442_v22 = vcombine.high %v8945_v5, %v8951_v61  ;;  %v5458_v41 = vcombine.high %v8948_v15, %v8954_v9  ;;  %v3266_v59 = vcombine.high %v3209_v63, %v3225_v50 }
 0x22c   :  { %v3282_v44 = vcombine.high %v8958_v13, %v8962_v6  ;;  %v3265_v4 = vcombine.low %v3209_v63, %v3225_v50 }
 0x22e   :  { %v1234_v21 = vpop.permute.xlu1 %1233  ;;  %v1230_v7 = vpop.permute.xlu0 %1229 }
 0x232   :  { %v1245_v10 = vpop.permute.xlu1 %1244  ;;  %v1241_v43 = vpop.permute.xlu0 %1240 }
 0x233   :  { %v5409_v16 = vcombine.low %v1223_v24, %v1245_v10  ;;  %v5410_v53 = vcombine.high %v1223_v24, %v1245_v10  ;;  %v3233_v60 = vcombine.low %v1219_v17, %v1241_v43  ;;  %v3234_v34 = vcombine.high %v1219_v17, %v1241_v43 }
 0x235   :  { %v8971_v36 = vrot.slane %v5409_v16, %v7310_v56  ;;  %v8974_v30 = vrot.slane %v5410_v53, %v7310_v56  ;;  %v3241_v43 = vrot.slane %v3233_v60, %v7310_v56  ;;  %v8984_v16 = vrot.slane %v3234_v34, %v7310_v56 }
 0x236   :  { %v1256_v18 = vpop.permute.xlu1 %1255  ;;  %v1252_v19 = vpop.permute.xlu0 %1251  ;;  %v9009_v53 = vrot.slane %v5458_v41, %v7361_v51 }
 0x237   :  { %12081 = vst [vmem:[#allocation274_spill] sm:$0xff] %v8971_v36  ;;  %12082 = vst [vmem:[#allocation275_spill] sm:$0xff] %v8974_v30  ;;  %v5425_v15 = vcombine.low %v1234_v21, %v1256_v18  ;;  %v5426_v9 = vcombine.high %v1234_v21, %v1256_v18  ;;  %v3249_v37 = vcombine.low %v1230_v7, %v1252_v19 }
 0x238   :  { %v3250_v58 = vcombine.high %v1230_v7, %v1252_v19  ;;  %12088 = vst [vmem:[#allocation281_spill] sm:$0xff] %v9009_v53 }
 0x239   :  { %v8977_v35 = vrot.slane %v5425_v15, %v7310_v56  ;;  %v8980_v24 = vrot.slane %v5426_v9, %v7310_v56  ;;  %v3257_v17 = vrot.slane %v3249_v37, %v7310_v56  ;;  %v8995_v9 = vrot.slane %v5442_v22, %v7361_v51 }
 0x23a   :  { %v8988_v10 = vrot.slane %v3250_v58, %v7310_v56  ;;  %v1267_v18 = vpop.permute.xlu1 %1266  ;;  %v1263_v63 = vpop.permute.xlu0 %1262  ;;  %v9000_v37 = vrot.slane %v3265_v4, %v7361_v51  ;;  %v9003_v58 = vrot.slane %v3266_v59, %v7361_v51 }
 0x23b   :  { %12083 = vst [vmem:[#allocation276_spill] sm:$0xff] %v8977_v35  ;;  %12084 = vst [vmem:[#allocation277_spill] sm:$0xff] %v8980_v24  ;;  %v5474_v19 = vcombine.high %v8971_v36, %v8977_v35  ;;  %v5490_v15 = vcombine.high %v8974_v30, %v8980_v24  ;;  %v3297_v50 = vcombine.low %v3241_v43, %v3257_v17 }
 0x23c   :  { %12085 = vst [vmem:[#allocation278_spill] sm:$0xff] %v8995_v9  ;;  %v3298_v21 = vcombine.high %v3241_v43, %v3257_v17  ;;  %v3314_v34 = vcombine.high %v8984_v16, %v8988_v10  ;;  %12086 = vst [vmem:[#allocation279_spill] sm:$0xff] %v9000_v37 }
 0x23d   :  { %v9006_v7 = vrot.slane %v5474_v19, %v7361_v51  ;;  %v9012_v22 = vrot.slane %v3297_v50, %v7361_v51  ;;  %v9021_v4 = vrot.slane %v5490_v15, %v7361_v51  ;;  %v9024_v19 = vrot.slane %v3282_v44, %v7361_v51 }
 0x23e   :  { %v1278_v60 = vpop.permute.xlu1 %1277  ;;  %v9015_v43 = vrot.slane %v3298_v21, %v7361_v51  ;;  %v9018_v17 = vrot.slane %v3314_v34, %v7361_v51  ;;  %v1274_v59 = vpop.permute.xlu0 %1273 }
 0x23f   :  { %12087 = vst [vmem:[#allocation280_spill] sm:$0xff] %v9006_v7  ;;  %12089 = vst [vmem:[#allocation282_spill] sm:$0xff] %v9012_v22  ;;  %v3330_v21 = vcombine.high %v9000_v37, %v9012_v22 }
 0x240   :  { %12090 = vst [vmem:[#allocation283_spill] sm:$0xff] %v9018_v17  ;;  %12091 = vst [vmem:[#allocation284_spill] sm:$0xff] %v9021_v4 }
 0x241   :  { %12092 = vst [vmem:[#allocation285_spill] sm:$0xff] %v9024_v19  ;;  %5827 = vrot.lane.b32.xlu1 %v3330_v21, %s7206_s0 }
 0x242   :  { %v1289_v50 = vpop.permute.xlu1 %1288  ;;  %v1285_v22 = vpop.permute.xlu0 %1284 }
 0x243   :  { %v5513_v7 = vcombine.low %v1267_v18, %v1289_v50  ;;  %v5514_v15 = vcombine.high %v1267_v18, %v1289_v50  ;;  %v3338_v37 = vcombine.high %v1263_v63, %v1285_v22  ;;  %v3337_v48 = vcombine.low %v1263_v63, %v1285_v22 }
 0x245   :  { %v9048_v9 = vrot.slane %v5513_v7, %v7310_v56  ;;  %v9051_v44 = vrot.slane %v5514_v15, %v7310_v56  ;;  %v9060_v18 = vrot.slane %v3338_v37, %v7310_v56  ;;  %v9075_v61 = vrot.slane %v3337_v48, %v7310_v56 }
 0x246   :  { %v1300_v30 = vpop.permute.xlu1 %1299  ;;  %v1296_v8 = vpop.permute.xlu0 %1295 }
 0x247   :  { %12093 = vst [vmem:[#allocation286_spill] sm:$0xff] %v9048_v9  ;;  %12094 = vst [vmem:[#allocation287_spill] sm:$0xff] %v9051_v44  ;;  %v5529_v41 = vcombine.low %v1278_v60, %v1300_v30  ;;  %v5530_v21 = vcombine.high %v1278_v60, %v1300_v30  ;;  %v3354_v3 = vcombine.high %v1274_v59, %v1296_v8 }
 0x248   :  { %v3353_v53 = vcombine.low %v1274_v59, %v1296_v8 }
 0x249   :  { %v9054_v24 = vrot.slane %v5529_v41, %v7310_v56  ;;  %v9057_v34 = vrot.slane %v5530_v21, %v7310_v56  ;;  %v9063_v50 = vrot.slane %v3354_v3, %v7310_v56 }
 0x24a   :  { %v1311_v7 = vpop.permute.xlu1 %1310  ;;  %v1307_v60 = vpop.permute.xlu0 %1306  ;;  %v9072_v5 = vrot.slane %v3353_v53, %v7310_v56 }
 0x24b   :  { %12095 = vst [vmem:[#allocation288_spill] sm:$0xff] %v9054_v24  ;;  %12096 = vst [vmem:[#allocation289_spill] sm:$0xff] %v9057_v34  ;;  %v5578_v15 = vcombine.high %v9048_v9, %v9054_v24  ;;  %v5594_v30 = vcombine.high %v9051_v44, %v9057_v34  ;;  %v3418_v41 = vcombine.high %v9060_v18, %v9063_v50 }
 0x24c   :  { %v3401_v53 = vcombine.low %v9075_v61, %v9072_v5 }
 0x24e   :  { %v1322_v4 = vpop.permute.xlu1 %1321  ;;  %v1318_v21 = vpop.permute.xlu0 %1317 }
 0x252   :  { %v1333_v37 = vpop.permute.xlu1 %1332  ;;  %v1329_v3 = vpop.permute.xlu0 %1328 }
 0x253   :  { %v5545_v36 = vcombine.low %v1311_v7, %v1333_v37  ;;  %v5546_v35 = vcombine.high %v1311_v7, %v1333_v37  ;;  %v3369_v20 = vcombine.low %v1307_v60, %v1329_v3  ;;  %v3370_v44 = vcombine.high %v1307_v60, %v1329_v3 }
 0x255   :  { %v9078_v29 = vrot.slane %v5545_v36, %v7310_v56  ;;  %v9081_v9 = vrot.slane %v5546_v35, %v7310_v56  ;;  %v9092_v36 = vrot.slane %v3369_v20, %v7310_v56  ;;  %v9095_v35 = vrot.slane %v3370_v44, %v7310_v56 }
 0x256   :  { %v1344_v34 = vpop.permute.xlu1 %1343  ;;  %v1340_v22 = vpop.permute.xlu0 %1339  ;;  %v9108_v20 = vrot.slane %v5578_v15, %v7361_v51 }
 0x257   :  { %12097 = vst [vmem:[#allocation290_spill] sm:$0xff] %v9078_v29  ;;  %12098 = vst [vmem:[#allocation291_spill] sm:$0xff] %v9081_v9  ;;  %v5561_v8 = vcombine.low %v1322_v4, %v1344_v34  ;;  %v5562_v63 = vcombine.high %v1322_v4, %v1344_v34  ;;  %v3385_v59 = vcombine.low %v1318_v21, %v1340_v22 }
 0x258   :  { %v3386_v7 = vcombine.high %v1318_v21, %v1340_v22  ;;  %12101 = vst [vmem:[#allocation294_spill] sm:$0xff] %v9108_v20 }
 0x259   :  { %v9086_v48 = vrot.slane %v5561_v8, %v7310_v56  ;;  %v9089_v60 = vrot.slane %v5562_v63, %v7310_v56  ;;  %v9098_v4 = vrot.slane %v3385_v59, %v7310_v56  ;;  %v9118_v59 = vrot.slane %v5594_v30, %v7361_v51 }
 0x25a   :  { %v9101_v34 = vrot.slane %v3386_v7, %v7310_v56  ;;  %v1355_v21 = vpop.permute.xlu1 %1354  ;;  %v1351_v8 = vpop.permute.xlu0 %1350 }
 0x25b   :  { %12099 = vst [vmem:[#allocation292_spill] sm:$0xff] %v9086_v48  ;;  %12100 = vst [vmem:[#allocation293_spill] sm:$0xff] %v9089_v60  ;;  %v5610_v37 = vcombine.high %v9078_v29, %v9086_v48  ;;  %v5626_v3 = vcombine.high %v9081_v9, %v9089_v60  ;;  %v3433_v44 = vcombine.low %v9092_v36, %v9098_v4 }
 0x25c   :  { %v3450_v63 = vcombine.high %v9095_v35, %v9101_v34  ;;  %12103 = vst [vmem:[#allocation296_spill] sm:$0xff] %v9118_v59  ;;  %v9121_v29 = vrot.slane %v3401_v53, %v7361_v51 }
 0x25d   :  { %v9115_v22 = vrot.slane %v5610_v37, %v7361_v51  ;;  %v9124_v9 = vrot.slane %v3433_v44, %v7361_v51  ;;  %v9130_v60 = vrot.slane %v5626_v3, %v7361_v51  ;;  %v9133_v37 = vrot.slane %v3418_v41, %v7361_v51 }
 0x25e   :  { %v1366_v7 = vpop.permute.xlu1 %1365  ;;  %12104 = vst [vmem:[#allocation297_spill] sm:$0xff] %v9121_v29  ;;  %v9127_v15 = vrot.slane %v3450_v63, %v7361_v51  ;;  %v1362_v48 = vpop.permute.xlu0 %1361  ;;  %v12109_v63 = vcombine.low %v7402_v31, %v7405_v32 }
 0x25f   :  { %12102 = vst [vmem:[#allocation295_spill] sm:$0xff] %v9115_v22  ;;  %12105 = vst [vmem:[#allocation298_spill] sm:$0xff] %v9124_v9  ;;  %v3466_v44 = vcombine.high %v9121_v29, %v9124_v9 }
 0x260   :  { %12106 = vst [vmem:[#allocation299_spill] sm:$0xff] %v9127_v15  ;;  %12107 = vst [vmem:[#allocation300_spill] sm:$0xff] %v9130_v60 }
 0x261   :  { %12108 = vst [vmem:[#allocation301_spill] sm:$0xff] %v9133_v37  ;;  %5829 = vrot.lane.b32.xlu0 %v3466_v44, %s7206_s0 }
 0x262   :  { %v1377_v41 = vpop.permute.xlu1 %1376  ;;  %v1373_v62 = vpop.permute.xlu0 %1372 }
 0x263   :  { %v5649_v22 = vcombine.low %v1355_v21, %v1377_v41  ;;  %v5650_v20 = vcombine.high %v1355_v21, %v1377_v41  ;;  %v3474_v55 = vcombine.high %v1351_v8, %v1373_v62 }
 0x265   :  { %5865 = vrot.lane.b32.xlu0 %v12109_v63, %s7207_s9  ;;  %v9157_v44 = vrot.slane %v5649_v22, %v7310_v56  ;;  %v9160_v3 = vrot.slane %v5650_v20, %v7310_v56  ;;  %v9169_v59 = vrot.slane %v3474_v55, %v7310_v56  ;;  %v12114_v20 = vcombine.low %v7658_v28, %v7661_v52 }
 0x266   :  { %v1388_v24 = vpop.permute.xlu1 %1387  ;;  %v1384_v53 = vpop.permute.xlu0 %1383 }
 0x267   :  { %12110 = vst [vmem:[#allocation302_spill] sm:$0xff] %v9157_v44  ;;  %12111 = vst [vmem:[#allocation303_spill] sm:$0xff] %v9160_v3  ;;  %v5665_v30 = vcombine.low %v1366_v7, %v1388_v24  ;;  %v5666_v9 = vcombine.high %v1366_v7, %v1388_v24  ;;  %v3490_v60 = vcombine.high %v1362_v48, %v1384_v53 }
 0x268   :  { %v3489_v25 = vcombine.low %v1362_v48, %v1384_v53  ;;  %v12118_v48 = vld [vmem:[#allocation188_spill] sm:$0xff] }
 0x269   :  { %v9163_v21 = vrot.slane %v5665_v30, %v7310_v56  ;;  %v9166_v41 = vrot.slane %v5666_v9, %v7310_v56  ;;  %v9172_v63 = vrot.slane %v3490_v60, %v7310_v56  ;;  %5869 = vrot.lane.b32.xlu0 %v12114_v20, %s7207_s9  ;;  %v12115_v60 = vcombine.low %v7906_v23, %v7909_v49 }
 0x26a   :  { %v1399_v24 = vpop.permute.xlu1 %1398  ;;  %v1395_v9 = vpop.permute.xlu0 %1394  ;;  %v3473_v20 = vcombine.low %v1351_v8, %v1373_v62  ;;  %v9193_v19 = vrot.slane %v3489_v25, %v7310_v56  ;;  %v12119_v62 = vld [vmem:[#allocation192_spill] sm:$0xff] }
 0x26b   :  { %12112 = vst [vmem:[#allocation304_spill] sm:$0xff] %v9163_v21  ;;  %12113 = vst [vmem:[#allocation305_spill] sm:$0xff] %v9166_v41  ;;  %v5714_v22 = vcombine.high %v9157_v44, %v9163_v21  ;;  %v5730_v7 = vcombine.high %v9160_v3, %v9166_v41  ;;  %v3554_v55 = vcombine.high %v9169_v59, %v9172_v63 }
 0x26c   :  { %v12117_v44 = vcombine.low %v8154_v27, %v12116_v0  ;;  %v9196_v54 = vrot.slane %v3473_v20, %v7310_v56  ;;  %v12120_v8 = vcombine.low %v12118_v48, %v12119_v62  ;;  %v3434_v20 = vcombine.high %v9092_v36, %v9098_v4 }
 0x26d   :  { %5873 = vrot.lane.b32.xlu0 %v12115_v60, %s7207_s9 }
 0x26e   :  { %v1410_v30 = vpop.permute.xlu1 %1409  ;;  %v1406_v29 = vpop.permute.xlu0 %1405 }
 0x271   :  { %5877 = vrot.lane.b32.xlu0 %v12117_v44, %s7207_s9 }
 0x272   :  { %v1421_v21 = vpop.permute.xlu1 %1420  ;;  %v1417_v17 = vpop.permute.xlu0 %1416 }
 0x273   :  { %v5681_v3 = vcombine.low %v1399_v24, %v1421_v21  ;;  %v5682_v41 = vcombine.high %v1399_v24, %v1421_v21  ;;  %v3505_v60 = vcombine.low %v1395_v9, %v1417_v17  ;;  %v3506_v11 = vcombine.high %v1395_v9, %v1417_v17 }
 0x274   :  { %v3402_v9 = vcombine.high %v9075_v61, %v9072_v5  ;;  %v12122_v61 = vcombine.low %v8638_v33, %v8650_v40 }
 0x275   :  { %5881 = vrot.lane.b32.xlu0 %v12120_v8, %s7207_s9  ;;  %v9203_v44 = vrot.slane %v5681_v3, %v7310_v56  ;;  %v9206_v21 = vrot.slane %v5682_v41, %v7310_v56  ;;  %v3537_v8 = vcombine.low %v9196_v54, %v9193_v19 }
 0x276   :  { %v1432_v53 = vpop.permute.xlu1 %1431  ;;  %v1428_v15 = vpop.permute.xlu0 %1427 }
 0x277   :  { %12121 = vst [vmem:[#allocation147_spill] sm:$0xff] %v9206_v21  ;;  %v5697_v24 = vcombine.low %v1410_v30, %v1432_v53  ;;  %v5698_v25 = vcombine.high %v1410_v30, %v1432_v53  ;;  %v3521_v37 = vcombine.low %v1406_v29, %v1428_v15  ;;  %v3522_v17 = vcombine.high %v1406_v29, %v1428_v15 }
 0x278   :  { %v3513_v30 = vrot.slane %v3505_v60, %v7310_v56  ;;  %v9222_v53 = vrot.slane %v3506_v11, %v7310_v56  ;;  %v9237_v15 = vrot.slane %v5714_v22, %v7361_v51 }
 0x279   :  { %v9215_v3 = vrot.slane %v5697_v24, %v7310_v56  ;;  %v9218_v41 = vrot.slane %v5698_v25, %v7310_v56  ;;  %v3529_v36 = vrot.slane %v3521_v37, %v7310_v56  ;;  %v9226_v29 = vrot.slane %v3522_v17, %v7310_v56  ;;  %5885 = vrot.lane.b32.xlu0 %v12122_v61, %s7207_s9 }
 0x27a   :  { %v3448_v56 = vrot.slane %v3434_v20, %v7361_v51  ;;  %v12123_v24 = vcombine.low %v8900_v26, %v8912_v47  ;;  %v3416_v25 = vrot.slane %v3402_v9, %v7361_v51  ;;  %v9251_v17 = vrot.slane %v3537_v8, %v7361_v51  ;;  %v12133_v9 = vld [vmem:[#allocation83_spill] sm:$0xff] }
 0x27b   :  { %v5746_v5 = vcombine.high %v9203_v44, %v9215_v3  ;;  %v5762_v4 = vcombine.high %v9206_v21, %v9218_v41  ;;  %v3569_v11 = vcombine.low %v3513_v30, %v3529_v36  ;;  %v3586_v37 = vcombine.high %v9222_v53, %v9226_v29 }
 0x27c   :  { %12124 = vst [vmem:[#allocation188_spill] sm:$0xff] %v9251_v17  ;;  %v9260_v20 = vrot.slane %v3554_v55, %v7361_v51  ;;  %v3467_v21 = vcombine.low %v3416_v25, %v3448_v56  ;;  %v12130_v55 = vld [vmem:[#allocation42_spill] sm:$0xff] }
 0x27d   :  { %v9243_v60 = vrot.slane %v5746_v5, %v7361_v51  ;;  %5889 = vrot.lane.b32.xlu0 %v12123_v24, %s7207_s9  ;;  %v9254_v22 = vrot.slane %v3569_v11, %v7361_v51  ;;  %v9257_v61 = vrot.slane %v3586_v37, %v7361_v51  ;;  %v9271_v11 = vrot.slane %v5730_v7, %v7361_v51  ;;  %v12134_v37 = vld [vmem:[#allocation84_spill] sm:$0xff] }
 0x27e   :  { %v9280_v5 = vrot.slane %v5762_v4, %v7361_v51  ;;  %v12132_v4 = vcombine.high %v7658_v28, %v7661_v52  ;;  %v12135_v7 = vcombine.low %v12133_v9, %v12134_v37  ;;  %v12140_v28 = vcombine.high %v8154_v27, %v12116_v0  ;;  %v12141_v52 = vld [vmem:[#allocation168_spill] sm:$0xff] }
 0x27f   :  { %12125 = vst [vmem:[#allocation192_spill] sm:$0xff] %v9254_v22  ;;  %v3602_v24 = vcombine.high %v9251_v17, %v9254_v22  ;;  %12126 = vst [vmem:[#allocation306_spill] sm:$0xff] %v9271_v11  ;;  %v3538_v27 = vcombine.high %v9196_v54, %v9193_v19  ;;  %v12148_v0 = vcombine.high %v8638_v33, %v8650_v40  ;;  %v12156_v19 = vld [vmem:[#allocation57_spill] sm:$0xff]  ;;  %v12286_v17 = vld [vmem:[#allocation283_spill] sm:$0xff] }
 0x280   :  { %12127 = vst [vmem:[#allocation307_spill] sm:$0xff] %v9280_v5  ;;  %v12154_v54 = vcombine.high %v8900_v26, %v8912_v47  ;;  %v12155_v40 = vcombine.low %v9003_v58, %v9015_v43  ;;  %v12158_v26 = vld [vmem:[#allocation51_spill] sm:$0xff]  ;;  %v12159_v47 = vld [vmem:[#allocation52_spill] sm:$0xff]  ;;  %v12285_v22 = vld [vmem:[#allocation285_spill] sm:$0xff] }
 0x281   :  { %5893 = vrot.lane.b32.xlu0 %v3467_v21, %s7207_s9  ;;  %5831 = vrot.lane.b32.xlu1 %v3602_v24, %s7206_s0  ;;  %v12128_v21 = vcombine.high %v7402_v31, %v7405_v32  ;;  %v12129_v24 = vld [vmem:[#allocation41_spill] sm:$0xff]  ;;  %v12136_v31 = vcombine.high %v7906_v23, %v7909_v49  ;;  %v12144_v23 = vcombine.high %v12118_v48, %v12119_v62  ;;  %v12145_v49 = vld [vmem:[#allocation210_spill] sm:$0xff]  ;;  %v12150_v48 = vld [vmem:[#allocation15_spill] sm:$0xff] }
 0x282   :  { %v12131_v8 = vcombine.low %v12129_v24, %v12130_v55  ;;  %v12137_v32 = vld [vmem:[#allocation125_spill] sm:$0xff]  ;;  %v12151_v62 = vld [vmem:[#allocation16_spill] sm:$0xff]  ;;  %v9352_v33 = vrot.slane %v3538_v27, %v7361_v51 }
 0x285   :  { %5929 = vrot.lane.b32.xlu0 %v12128_v21, %s7208_s10  ;;  %5867 = vrot.lane.b32.xlu1 %v12131_v8, %s7207_s9  ;;  %v12138_v21 = vld [vmem:[#allocation126_spill] sm:$0xff]  ;;  %v12142_v8 = vld [vmem:[#allocation169_spill] sm:$0xff] }
 0x286   :  { %v12139_v5 = vcombine.low %v12137_v32, %v12138_v21 }
 0x289   :  { %5933 = vrot.lane.b32.xlu0 %v12132_v4, %s7208_s10  ;;  %5871 = vrot.lane.b32.xlu1 %v12135_v7, %s7207_s9  ;;  %v12143_v4 = vcombine.low %v12141_v52, %v12142_v8  ;;  %v12146_v7 = vld [vmem:[#allocation214_spill] sm:$0xff] }
 0x28d   :  { %5937 = vrot.lane.b32.xlu0 %v12136_v31, %s7208_s10  ;;  %5875 = vrot.lane.b32.xlu1 %v12139_v5, %s7207_s9  ;;  %v12147_v31 = vcombine.low %v12145_v49, %v12146_v7  ;;  %v3570_v5 = vcombine.high %v3513_v30, %v3529_v36  ;;  %v12152_v30 = vld [vmem:[#allocation9_spill] sm:$0xff]  ;;  %v12153_v36 = vld [vmem:[#allocation10_spill] sm:$0xff] }
 0x291   :  { %5941 = vrot.lane.b32.xlu0 %v12140_v28, %s7208_s10  ;;  %5879 = vrot.lane.b32.xlu1 %v12143_v4, %s7207_s9  ;;  %v12149_v28 = vcombine.low %v8765_v46, %v8768_v38  ;;  %v1545_v4 = vcombine.low %v12151_v62, %v12150_v48 }
 0x293   :  { %v9359_v62 = vrot.slane %v1545_v4, %v7361_v51  ;;  %v12162_v4 = vld [vmem:[#allocation94_spill] sm:$0xff] }
 0x295   :  { %5945 = vrot.lane.b32.xlu0 %v12144_v23, %s7208_s10  ;;  %5883 = vrot.lane.b32.xlu1 %v12147_v31, %s7207_s9  ;;  %v9339_v23 = vrot.slane %v3570_v5, %v7361_v51  ;;  %v1513_v31 = vcombine.low %v12153_v36, %v12152_v30  ;;  %v1785_v30 = vcombine.low %v12159_v47, %v12158_v26  ;;  %v12160_v36 = vld [vmem:[#allocation100_spill] sm:$0xff]  ;;  %v12166_v26 = vld [vmem:[#allocation141_spill] sm:$0xff] }
 0x297   :  { %v3603_v48 = vcombine.low %v9352_v33, %v9339_v23  ;;  %v9366_v27 = vrot.slane %v1513_v31, %v7361_v51  ;;  %v12164_v31 = vcombine.high %v12129_v24, %v12130_v55  ;;  %v12169_v55 = vcombine.high %v12133_v9, %v12134_v37 }
 0x298   :  { %v12174_v9 = vcombine.high %v12137_v32, %v12138_v21  ;;  %v12179_v32 = vcombine.high %v12141_v52, %v12142_v8  ;;  %v12180_v52 = vcombine.high %v12145_v49, %v12146_v7  ;;  %v12181_v49 = vcombine.high %v8765_v46, %v8768_v38  ;;  %v12183_v7 = vld [vmem:[#allocation36_spill] sm:$0xff] }
 0x299   :  { %5949 = vrot.lane.b32.xlu0 %v12148_v0, %s7208_s10  ;;  %5887 = vrot.lane.b32.xlu1 %v12149_v28, %s7207_s9  ;;  %v12157_v0 = vld [vmem:[#allocation58_spill] sm:$0xff]  ;;  %v3468_v28 = vcombine.high %v3416_v25, %v3448_v56  ;;  %v1565_v56 = vcombine.low %v9366_v27, %v9359_v62  ;;  %v12187_v46 = vcombine.high %v9003_v58, %v9015_v43  ;;  %v12192_v43 = vld [vmem:[#allocation120_spill] sm:$0xff] }
 0x29a   :  { %v1817_v5 = vcombine.low %v12157_v0, %v12156_v19  ;;  %v12163_v19 = vld [vmem:[#allocation93_spill] sm:$0xff] }
 0x29b   :  { %v2057_v0 = vcombine.low %v12163_v19, %v12162_v4  ;;  %v12168_v4 = vld [vmem:[#allocation135_spill] sm:$0xff]  ;;  %v12171_v19 = vld [vmem:[#allocation184_spill] sm:$0xff] }
 0x29c   :  { %v9373_v25 = vrot.slane %v1817_v5, %v7361_v51 }
 0x29d   :  { %5953 = vrot.lane.b32.xlu0 %v12154_v54, %s7208_s10  ;;  %5891 = vrot.lane.b32.xlu1 %v12155_v40, %s7207_s9  ;;  %v12161_v54 = vld [vmem:[#allocation99_spill] sm:$0xff]  ;;  %v9400_v24 = vrot.slane %v2057_v0, %v7361_v51  ;;  %v12175_v0 = vld [vmem:[#allocation229_spill] sm:$0xff] }
 0x29e   :  { %v2089_v40 = vcombine.low %v12161_v54, %v12160_v36  ;;  %v12167_v54 = vld [vmem:[#allocation136_spill] sm:$0xff] }
 0x2a0   :  { %v9390_v36 = vrot.slane %v2089_v40, %v7361_v51 }
 0x2a1   :  { %5957 = vrot.lane.b32.xlu0 %v3468_v28, %s7208_s10  ;;  %5895 = vrot.lane.b32.xlu1 %v3603_v48, %s7207_s9  ;;  %v9383_v28 = vrot.slane %v1785_v30, %v7361_v51  ;;  %v12165_v48 = vld [vmem:[#allocation142_spill] sm:$0xff]  ;;  %v12170_v30 = vld [vmem:[#allocation185_spill] sm:$0xff] }
 0x2a2   :  { %v2361_v47 = vcombine.low %v12166_v26, %v12165_v48  ;;  %v9404_v48 = vpop.permute.xlu0 %5801  ;;  %v2109_v40 = vcombine.low %v9400_v24, %v9390_v36 }
 0x2a3   :  { %v1837_v5 = vcombine.low %v9383_v28, %v9373_v25 }
 0x2a4   :  { %v9409_v26 = vrot.slane %v2361_v47, %v7361_v51 }
 0x2a5   :  { %5993 = vrot.lane.b32.xlu0 %v1565_v56, %s7209_s11  ;;  %5931 = vrot.lane.b32.xlu1 %v12164_v31, %s7208_s10  ;;  %v2329_v56 = vcombine.low %v12168_v4, %v12167_v54  ;;  %v2633_v31 = vcombine.low %v12171_v19, %v12170_v30  ;;  %v12173_v54 = vld [vmem:[#allocation178_spill] sm:$0xff] }
 0x2a6   :  { %v9430_v11 = vpop.permute.xlu0 %5805 }
 0x2a7   :  { %v9419_v37 = vrot.slane %v2329_v56, %v7361_v51  ;;  %v9426_v19 = vrot.slane %v2633_v31, %v7361_v51  ;;  %v3177_v56 = vcombine.low %v8877_v42, %v8881_v14  ;;  %v3449_v42 = vcombine.low %v9095_v35, %v9101_v34  ;;  %v12182_v34 = vld [vmem:[#allocation35_spill] sm:$0xff] }
 0x2a9   :  { %5997 = vrot.lane.b32.xlu0 %v1837_v5, %s7209_s11  ;;  %5935 = vrot.lane.b32.xlu1 %v12169_v55, %s7208_s10  ;;  %v12172_v5 = vld [vmem:[#allocation179_spill] sm:$0xff]  ;;  %v12176_v55 = vld [vmem:[#allocation228_spill] sm:$0xff]  ;;  %v2381_v47 = vcombine.low %v9419_v37, %v9409_v26 }
 0x2aa   :  { %v2601_v4 = vcombine.low %v12173_v54, %v12172_v5  ;;  %v2905_v30 = vcombine.low %v12176_v55, %v12175_v0  ;;  %v12177_v5 = vld [vmem:[#allocation223_spill] sm:$0xff]  ;;  %v12178_v54 = vld [vmem:[#allocation222_spill] sm:$0xff]  ;;  %v3145_v0 = vcombine.low %v8827_v12, %v8831_v2  ;;  %v9459_v14 = vpop.permute.xlu0 %5809  ;;  %v9464_v12 = vrot.slane %v3177_v56, %v7361_v51 }
 0x2ab   :  { %v3417_v2 = vcombine.low %v9060_v18, %v9063_v50  ;;  %v1681_v55 = vcombine.low %v12183_v7, %v12182_v34  ;;  %v12184_v18 = vld [vmem:[#allocation29_spill] sm:$0xff]  ;;  %v12185_v50 = vld [vmem:[#allocation30_spill] sm:$0xff] }
 0x2ac   :  { %v9438_v21 = vrot.slane %v2601_v4, %v7361_v51  ;;  %v9474_v35 = vrot.slane %v3145_v0, %v7361_v51  ;;  %v3604_v0 = vcombine.high %v9352_v33, %v9339_v23  ;;  %v1566_v23 = vcombine.high %v9366_v27, %v9359_v62 }
 0x2ad   :  { %6001 = vrot.lane.b32.xlu0 %v2109_v40, %s7209_s11  ;;  %5939 = vrot.lane.b32.xlu1 %v12174_v9, %s7208_s10  ;;  %v2873_v40 = vcombine.low %v12178_v54, %v12177_v5  ;;  %v9445_v9 = vrot.slane %v2905_v30, %v7361_v51  ;;  %v1649_v5 = vcombine.low %v12185_v50, %v12184_v18  ;;  %v12196_v18 = vld [vmem:[#allocation113_spill] sm:$0xff] }
 0x2ae   :  { %v2653_v31 = vcombine.low %v9438_v21, %v9426_v19  ;;  %v3197_v30 = vcombine.low %v9474_v35, %v9464_v12  ;;  %v9485_v54 = vpop.permute.xlu0 %5813  ;;  %v9493_v38 = vrot.slane %v3417_v2, %v7361_v51  ;;  %v12193_v2 = vld [vmem:[#allocation119_spill] sm:$0xff]  ;;  %v1838_v27 = vcombine.high %v9383_v28, %v9373_v25  ;;  %v12203_v25 = vld [vmem:[#allocation206_spill] sm:$0xff] }
 0x2af   :  { %v9455_v8 = vrot.slane %v2873_v40, %v7361_v51  ;;  %12186 = vst [vmem:[#allocation41_spill] sm:$0xff] %v9485_v54  ;;  %v12188_v40 = vld [vmem:[#allocation77_spill] sm:$0xff]  ;;  %v9509_v58 = vrot.slane %v1649_v5, %v7361_v51  ;;  %v2225_v34 = vcombine.low %v12193_v2, %v12192_v43  ;;  %v12202_v43 = vld [vmem:[#allocation207_spill] sm:$0xff]  ;;  %v2110_v2 = vcombine.high %v9400_v24, %v9390_v36 }
 0x2b0   :  { %v2769_v28 = vcombine.low %v12203_v25, %v12202_v43  ;;  %v3041_v36 = vcombine.low %v8738_v57, %v8742_v1  ;;  %v3313_v57 = vcombine.low %v8984_v16, %v8988_v10  ;;  %v3585_v16 = vcombine.low %v9222_v53, %v9226_v29 }
 0x2b1   :  { %6005 = vrot.lane.b32.xlu0 %v2381_v47, %s7209_s11  ;;  %5943 = vrot.lane.b32.xlu1 %v12179_v32, %s7208_s10  ;;  %v2925_v4 = vcombine.low %v9455_v8, %v9445_v9  ;;  %v9481_v47 = vrot.slane %v3449_v42, %v7361_v51  ;;  %v12189_v32 = vld [vmem:[#allocation78_spill] sm:$0xff]  ;;  %v12190_v42 = vld [vmem:[#allocation71_spill] sm:$0xff]  ;;  %v3198_v29 = vcombine.high %v9474_v35, %v9464_v12 }
 0x2b2   :  { %v1953_v56 = vcombine.low %v12189_v32, %v12188_v40  ;;  %v9513_v7 = vpop.permute.xlu0 %5817  ;;  %v12198_v40 = vld [vmem:[#allocation162_spill] sm:$0xff]  ;;  %v3049_v25 = vrot.slane %v3041_v36, %v7361_v51 }
 0x2b3   :  { %12194 = vst [vmem:[#allocation42_spill] sm:$0xff] %v9513_v7 }
 0x2b5   :  { %6009 = vrot.lane.b32.xlu0 %v2653_v31, %s7209_s11  ;;  %5947 = vrot.lane.b32.xlu1 %v12180_v52, %s7208_s10  ;;  %v3469_v31 = vcombine.low %v9493_v38, %v9481_v47  ;;  %v9502_v52 = vrot.slane %v1681_v55, %v7361_v51  ;;  %v9520_v55 = vrot.slane %v1953_v56, %v7361_v51 }
 0x2b6   :  { %v9536_v56 = vrot.slane %v2225_v34, %v7361_v51 }
 0x2b7   :  { %v1701_v33 = vcombine.low %v9509_v58, %v9502_v52  ;;  %v1702_v35 = vcombine.high %v9509_v58, %v9502_v52 }
 0x2b9   :  { %6013 = vrot.lane.b32.xlu0 %v2925_v4, %s7209_s11  ;;  %5951 = vrot.lane.b32.xlu1 %v12181_v49, %s7208_s10  ;;  %v12191_v4 = vld [vmem:[#allocation72_spill] sm:$0xff] }
 0x2ba   :  { %v1921_v49 = vcombine.low %v12191_v4, %v12190_v42  ;;  %v9540_v4 = vpop.permute.xlu0 %5821 }
 0x2bb   :  { %12201 = vst [vmem:[#allocation83_spill] sm:$0xff] %v9540_v4 }
 0x2bc   :  { %v9527_v5 = vrot.slane %v1921_v49, %v7361_v51 }
 0x2bd   :  { %6017 = vrot.lane.b32.xlu0 %v3197_v30, %s7209_s11  ;;  %5955 = vrot.lane.b32.xlu1 %v12187_v46, %s7208_s10  ;;  %v12195_v30 = vld [vmem:[#allocation114_spill] sm:$0xff]  ;;  %v12197_v46 = vld [vmem:[#allocation163_spill] sm:$0xff] }
 0x2be   :  { %v2193_v50 = vcombine.low %v12196_v18, %v12195_v30  ;;  %v2497_v62 = vcombine.low %v12198_v40, %v12197_v46  ;;  %v1973_v32 = vcombine.low %v9527_v5, %v9520_v55  ;;  %v12205_v30 = vld [vmem:[#allocation200_spill] sm:$0xff]  ;;  %v9558_v46 = vpop.permute.xlu1 %5803  ;;  %v9565_v24 = vpop.permute.xlu0 %5825  ;;  %v2382_v40 = vcombine.high %v9419_v37, %v9409_v26 }
 0x2bf   :  { %12206 = vst [vmem:[#allocation84_spill] sm:$0xff] %v9558_v46  ;;  %12207 = vst [vmem:[#allocation125_spill] sm:$0xff] %v9565_v24  ;;  %v2654_v26 = vcombine.high %v9438_v21, %v9426_v19  ;;  %v2926_v19 = vcombine.high %v9455_v8, %v9445_v9  ;;  %v3593_v8 = vrot.slane %v3585_v16, %v7361_v51  ;;  %v12225_v16 = vld [vmem:[#allocation105_spill] sm:$0xff] }
 0x2c0   :  { %v9545_v49 = vrot.slane %v2193_v50, %v7361_v51 }
 0x2c1   :  { %6021 = vrot.lane.b32.xlu0 %v3469_v31, %s7209_s11  ;;  %5959 = vrot.lane.b32.xlu1 %v3604_v0, %s7208_s10  ;;  %v12199_v31 = vld [vmem:[#allocation157_spill] sm:$0xff]  ;;  %v12200_v0 = vld [vmem:[#allocation156_spill] sm:$0xff] }
 0x2c2   :  { %v2465_v42 = vcombine.low %v12200_v0, %v12199_v31  ;;  %v2245_v34 = vcombine.low %v9545_v49, %v9536_v56  ;;  %v12209_v31 = vld [vmem:[#allocation242_spill] sm:$0xff]  ;;  %v9578_v1 = vpop.permute.xlu1 %5807 }
 0x2c3   :  { %12210 = vst [vmem:[#allocation126_spill] sm:$0xff] %v9578_v1 }
 0x2c4   :  { %v2473_v50 = vrot.slane %v2465_v42, %v7361_v51 }
 0x2c5   :  { %6057 = vrot.lane.b32.xlu0 %v1566_v23, %s7210_s12  ;;  %5995 = vrot.lane.b32.xlu1 %v1701_v33, %s7209_s11  ;;  %v9554_v23 = vrot.slane %v2497_v62, %v7361_v51  ;;  %v12204_v33 = vld [vmem:[#allocation201_spill] sm:$0xff] }
 0x2c6   :  { %v2737_v18 = vcombine.low %v12205_v30, %v12204_v33 }
 0x2c7   :  { %v2517_v62 = vcombine.low %v2473_v50, %v9554_v23 }
 0x2c8   :  { %v2745_v42 = vrot.slane %v2737_v18, %v7361_v51  ;;  %v3470_v18 = vcombine.high %v9493_v38, %v9481_v47  ;;  %v1974_v38 = vcombine.high %v9527_v5, %v9520_v55 }
 0x2c9   :  { %6061 = vrot.lane.b32.xlu0 %v1838_v27, %s7210_s12  ;;  %5999 = vrot.lane.b32.xlu1 %v1973_v32, %s7209_s11  ;;  %v2777_v27 = vrot.slane %v2769_v28, %v7361_v51  ;;  %v12208_v32 = vld [vmem:[#allocation243_spill] sm:$0xff]  ;;  %v3281_v28 = vcombine.low %v8958_v13, %v8962_v6  ;;  %v3553_v13 = vcombine.low %v9169_v59, %v9172_v63  ;;  %v9599_v6 = vpop.permute.xlu1 %5811 }
 0x2ca   :  { %v3009_v0 = vcombine.low %v12209_v31, %v12208_v32  ;;  %12211 = vst [vmem:[#allocation168_spill] sm:$0xff] %v9599_v6  ;;  %v12216_v32 = vld [vmem:[#allocation21_spill] sm:$0xff] }
 0x2cb   :  { %v2789_v37 = vcombine.low %v2745_v42, %v2777_v27  ;;  %v3289_v33 = vrot.slane %v3281_v28, %v7361_v51  ;;  %v3561_v59 = vrot.slane %v3553_v13, %v7361_v51  ;;  %v12224_v28 = vld [vmem:[#allocation106_spill] sm:$0xff]  ;;  %v12229_v13 = vld [vmem:[#allocation149_spill] sm:$0xff] }
 0x2cd   :  { %6065 = vrot.lane.b32.xlu0 %v2110_v2, %s7210_s12  ;;  %6003 = vrot.lane.b32.xlu1 %v2245_v34, %s7209_s11  ;;  %v3017_v2 = vrot.slane %v3009_v0, %v7361_v51  ;;  %v3321_v34 = vrot.slane %v3313_v57, %v7361_v51  ;;  %v9612_v63 = vpop.permute.xlu1 %5815  ;;  %v3605_v36 = vcombine.low %v3561_v59, %v3593_v8  ;;  %v12219_v0 = vld [vmem:[#allocation64_spill] sm:$0xff]  ;;  %v12220_v57 = vld [vmem:[#allocation63_spill] sm:$0xff] }
 0x2ce   :  { %12212 = vst [vmem:[#allocation169_spill] sm:$0xff] %v9612_v63 }
 0x2cf   :  { %v3061_v21 = vcombine.low %v3017_v2, %v3049_v25  ;;  %v3333_v9 = vcombine.low %v3289_v33, %v3321_v34 }
 0x2d1   :  { %6069 = vrot.lane.b32.xlu0 %v2382_v40, %s7210_s12  ;;  %6007 = vrot.lane.b32.xlu1 %v2517_v62, %s7209_s11  ;;  %v9624_v40 = vpop.permute.xlu1 %5819  ;;  %v12215_v62 = vld [vmem:[#allocation22_spill] sm:$0xff] }
 0x2d2   :  { %12214 = vst [vmem:[#allocation214_spill] sm:$0xff] %v9624_v40  ;;  %v12217_v31 = vcombine.low %v12215_v62, %v12216_v32 }
 0x2d3   :  { %v9580_v43 = vpop.permute.xlu0 %5829 }
 0x2d5   :  { %6073 = vrot.lane.b32.xlu0 %v2654_v26, %s7210_s12  ;;  %6011 = vrot.lane.b32.xlu1 %v2789_v37, %s7209_s11  ;;  %v12221_v26 = vcombine.low %v12219_v0, %v12220_v57  ;;  %v9640_v52 = vpop.permute.xlu1 %5823  ;;  %v2246_v37 = vcombine.high %v9545_v49, %v9536_v56 }
 0x2d6   :  { %12222 = vst [vmem:[#allocation16_spill] sm:$0xff] %v9640_v52  ;;  %v12255_v52 = vld [vmem:[#allocation85_spill] sm:$0xff] }
 0x2d7   :  { %v9592_v10 = vpop.permute.xlu0 %5865 }
 0x2d9   :  { %6077 = vrot.lane.b32.xlu0 %v2926_v19, %s7210_s12  ;;  %6015 = vrot.lane.b32.xlu1 %v3061_v21, %s7209_s11  ;;  %v12226_v19 = vcombine.low %v12224_v28, %v12225_v16  ;;  %v9651_v55 = vpop.permute.xlu1 %5827  ;;  %v2518_v21 = vcombine.high %v2473_v50, %v9554_v23 }
 0x2da   :  { %12227 = vst [vmem:[#allocation10_spill] sm:$0xff] %v9651_v55  ;;  %v12249_v55 = vld [vmem:[#allocation43_spill] sm:$0xff] }
 0x2db   :  { %v9604_v53 = vpop.permute.xlu0 %5869 }
 0x2dd   :  { %6081 = vrot.lane.b32.xlu0 %v3198_v29, %s7210_s12  ;;  %6019 = vrot.lane.b32.xlu1 %v3333_v9, %s7209_s11  ;;  %v12230_v29 = vld [vmem:[#allocation148_spill] sm:$0xff] }
 0x2de   :  { %v12231_v9 = vcombine.low %v12229_v13, %v12230_v29 }
 0x2df   :  { %v9614_v30 = vpop.permute.xlu0 %5873 }
 0x2e1   :  { %6085 = vrot.lane.b32.xlu0 %v3470_v18, %s7210_s12  ;;  %6023 = vrot.lane.b32.xlu1 %v3605_v36, %s7209_s11  ;;  %v2790_v18 = vcombine.high %v2745_v42, %v2777_v27  ;;  %v12233_v36 = vld [vmem:[#allocation195_spill] sm:$0xff] }
 0x2e3   :  { %v9620_v12 = vpop.permute.xlu0 %5877 }
 0x2e4   :  { %12213 = vst [vmem:[#allocation210_spill] sm:$0xff] %v9620_v12 }
 0x2e5   :  { %6121 = vrot.lane.b32.xlu0 %v12217_v31, %s7211_s13  ;;  %6059 = vrot.lane.b32.xlu1 %v1702_v35, %s7210_s12  ;;  %v12234_v35 = vld [vmem:[#allocation193_spill] sm:$0xff] }
 0x2e6   :  { %v12235_v31 = vcombine.low %v12233_v36, %v12234_v35 }
 0x2e7   :  { %v9631_v47 = vpop.permute.xlu0 %5881 }
 0x2e8   :  { %12218 = vst [vmem:[#allocation15_spill] sm:$0xff] %v9631_v47 }
 0x2e9   :  { %6125 = vrot.lane.b32.xlu0 %v12221_v26, %s7211_s13  ;;  %6063 = vrot.lane.b32.xlu1 %v1974_v38, %s7210_s12  ;;  %v3062_v38 = vcombine.high %v3017_v2, %v3049_v25  ;;  %v12237_v26 = vld [vmem:[#allocation237_spill] sm:$0xff] }
 0x2eb   :  { %v9642_v58 = vpop.permute.xlu0 %5885 }
 0x2ec   :  { %12223 = vst [vmem:[#allocation9_spill] sm:$0xff] %v9642_v58 }
 0x2ed   :  { %6129 = vrot.lane.b32.xlu0 %v12226_v19, %s7211_s13  ;;  %6067 = vrot.lane.b32.xlu1 %v2246_v37, %s7210_s12  ;;  %v12238_v37 = vld [vmem:[#allocation235_spill] sm:$0xff] }
 0x2ee   :  { %v12239_v19 = vcombine.low %v12237_v26, %v12238_v37  ;;  %v12279_v1 = vcombine.high %v12237_v26, %v12238_v37  ;;  %v12288_v26 = vcombine.high %v8921_v45, %v8915_v39  ;;  %v12290_v37 = vld [vmem:[#allocation47_spill] sm:$0xff] }
 0x2ef   :  { %v9653_v5 = vpop.permute.xlu0 %5889 }
 0x2f0   :  { %12228 = vst [vmem:[#allocation57_spill] sm:$0xff] %v9653_v5 }
 0x2f1   :  { %6133 = vrot.lane.b32.xlu0 %v12231_v9, %s7211_s13  ;;  %6071 = vrot.lane.b32.xlu1 %v2518_v21, %s7210_s12  ;;  %v3334_v21 = vcombine.high %v3289_v33, %v3321_v34  ;;  %v12241_v9 = vcombine.low %v8921_v45, %v8915_v39 }
 0x2f3   :  { %v9661_v56 = vpop.permute.xlu1 %5831  ;;  %v9663_v49 = vpop.permute.xlu0 %5893 }
 0x2f4   :  { %12232 = vst [vmem:[#allocation58_spill] sm:$0xff] %v9661_v56  ;;  %v12287_v56 = vcombine.low %v12285_v22, %v12286_v17 }
 0x2f5   :  { %6137 = vrot.lane.b32.xlu0 %v12235_v31, %s7211_s13  ;;  %6075 = vrot.lane.b32.xlu1 %v2790_v18, %s7210_s12  ;;  %v3606_v18 = vcombine.high %v3561_v59, %v3593_v8  ;;  %v12243_v31 = vld [vmem:[#allocation301_spill] sm:$0xff]  ;;  %v12251_v8 = vcombine.high %v12215_v62, %v12216_v32  ;;  %v12260_v62 = vld [vmem:[#allocation128_spill] sm:$0xff]  ;;  %v12261_v32 = vld [vmem:[#allocation127_spill] sm:$0xff] }
 0x2f7   :  { %v9670_v23 = vpop.permute.xlu1 %5867  ;;  %v9672_v50 = vpop.permute.xlu0 %5929 }
 0x2f8   :  { %12236 = vst [vmem:[#allocation51_spill] sm:$0xff] %v9670_v23  ;;  %v12281_v23 = vld [vmem:[#allocation11_spill] sm:$0xff] }
 0x2f9   :  { %6141 = vrot.lane.b32.xlu0 %v12239_v19, %s7211_s13  ;;  %6079 = vrot.lane.b32.xlu1 %v3062_v38, %s7210_s12  ;;  %v12244_v38 = vld [vmem:[#allocation299_spill] sm:$0xff] }
 0x2fa   :  { %v12245_v19 = vcombine.low %v12243_v31, %v12244_v38  ;;  %v12295_v39 = vcombine.high %v12243_v31, %v12244_v38 }
 0x2fb   :  { %v9679_v27 = vpop.permute.xlu1 %5871  ;;  %v9681_v42 = vpop.permute.xlu0 %5933 }
 0x2fc   :  { %12240 = vst [vmem:[#allocation52_spill] sm:$0xff] %v9679_v27 }
 0x2fd   :  { %6145 = vrot.lane.b32.xlu0 %v12241_v9, %s7211_s13  ;;  %6083 = vrot.lane.b32.xlu1 %v3334_v21, %s7210_s12  ;;  %v12248_v9 = vld [vmem:[#allocation44_spill] sm:$0xff] }
 0x2fe   :  { %v12250_v21 = vcombine.low %v12248_v9, %v12249_v55  ;;  %v12302_v38 = vcombine.high %v12248_v9, %v12249_v55 }
 0x2ff   :  { %v9688_v25 = vpop.permute.xlu1 %5875  ;;  %v9690_v2 = vpop.permute.xlu0 %5937 }
 0x300   :  { %12242 = vst [vmem:[#allocation100_spill] sm:$0xff] %v9688_v25 }
 0x301   :  { %6149 = vrot.lane.b32.xlu0 %v12245_v19, %s7211_s13  ;;  %6087 = vrot.lane.b32.xlu1 %v3606_v18, %s7210_s12  ;;  %v12254_v18 = vld [vmem:[#allocation86_spill] sm:$0xff] }
 0x302   :  { %v12256_v40 = vcombine.low %v12254_v18, %v12255_v52  ;;  %v12309_v9 = vcombine.high %v12254_v18, %v12255_v52  ;;  %v12316_v18 = vcombine.high %v12260_v62, %v12261_v32 }
 0x303   :  { %v9697_v34 = vpop.permute.xlu1 %5879  ;;  %v9699_v33 = vpop.permute.xlu0 %5941 }
 0x304   :  { %12246 = vst [vmem:[#allocation99_spill] sm:$0xff] %v9697_v34  ;;  %12247 = vst [vmem:[#allocation94_spill] sm:$0xff] %v9699_v33  ;;  %v12257_v34 = vcombine.high %v12219_v0, %v12220_v57  ;;  %v12266_v0 = vld [vmem:[#allocation171_spill] sm:$0xff]  ;;  %v12267_v57 = vld [vmem:[#allocation170_spill] sm:$0xff] }
 0x305   :  { %6123 = vrot.lane.b32.xlu1 %v12250_v21, %s7211_s13  ;;  %6185 = vrot.lane.b32.xlu0 %v12251_v8, %s7212_s14  ;;  %v12262_v8 = vcombine.low %v12260_v62, %v12261_v32  ;;  %v12323_v32 = vcombine.high %v12266_v0, %v12267_v57  ;;  %v12462_v33 = vld [vmem:[#allocation280_spill] sm:$0xff] }
 0x307   :  { %v9709_v59 = vpop.permute.xlu1 %5883  ;;  %v9711_v19 = vpop.permute.xlu0 %5945 }
 0x308   :  { %12252 = vst [vmem:[#allocation93_spill] sm:$0xff] %v9709_v59  ;;  %12253 = vst [vmem:[#allocation142_spill] sm:$0xff] %v9711_v19  ;;  %v12263_v59 = vcombine.high %v12224_v28, %v12225_v16  ;;  %v12271_v28 = vld [vmem:[#allocation217_spill] sm:$0xff]  ;;  %v12272_v16 = vld [vmem:[#allocation215_spill] sm:$0xff] }
 0x309   :  { %6127 = vrot.lane.b32.xlu1 %v12256_v40, %s7211_s13  ;;  %6189 = vrot.lane.b32.xlu0 %v12257_v34, %s7212_s14  ;;  %v12268_v34 = vcombine.low %v12266_v0, %v12267_v57  ;;  %v12329_v57 = vcombine.high %v12271_v28, %v12272_v16 }
 0x30b   :  { %v9721_v21 = vpop.permute.xlu1 %5887  ;;  %v9723_v63 = vpop.permute.xlu0 %5949 }
 0x30c   :  { %12258 = vst [vmem:[#allocation141_spill] sm:$0xff] %v9721_v21  ;;  %12259 = vst [vmem:[#allocation136_spill] sm:$0xff] %v9723_v63  ;;  %v12269_v21 = vcombine.high %v12229_v13, %v12230_v29  ;;  %v12276_v13 = vld [vmem:[#allocation253_spill] sm:$0xff]  ;;  %v12277_v29 = vld [vmem:[#allocation252_spill] sm:$0xff] }
 0x30d   :  { %6131 = vrot.lane.b32.xlu1 %v12262_v8, %s7211_s13  ;;  %6193 = vrot.lane.b32.xlu0 %v12263_v59, %s7212_s14  ;;  %v12273_v59 = vcombine.low %v12271_v28, %v12272_v16  ;;  %v12335_v16 = vcombine.high %v12276_v13, %v12277_v29 }
 0x30f   :  { %v9733_v40 = vpop.permute.xlu1 %5891  ;;  %v9735_v25 = vpop.permute.xlu0 %5953 }
 0x310   :  { %12264 = vst [vmem:[#allocation135_spill] sm:$0xff] %v9733_v40  ;;  %12265 = vst [vmem:[#allocation185_spill] sm:$0xff] %v9735_v25  ;;  %v12274_v40 = vcombine.high %v12233_v36, %v12234_v35  ;;  %v12283_v35 = vld [vmem:[#allocation7_spill] sm:$0xff] }
 0x311   :  { %6135 = vrot.lane.b32.xlu1 %v12268_v34, %s7211_s13  ;;  %6197 = vrot.lane.b32.xlu0 %v12269_v21, %s7212_s14  ;;  %v12278_v21 = vcombine.low %v12276_v13, %v12277_v29  ;;  %v12341_v29 = vcombine.high %v12285_v22, %v12286_v17  ;;  %v12348_v22 = vcombine.high %v9260_v20, %v9257_v61 }
 0x313   :  { %v9745_v8 = vpop.permute.xlu1 %5895  ;;  %v9747_v6 = vpop.permute.xlu0 %5957 }
 0x314   :  { %12270 = vst [vmem:[#allocation184_spill] sm:$0xff] %v9745_v8 }
 0x315   :  { %6139 = vrot.lane.b32.xlu1 %v12273_v59, %s7211_s13  ;;  %6201 = vrot.lane.b32.xlu0 %v12274_v40, %s7212_s14  ;;  %v12280_v59 = vld [vmem:[#allocation13_spill] sm:$0xff] }
 0x316   :  { %v3705_v46 = vcombine.low %v12281_v23, %v12280_v59  ;;  %v12284_v40 = vld [vmem:[#allocation5_spill] sm:$0xff] }
 0x317   :  { %v9757_v34 = vpop.permute.xlu1 %5931  ;;  %v9759_v27 = vpop.permute.xlu0 %5993  ;;  %v12292_v59 = vld [vmem:[#allocation53_spill] sm:$0xff] }
 0x318   :  { %12275 = vst [vmem:[#allocation179_spill] sm:$0xff] %v9757_v34  ;;  %v3673_v34 = vcombine.low %v12284_v40, %v12283_v35  ;;  %v9794_v35 = vrot.slane %v3705_v46, %v7361_v51  ;;  %v12296_v40 = vld [vmem:[#allocation91_spill] sm:$0xff] }
 0x319   :  { %6143 = vrot.lane.b32.xlu1 %v12278_v21, %s7211_s13  ;;  %6205 = vrot.lane.b32.xlu0 %v12279_v1, %s7212_s14  ;;  %v12289_v1 = vld [vmem:[#allocation49_spill] sm:$0xff]  ;;  %v12291_v21 = vld [vmem:[#allocation55_spill] sm:$0xff] }
 0x31a   :  { %v3945_v23 = vcombine.low %v12290_v37, %v12289_v1  ;;  %v9805_v45 = vrot.slane %v3673_v34, %v7361_v51  ;;  %v12298_v37 = vld [vmem:[#allocation97_spill] sm:$0xff] }
 0x31b   :  { %v9771_v8 = vpop.permute.xlu1 %5935  ;;  %v9773_v36 = vpop.permute.xlu0 %5997 }
 0x31c   :  { %12282 = vst [vmem:[#allocation178_spill] sm:$0xff] %v9771_v8  ;;  %v3977_v8 = vcombine.low %v12292_v59, %v12291_v21  ;;  %v12299_v21 = vld [vmem:[#allocation95_spill] sm:$0xff]  ;;  %v9818_v24 = vrot.slane %v3945_v23, %v7361_v51  ;;  %v3738_v47 = vcombine.high %v9805_v45, %v9794_v35 }
 0x31d   :  { %6147 = vrot.lane.b32.xlu1 %v12287_v56, %s7211_s13  ;;  %6209 = vrot.lane.b32.xlu0 %v12288_v26, %s7212_s14  ;;  %v12294_v56 = vcombine.low %v9260_v20, %v9257_v61  ;;  %v12297_v26 = vld [vmem:[#allocation89_spill] sm:$0xff]  ;;  %v4249_v46 = vcombine.low %v12299_v21, %v12298_v37  ;;  %v12304_v23 = vld [vmem:[#allocation131_spill] sm:$0xff] }
 0x31e   :  { %v4217_v1 = vcombine.low %v12297_v26, %v12296_v40  ;;  %v9821_v31 = vrot.slane %v3977_v8, %v7361_v51  ;;  %v12303_v40 = vld [vmem:[#allocation133_spill] sm:$0xff]  ;;  %v12305_v37 = vld [vmem:[#allocation139_spill] sm:$0xff] }
 0x31f   :  { %v9789_v25 = vpop.permute.xlu1 %5939  ;;  %v9791_v5 = vpop.permute.xlu0 %6001  ;;  %v4489_v26 = vcombine.low %v12304_v23, %v12303_v40  ;;  %v12306_v8 = vld [vmem:[#allocation137_spill] sm:$0xff]  ;;  %v12312_v40 = vld [vmem:[#allocation182_spill] sm:$0xff]  ;;  %v12313_v23 = vld [vmem:[#allocation180_spill] sm:$0xff] }
 0x320   :  { %12293 = vst [vmem:[#allocation229_spill] sm:$0xff] %v9789_v25  ;;  %v9829_v34 = vrot.slane %v4217_v1, %v7361_v51  ;;  %v4521_v21 = vcombine.low %v12306_v8, %v12305_v37  ;;  %v4009_v55 = vcombine.low %v9818_v24, %v9821_v31  ;;  %v4793_v37 = vcombine.low %v12313_v23, %v12312_v40  ;;  %v12320_v40 = vld [vmem:[#allocation224_spill] sm:$0xff] }
 0x321   :  { %6151 = vrot.lane.b32.xlu1 %v12294_v56, %s7211_s13  ;;  %6213 = vrot.lane.b32.xlu0 %v12295_v39, %s7212_s14  ;;  %v3737_v56 = vcombine.low %v9805_v45, %v9794_v35  ;;  %v9832_v39 = vrot.slane %v4249_v46, %v7361_v51  ;;  %v12310_v46 = vld [vmem:[#allocation176_spill] sm:$0xff]  ;;  %v9860_v58 = vrot.slane %v4489_v26, %v7361_v51 }
 0x322   :  { %v9863_v52 = vrot.slane %v4521_v21, %v7361_v51  ;;  %v9884_v62 = vrot.slane %v4793_v37, %v7361_v51  ;;  %v12357_v45 = vld [vmem:[#allocation160_spill] sm:$0xff] }
 0x323   :  { %v9811_v59 = vpop.permute.xlu1 %5943  ;;  %v9813_v25 = vpop.permute.xlu0 %6005  ;;  %v4281_v1 = vcombine.low %v9829_v34, %v9832_v39 }
 0x324   :  { %12300 = vst [vmem:[#allocation228_spill] sm:$0xff] %v9811_v59  ;;  %12301 = vst [vmem:[#allocation223_spill] sm:$0xff] %v9813_v25  ;;  %v4553_v21 = vcombine.low %v9860_v58, %v9863_v52 }
 0x325   :  { %6187 = vrot.lane.b32.xlu1 %v12302_v38, %s7212_s14  ;;  %6249 = vrot.lane.b32.xlu0 %v3737_v56, %s7213_s15  ;;  %v12311_v56 = vld [vmem:[#allocation174_spill] sm:$0xff] }
 0x326   :  { %v4761_v38 = vcombine.low %v12311_v56, %v12310_v46  ;;  %v12319_v56 = vld [vmem:[#allocation226_spill] sm:$0xff] }
 0x327   :  { %v9838_v59 = vpop.permute.xlu1 %5947  ;;  %v9840_v63 = vpop.permute.xlu0 %6009  ;;  %v5065_v23 = vcombine.low %v12320_v40, %v12319_v56  ;;  %v12326_v56 = vld [vmem:[#allocation262_spill] sm:$0xff]  ;;  %v12327_v40 = vld [vmem:[#allocation260_spill] sm:$0xff] }
 0x328   :  { %12307 = vst [vmem:[#allocation222_spill] sm:$0xff] %v9838_v59  ;;  %12308 = vst [vmem:[#allocation35_spill] sm:$0xff] %v9840_v63  ;;  %v5337_v37 = vcombine.low %v12327_v40, %v12326_v56 }
 0x329   :  { %6191 = vrot.lane.b32.xlu1 %v12309_v9, %s7212_s14  ;;  %6253 = vrot.lane.b32.xlu0 %v4009_v55, %s7213_s15  ;;  %v12317_v55 = vld [vmem:[#allocation220_spill] sm:$0xff]  ;;  %v12318_v9 = vld [vmem:[#allocation218_spill] sm:$0xff] }
 0x32a   :  { %v5033_v46 = vcombine.low %v12318_v9, %v12317_v55  ;;  %v12324_v55 = vld [vmem:[#allocation258_spill] sm:$0xff]  ;;  %v12325_v9 = vld [vmem:[#allocation256_spill] sm:$0xff]  ;;  %v9926_v28 = vrot.slane %v5337_v37, %v7361_v51 }
 0x32b   :  { %v9855_v8 = vpop.permute.xlu1 %5951  ;;  %v9857_v59 = vpop.permute.xlu0 %6013 }
 0x32c   :  { %12314 = vst [vmem:[#allocation36_spill] sm:$0xff] %v9855_v8  ;;  %12315 = vst [vmem:[#allocation29_spill] sm:$0xff] %v9857_v59  ;;  %v9881_v59 = vrot.slane %v4761_v38, %v7361_v51  ;;  %v5305_v38 = vcombine.low %v12325_v9, %v12324_v55  ;;  %v12332_v55 = vld [vmem:[#allocation292_spill] sm:$0xff]  ;;  %v12333_v9 = vld [vmem:[#allocation290_spill] sm:$0xff] }
 0x32d   :  { %6195 = vrot.lane.b32.xlu1 %v12316_v18, %s7212_s14  ;;  %6257 = vrot.lane.b32.xlu0 %v4281_v1, %s7213_s15  ;;  %v9892_v1 = vrot.slane %v5033_v46, %v7361_v51  ;;  %v9895_v18 = vrot.slane %v5065_v23, %v7361_v51  ;;  %v12330_v23 = vld [vmem:[#allocation288_spill] sm:$0xff]  ;;  %v5609_v56 = vcombine.low %v12333_v9, %v12332_v55  ;;  %v12339_v55 = vld [vmem:[#allocation31_spill] sm:$0xff] }
 0x32e   :  { %v4825_v0 = vcombine.low %v9881_v59, %v9884_v62  ;;  %v9923_v4 = vrot.slane %v5305_v38, %v7361_v51 }
 0x32f   :  { %v9874_v8 = vpop.permute.xlu1 %5955  ;;  %v9876_v26 = vpop.permute.xlu0 %6017  ;;  %v5097_v46 = vcombine.low %v9892_v1, %v9895_v18  ;;  %v9947_v13 = vrot.slane %v5609_v56, %v7361_v51 }
 0x330   :  { %12321 = vst [vmem:[#allocation30_spill] sm:$0xff] %v9874_v8  ;;  %12322 = vst [vmem:[#allocation77_spill] sm:$0xff] %v9876_v26  ;;  %v5369_v37 = vcombine.low %v9923_v4, %v9926_v28 }
 0x331   :  { %6199 = vrot.lane.b32.xlu1 %v12323_v32, %s7212_s14  ;;  %6261 = vrot.lane.b32.xlu0 %v4553_v21, %s7213_s15  ;;  %v12331_v21 = vld [vmem:[#allocation286_spill] sm:$0xff] }
 0x332   :  { %v5577_v32 = vcombine.low %v12331_v21, %v12330_v23  ;;  %v12338_v21 = vld [vmem:[#allocation33_spill] sm:$0xff] }
 0x333   :  { %v9901_v8 = vpop.permute.xlu1 %5959  ;;  %v9903_v26 = vpop.permute.xlu0 %6021  ;;  %v3841_v9 = vcombine.low %v12339_v55, %v12338_v21  ;;  %v12344_v21 = vld [vmem:[#allocation75_spill] sm:$0xff]  ;;  %v12345_v55 = vld [vmem:[#allocation73_spill] sm:$0xff] }
 0x334   :  { %12328 = vst [vmem:[#allocation78_spill] sm:$0xff] %v9901_v8  ;;  %v9944_v63 = vrot.slane %v5577_v32, %v7361_v51  ;;  %v4113_v32 = vcombine.low %v12345_v55, %v12344_v21 }
 0x335   :  { %6203 = vrot.lane.b32.xlu1 %v12329_v57, %s7212_s14  ;;  %6265 = vrot.lane.b32.xlu0 %v4825_v0, %s7213_s15  ;;  %v12336_v0 = vld [vmem:[#allocation27_spill] sm:$0xff]  ;;  %v12337_v57 = vld [vmem:[#allocation25_spill] sm:$0xff]  ;;  %v9968_v17 = vrot.slane %v3841_v9, %v7361_v51 }
 0x336   :  { %v3809_v23 = vcombine.low %v12337_v57, %v12336_v0  ;;  %v12343_v0 = vld [vmem:[#allocation67_spill] sm:$0xff]  ;;  %v5641_v19 = vcombine.low %v9944_v63, %v9947_v13  ;;  %v9991_v20 = vrot.slane %v4113_v32, %v7361_v51 }
 0x337   :  { %v9918_v40 = vpop.permute.xlu1 %5995  ;;  %v9920_v8 = vpop.permute.xlu0 %6057 }
 0x338   :  { %12334 = vst [vmem:[#allocation71_spill] sm:$0xff] %v9918_v40 }
 0x339   :  { %6207 = vrot.lane.b32.xlu1 %v12335_v16, %s7212_s14  ;;  %6269 = vrot.lane.b32.xlu0 %v5097_v46, %s7213_s15  ;;  %v9955_v46 = vrot.slane %v3809_v23, %v7361_v51  ;;  %v12342_v16 = vld [vmem:[#allocation69_spill] sm:$0xff]  ;;  %v12349_v23 = vld [vmem:[#allocation111_spill] sm:$0xff] }
 0x33a   :  { %v4081_v57 = vcombine.low %v12343_v0, %v12342_v16  ;;  %v12351_v16 = vld [vmem:[#allocation117_spill] sm:$0xff]  ;;  %v12352_v0 = vld [vmem:[#allocation115_spill] sm:$0xff] }
 0x33b   :  { %v9937_v40 = vpop.permute.xlu1 %5999  ;;  %v9939_v38 = vpop.permute.xlu0 %6061  ;;  %v4385_v21 = vcombine.low %v12352_v0, %v12351_v16  ;;  %v3873_v9 = vcombine.low %v9955_v46, %v9968_v17 }
 0x33c   :  { %12340 = vst [vmem:[#allocation72_spill] sm:$0xff] %v9937_v40  ;;  %v9988_v61 = vrot.slane %v4081_v57, %v7361_v51  ;;  %v12358_v57 = vld [vmem:[#allocation158_spill] sm:$0xff] }
 0x33d   :  { %6211 = vrot.lane.b32.xlu1 %v12341_v29, %s7212_s14  ;;  %6273 = vrot.lane.b32.xlu0 %v5369_v37, %s7213_s15  ;;  %v12350_v37 = vld [vmem:[#allocation109_spill] sm:$0xff]  ;;  %v4657_v16 = vcombine.low %v12358_v57, %v12357_v45  ;;  %v12363_v57 = vld [vmem:[#allocation204_spill] sm:$0xff] }
 0x33e   :  { %v4353_v29 = vcombine.low %v12350_v37, %v12349_v23  ;;  %v12355_v23 = vld [vmem:[#allocation154_spill] sm:$0xff]  ;;  %v12356_v37 = vld [vmem:[#allocation152_spill] sm:$0xff] }
 0x33f   :  { %v9961_v40 = vpop.permute.xlu1 %6003  ;;  %v9963_v56 = vpop.permute.xlu0 %6065  ;;  %v4625_v35 = vcombine.low %v12356_v37, %v12355_v23  ;;  %v12361_v23 = vld [vmem:[#allocation198_spill] sm:$0xff]  ;;  %v12362_v37 = vld [vmem:[#allocation196_spill] sm:$0xff] }
 0x340   :  { %12346 = vst [vmem:[#allocation120_spill] sm:$0xff] %v9961_v40  ;;  %12347 = vst [vmem:[#allocation119_spill] sm:$0xff] %v9963_v56  ;;  %v4897_v45 = vcombine.low %v12362_v37, %v12361_v23  ;;  %v12370_v23 = vld [vmem:[#allocation244_spill] sm:$0xff] }
 0x341   :  { %6215 = vrot.lane.b32.xlu1 %v12348_v22, %s7212_s14  ;;  %6277 = vrot.lane.b32.xlu0 %v5641_v19, %s7213_s15  ;;  %v9996_v19 = vrot.slane %v4353_v29, %v7361_v51  ;;  %v9999_v22 = vrot.slane %v4385_v21, %v7361_v51  ;;  %v4282_v21 = vcombine.high %v9829_v34, %v9832_v39  ;;  %v12367_v34 = vld [vmem:[#allocation240_spill] sm:$0xff]  ;;  %v12368_v39 = vld [vmem:[#allocation238_spill] sm:$0xff] }
 0x343   :  { %v9979_v55 = vpop.permute.xlu1 %6007  ;;  %v9981_v40 = vpop.permute.xlu0 %6069  ;;  %v4417_v29 = vcombine.low %v9996_v19, %v9999_v22 }
 0x344   :  { %12353 = vst [vmem:[#allocation114_spill] sm:$0xff] %v9979_v55  ;;  %12354 = vst [vmem:[#allocation113_spill] sm:$0xff] %v9981_v40 }
 0x345   :  { %6251 = vrot.lane.b32.xlu1 %v3873_v9, %s7213_s15  ;;  %6313 = vrot.lane.b32.xlu0 %v3738_v47, %s7214_s16  ;;  %v4145_v9 = vcombine.low %v9988_v61, %v9991_v20  ;;  %v4010_v47 = vcombine.high %v9818_v24, %v9821_v31  ;;  %v10028_v24 = vrot.slane %v4625_v35, %v7361_v51 }
 0x346   :  { %v10031_v31 = vrot.slane %v4657_v16, %v7361_v51  ;;  %v4554_v16 = vcombine.high %v9860_v58, %v9863_v52 }
 0x347   :  { %v10005_v0 = vpop.permute.xlu1 %6011  ;;  %v10007_v32 = vpop.permute.xlu0 %6073 }
 0x348   :  { %12359 = vst [vmem:[#allocation163_spill] sm:$0xff] %v10005_v0  ;;  %12360 = vst [vmem:[#allocation162_spill] sm:$0xff] %v10007_v32  ;;  %v12364_v0 = vld [vmem:[#allocation202_spill] sm:$0xff]  ;;  %v4689_v35 = vcombine.low %v10028_v24, %v10031_v31 }
 0x349   :  { %6255 = vrot.lane.b32.xlu1 %v4145_v9, %s7213_s15  ;;  %6317 = vrot.lane.b32.xlu0 %v4010_v47, %s7214_s16  ;;  %v4929_v55 = vcombine.low %v12364_v0, %v12363_v57  ;;  %v5169_v9 = vcombine.low %v12368_v39, %v12367_v34  ;;  %v12369_v47 = vld [vmem:[#allocation246_spill] sm:$0xff] }
 0x34a   :  { %v5201_v0 = vcombine.low %v12370_v23, %v12369_v47  ;;  %v12373_v47 = vld [vmem:[#allocation272_spill] sm:$0xff]  ;;  %v12374_v23 = vld [vmem:[#allocation270_spill] sm:$0xff] }
 0x34b   :  { %v10023_v32 = vpop.permute.xlu1 %6015  ;;  %v10025_v40 = vpop.permute.xlu0 %6077  ;;  %v10052_v34 = vrot.slane %v5169_v9, %v7361_v51 }
 0x34c   :  { %12365 = vst [vmem:[#allocation157_spill] sm:$0xff] %v10023_v32  ;;  %12366 = vst [vmem:[#allocation156_spill] sm:$0xff] %v10025_v40  ;;  %v5209_v39 = vrot.slane %v5201_v0, %v7361_v51  ;;  %v12375_v32 = vld [vmem:[#allocation276_spill] sm:$0xff]  ;;  %v5098_v0 = vcombine.high %v9892_v1, %v9895_v18 }
 0x34d   :  { %6259 = vrot.lane.b32.xlu1 %v4417_v29, %s7213_s15  ;;  %6321 = vrot.lane.b32.xlu0 %v4282_v21, %s7214_s16  ;;  %v4905_v29 = vrot.slane %v4897_v45, %v7361_v51  ;;  %v4937_v21 = vrot.slane %v4929_v55, %v7361_v51  ;;  %v4826_v45 = vcombine.high %v9881_v59, %v9884_v62 }
 0x34e   :  { %v5233_v9 = vcombine.low %v10052_v34, %v5209_v39 }
 0x34f   :  { %v10039_v37 = vpop.permute.xlu1 %6019  ;;  %v10041_v57 = vpop.permute.xlu0 %6081  ;;  %v4961_v55 = vcombine.low %v4905_v29, %v4937_v21 }
 0x350   :  { %12371 = vst [vmem:[#allocation207_spill] sm:$0xff] %v10039_v37  ;;  %12372 = vst [vmem:[#allocation206_spill] sm:$0xff] %v10041_v57  ;;  %v5441_v37 = vcombine.low %v12374_v23, %v12373_v47  ;;  %v12376_v57 = vld [vmem:[#allocation274_spill] sm:$0xff] }
 0x351   :  { %6263 = vrot.lane.b32.xlu1 %v4689_v35, %s7213_s15  ;;  %6325 = vrot.lane.b32.xlu0 %v4554_v16, %s7214_s16  ;;  %v5473_v40 = vcombine.low %v12376_v57, %v12375_v32  ;;  %v12378_v35 = vld [vmem:[#allocation304_spill] sm:$0xff]  ;;  %v12379_v16 = vld [vmem:[#allocation302_spill] sm:$0xff]  ;;  %v5745_v57 = vcombine.low %v9203_v44, %v9215_v3  ;;  %v5370_v44 = vcombine.high %v9923_v4, %v9926_v28 }
 0x352   :  { %v5713_v32 = vcombine.low %v12379_v16, %v12378_v35  ;;  %v5449_v59 = vrot.slane %v5441_v37, %v7361_v51  ;;  %v3874_v35 = vcombine.high %v9955_v46, %v9968_v17  ;;  %v12386_v16 = vld [vmem:[#allocation18_spill] sm:$0xff]  ;;  %v12392_v46 = vld [vmem:[#allocation61_spill] sm:$0xff] }
 0x353   :  { %v10059_v58 = vpop.permute.xlu1 %6023  ;;  %v10061_v52 = vpop.permute.xlu0 %6085  ;;  %v5481_v62 = vrot.slane %v5473_v40, %v7361_v51 }
 0x354   :  { %12377 = vst [vmem:[#allocation201_spill] sm:$0xff] %v10059_v58  ;;  %v5721_v3 = vrot.slane %v5713_v32, %v7361_v51  ;;  %v12387_v32 = vld [vmem:[#allocation19_spill] sm:$0xff] }
 0x355   :  { %6267 = vrot.lane.b32.xlu1 %v4961_v55, %s7213_s15  ;;  %6329 = vrot.lane.b32.xlu0 %v4826_v45, %s7214_s16  ;;  %v5505_v18 = vcombine.low %v5449_v59, %v5481_v62  ;;  %v5753_v45 = vrot.slane %v5745_v57, %v7361_v51  ;;  %v12388_v57 = vcombine.low %v12386_v16, %v12387_v32 }
 0x357   :  { %v10074_v47 = vpop.permute.xlu1 %6059  ;;  %v10076_v23 = vpop.permute.xlu0 %6121 }
 0x358   :  { %12380 = vst [vmem:[#allocation200_spill] sm:$0xff] %v10074_v47  ;;  %v12410_v47 = vld [vmem:[#allocation232_spill] sm:$0xff] }
 0x359   :  { %6271 = vrot.lane.b32.xlu1 %v5233_v9, %s7213_s15  ;;  %6333 = vrot.lane.b32.xlu0 %v5098_v0, %s7214_s16  ;;  %v5777_v9 = vcombine.low %v5721_v3, %v5753_v45  ;;  %v5642_v0 = vcombine.high %v9944_v63, %v9947_v13 }
 0x35b   :  { %v10082_v55 = vpop.permute.xlu1 %6063  ;;  %v10084_v1 = vpop.permute.xlu0 %6125 }
 0x35c   :  { %12381 = vst [vmem:[#allocation243_spill] sm:$0xff] %v10082_v55 }
 0x35d   :  { %6275 = vrot.lane.b32.xlu1 %v5505_v18, %s7213_s15  ;;  %6337 = vrot.lane.b32.xlu0 %v5370_v44, %s7214_s16  ;;  %v4146_v18 = vcombine.high %v9988_v61, %v9991_v20  ;;  %v12391_v44 = vld [vmem:[#allocation59_spill] sm:$0xff] }
 0x35e   :  { %v12393_v17 = vcombine.low %v12391_v44, %v12392_v46 }
 0x35f   :  { %v10092_v40 = vpop.permute.xlu1 %6067  ;;  %v10094_v37 = vpop.permute.xlu0 %6129 }
 0x360   :  { %12382 = vst [vmem:[#allocation242_spill] sm:$0xff] %v10092_v40  ;;  %12383 = vst [vmem:[#allocation22_spill] sm:$0xff] %v10094_v37  ;;  %v4962_v40 = vcombine.high %v4905_v29, %v4937_v21 }
 0x361   :  { %6279 = vrot.lane.b32.xlu1 %v5777_v9, %s7213_s15  ;;  %6341 = vrot.lane.b32.xlu0 %v5642_v0, %s7214_s16 }
 0x363   :  { %v10100_v4 = vpop.permute.xlu1 %6071  ;;  %v10102_v28 = vpop.permute.xlu0 %6133 }
 0x364   :  { %12384 = vst [vmem:[#allocation21_spill] sm:$0xff] %v10100_v4  ;;  %12385 = vst [vmem:[#allocation64_spill] sm:$0xff] %v10102_v28  ;;  %v12402_v4 = vld [vmem:[#allocation145_spill] sm:$0xff]  ;;  %v12456_v28 = vld [vmem:[#allocation12_spill] sm:$0xff] }
 0x365   :  { %6315 = vrot.lane.b32.xlu1 %v3874_v35, %s7214_s16  ;;  %6377 = vrot.lane.b32.xlu0 %v12388_v57, %s7215_s17  ;;  %v4418_v35 = vcombine.high %v9996_v19, %v9999_v22  ;;  %v12396_v57 = vld [vmem:[#allocation101_spill] sm:$0xff] }
 0x367   :  { %v10111_v63 = vpop.permute.xlu1 %6075  ;;  %v10113_v13 = vpop.permute.xlu0 %6137 }
 0x368   :  { %12389 = vst [vmem:[#allocation63_spill] sm:$0xff] %v10111_v63  ;;  %12390 = vst [vmem:[#allocation106_spill] sm:$0xff] %v10113_v13  ;;  %v12397_v63 = vld [vmem:[#allocation103_spill] sm:$0xff]  ;;  %v12432_v13 = vcombine.high %v12391_v44, %v12392_v46  ;;  %v12442_v44 = vld [vmem:[#allocation166_spill] sm:$0xff] }
 0x369   :  { %6319 = vrot.lane.b32.xlu1 %v4146_v18, %s7214_s16  ;;  %6381 = vrot.lane.b32.xlu0 %v12393_v17, %s7215_s17  ;;  %v12398_v61 = vcombine.low %v12396_v57, %v12397_v63  ;;  %v4690_v17 = vcombine.high %v10028_v24, %v10031_v31 }
 0x36b   :  { %v10122_v9 = vpop.permute.xlu1 %6079  ;;  %v10124_v0 = vpop.permute.xlu0 %6141 }
 0x36c   :  { %12394 = vst [vmem:[#allocation105_spill] sm:$0xff] %v10122_v9  ;;  %12395 = vst [vmem:[#allocation149_spill] sm:$0xff] %v10124_v0  ;;  %v12401_v9 = vld [vmem:[#allocation143_spill] sm:$0xff] }
 0x36d   :  { %6323 = vrot.lane.b32.xlu1 %v4418_v35, %s7214_s16  ;;  %6385 = vrot.lane.b32.xlu0 %v12398_v61, %s7215_s17  ;;  %v12403_v19 = vcombine.low %v12401_v9, %v12402_v4  ;;  %v12405_v61 = vld [vmem:[#allocation186_spill] sm:$0xff]  ;;  %v12424_v0 = vld [vmem:[#allocation39_spill] sm:$0xff] }
 0x36f   :  { %v10133_v20 = vpop.permute.xlu1 %6083  ;;  %v10135_v18 = vpop.permute.xlu0 %6145 }
 0x370   :  { %12399 = vst [vmem:[#allocation148_spill] sm:$0xff] %v10133_v20  ;;  %12400 = vst [vmem:[#allocation195_spill] sm:$0xff] %v10135_v18  ;;  %v12406_v20 = vld [vmem:[#allocation189_spill] sm:$0xff] }
 0x371   :  { %6327 = vrot.lane.b32.xlu1 %v4690_v17, %s7214_s16  ;;  %6389 = vrot.lane.b32.xlu0 %v12403_v19, %s7215_s17  ;;  %v12407_v55 = vcombine.low %v12405_v61, %v12406_v20  ;;  %v5234_v17 = vcombine.high %v10052_v34, %v5209_v39  ;;  %v12409_v19 = vld [vmem:[#allocation230_spill] sm:$0xff] }
 0x373   :  { %v10144_v22 = vpop.permute.xlu1 %6087  ;;  %v10146_v35 = vpop.permute.xlu0 %6149 }
 0x374   :  { %12404 = vst [vmem:[#allocation193_spill] sm:$0xff] %v10144_v22  ;;  %v12411_v22 = vcombine.low %v12409_v19, %v12410_v47 }
 0x375   :  { %6331 = vrot.lane.b32.xlu1 %v4962_v40, %s7214_s16  ;;  %6393 = vrot.lane.b32.xlu0 %v12407_v55, %s7215_s17  ;;  %v5506_v40 = vcombine.high %v5449_v59, %v5481_v62  ;;  %v12413_v55 = vld [vmem:[#allocation264_spill] sm:$0xff] }
 0x377   :  { %v10153_v24 = vpop.permute.xlu1 %6123  ;;  %v10155_v31 = vpop.permute.xlu0 %6185 }
 0x378   :  { %12408 = vst [vmem:[#allocation237_spill] sm:$0xff] %v10153_v24  ;;  %v12414_v24 = vld [vmem:[#allocation266_spill] sm:$0xff] }
 0x379   :  { %6335 = vrot.lane.b32.xlu1 %v5234_v17, %s7214_s16  ;;  %6397 = vrot.lane.b32.xlu0 %v12411_v22, %s7215_s17  ;;  %v12415_v58 = vcombine.low %v12413_v55, %v12414_v24  ;;  %v5778_v17 = vcombine.high %v5721_v3, %v5753_v45  ;;  %v12418_v22 = vld [vmem:[#allocation294_spill] sm:$0xff]  ;;  %v12426_v3 = vcombine.high %v12386_v16, %v12387_v32  ;;  %v12435_v16 = vld [vmem:[#allocation121_spill] sm:$0xff]  ;;  %v12436_v32 = vld [vmem:[#allocation123_spill] sm:$0xff] }
 0x37b   :  { %v10163_v29 = vpop.permute.xlu1 %6127  ;;  %v10165_v21 = vpop.permute.xlu0 %6189 }
 0x37c   :  { %12412 = vst [vmem:[#allocation235_spill] sm:$0xff] %v10163_v29  ;;  %v12419_v29 = vld [vmem:[#allocation295_spill] sm:$0xff] }
 0x37d   :  { %6339 = vrot.lane.b32.xlu1 %v5506_v40, %s7214_s16  ;;  %6401 = vrot.lane.b32.xlu0 %v12415_v58, %s7215_s17  ;;  %v12420_v18 = vcombine.low %v12418_v22, %v12419_v29  ;;  %v12423_v40 = vld [vmem:[#allocation37_spill] sm:$0xff] }
 0x37e   :  { %v12425_v58 = vcombine.low %v12423_v40, %v12424_v0 }
 0x37f   :  { %v10172_v34 = vpop.permute.xlu1 %6131  ;;  %v10174_v39 = vpop.permute.xlu0 %6193 }
 0x380   :  { %12416 = vst [vmem:[#allocation301_spill] sm:$0xff] %v10172_v34  ;;  %12417 = vst [vmem:[#allocation299_spill] sm:$0xff] %v10174_v39  ;;  %v12461_v39 = vld [vmem:[#allocation278_spill] sm:$0xff] }
 0x381   :  { %6343 = vrot.lane.b32.xlu1 %v5778_v17, %s7214_s16  ;;  %6405 = vrot.lane.b32.xlu0 %v12420_v18, %s7215_s17  ;;  %v12429_v18 = vld [vmem:[#allocation79_spill] sm:$0xff]  ;;  %v12463_v37 = vcombine.low %v12461_v39, %v12462_v33 }
 0x383   :  { %v10181_v59 = vpop.permute.xlu1 %6135  ;;  %v10183_v62 = vpop.permute.xlu0 %6197 }
 0x384   :  { %12421 = vst [vmem:[#allocation44_spill] sm:$0xff] %v10181_v59  ;;  %12422 = vst [vmem:[#allocation43_spill] sm:$0xff] %v10183_v62  ;;  %v12430_v59 = vld [vmem:[#allocation81_spill] sm:$0xff] }
 0x385   :  { %6379 = vrot.lane.b32.xlu1 %v12425_v58, %s7215_s17  ;;  %6441 = vrot.lane.b32.xlu0 %v12426_v3, %s7216_s18  ;;  %v12431_v34 = vcombine.low %v12429_v18, %v12430_v59  ;;  %v12437_v3 = vcombine.low %v12435_v16, %v12436_v32 }
 0x387   :  { %v10193_v45 = vpop.permute.xlu1 %6139  ;;  %v10195_v17 = vpop.permute.xlu0 %6201 }
 0x388   :  { %12427 = vst [vmem:[#allocation86_spill] sm:$0xff] %v10193_v45  ;;  %12428 = vst [vmem:[#allocation85_spill] sm:$0xff] %v10195_v17  ;;  %v12438_v45 = vcombine.high %v12396_v57, %v12397_v63  ;;  %v12446_v63 = vld [vmem:[#allocation208_spill] sm:$0xff]  ;;  %v12447_v57 = vld [vmem:[#allocation211_spill] sm:$0xff] }
 0x389   :  { %6383 = vrot.lane.b32.xlu1 %v12431_v34, %s7215_s17  ;;  %6445 = vrot.lane.b32.xlu0 %v12432_v13, %s7216_s18  ;;  %v12441_v13 = vld [vmem:[#allocation164_spill] sm:$0xff] }
 0x38a   :  { %v12443_v46 = vcombine.low %v12441_v13, %v12442_v44 }
 0x38b   :  { %v10205_v58 = vpop.permute.xlu1 %6143  ;;  %v10207_v62 = vpop.permute.xlu0 %6205 }
 0x38c   :  { %12433 = vst [vmem:[#allocation128_spill] sm:$0xff] %v10205_v58  ;;  %12434 = vst [vmem:[#allocation127_spill] sm:$0xff] %v10207_v62  ;;  %v12444_v58 = vcombine.high %v12401_v9, %v12402_v4  ;;  %v12451_v4 = vld [vmem:[#allocation248_spill] sm:$0xff]  ;;  %v12452_v9 = vld [vmem:[#allocation250_spill] sm:$0xff] }
 0x38d   :  { %6387 = vrot.lane.b32.xlu1 %v12437_v3, %s7215_s17  ;;  %6449 = vrot.lane.b32.xlu0 %v12438_v45, %s7216_s18  ;;  %v12448_v45 = vcombine.low %v12446_v63, %v12447_v57 }
 0x38f   :  { %v10217_v34 = vpop.permute.xlu1 %6147  ;;  %v10219_v17 = vpop.permute.xlu0 %6209 }
 0x390   :  { %12439 = vst [vmem:[#allocation171_spill] sm:$0xff] %v10217_v34  ;;  %12440 = vst [vmem:[#allocation170_spill] sm:$0xff] %v10219_v17  ;;  %v12449_v34 = vcombine.high %v12405_v61, %v12406_v20  ;;  %v12459_v61 = vld [vmem:[#allocation8_spill] sm:$0xff] }
 0x391   :  { %6391 = vrot.lane.b32.xlu1 %v12443_v46, %s7215_s17  ;;  %6453 = vrot.lane.b32.xlu0 %v12444_v58, %s7216_s18  ;;  %v12453_v58 = vcombine.low %v12451_v4, %v12452_v9 }
 0x393   :  { %v10229_v3 = vpop.permute.xlu1 %6151  ;;  %v10231_v62 = vpop.permute.xlu0 %6213 }
 0x394   :  { %12445 = vst [vmem:[#allocation217_spill] sm:$0xff] %v10229_v3  ;;  %v12454_v3 = vcombine.high %v12409_v19, %v12410_v47  ;;  %v12464_v47 = vcombine.high %v12413_v55, %v12414_v24  ;;  %v12465_v19 = vld [vmem:[#allocation50_spill] sm:$0xff]  ;;  %v12472_v24 = vcombine.high %v12418_v22, %v12419_v29  ;;  %v12479_v22 = vcombine.high %v12423_v40, %v12424_v0 }
 0x395   :  { %6395 = vrot.lane.b32.xlu1 %v12448_v45, %s7215_s17  ;;  %6457 = vrot.lane.b32.xlu0 %v12449_v34, %s7216_s18  ;;  %v12455_v45 = vld [vmem:[#allocation14_spill] sm:$0xff]  ;;  %v12486_v40 = vcombine.high %v12429_v18, %v12430_v59  ;;  %v12493_v18 = vcombine.high %v12435_v16, %v12436_v32  ;;  %v12500_v32 = vcombine.high %v12441_v13, %v12442_v44 }
 0x396   :  { %v3721_v7 = vcombine.low %v12456_v28, %v12455_v45  ;;  %v12460_v34 = vld [vmem:[#allocation6_spill] sm:$0xff]  ;;  %v12506_v44 = vcombine.high %v12446_v63, %v12447_v57  ;;  %v12512_v57 = vcombine.high %v12451_v4, %v12452_v9  ;;  %v12519_v9 = vcombine.high %v12461_v39, %v12462_v33 }
 0x397   :  { %v10241_v46 = vpop.permute.xlu1 %6187  ;;  %v10243_v17 = vpop.permute.xlu0 %6249  ;;  %v12468_v45 = vld [vmem:[#allocation54_spill] sm:$0xff]  ;;  %v12528_v39 = vcombine.high %v9237_v15, %v9243_v60 }
 0x398   :  { %12450 = vst [vmem:[#allocation215_spill] sm:$0xff] %v10241_v46  ;;  %v3689_v46 = vcombine.low %v12460_v34, %v12459_v61  ;;  %v10278_v61 = vrot.slane %v3721_v7, %v7361_v51  ;;  %v12473_v34 = vld [vmem:[#allocation92_spill] sm:$0xff] }
 0x399   :  { %6399 = vrot.lane.b32.xlu1 %v12453_v58, %s7215_s17  ;;  %6461 = vrot.lane.b32.xlu0 %v12454_v3, %s7216_s18  ;;  %v12466_v3 = vld [vmem:[#allocation48_spill] sm:$0xff] }
 0x39a   :  { %v3961_v28 = vcombine.low %v12466_v3, %v12465_v19  ;;  %v12467_v58 = vld [vmem:[#allocation56_spill] sm:$0xff]  ;;  %v10289_v55 = vrot.slane %v3689_v46, %v7361_v51  ;;  %v12475_v3 = vld [vmem:[#allocation98_spill] sm:$0xff] }
 0x39b   :  { %v10255_v25 = vpop.permute.xlu1 %6191  ;;  %v10257_v20 = vpop.permute.xlu0 %6253 }
 0x39c   :  { %12457 = vst [vmem:[#allocation253_spill] sm:$0xff] %v10255_v25  ;;  %12458 = vst [vmem:[#allocation252_spill] sm:$0xff] %v10257_v20  ;;  %v3993_v25 = vcombine.low %v12468_v45, %v12467_v58  ;;  %v12476_v58 = vld [vmem:[#allocation96_spill] sm:$0xff] }
 0x39d   :  { %6403 = vrot.lane.b32.xlu1 %v12463_v37, %s7215_s17  ;;  %6465 = vrot.lane.b32.xlu0 %v12464_v47, %s7216_s18  ;;  %v12471_v37 = vcombine.low %v9237_v15, %v9243_v60  ;;  %v12474_v47 = vld [vmem:[#allocation90_spill] sm:$0xff]  ;;  %v4265_v7 = vcombine.low %v12476_v58, %v12475_v3  ;;  %v12482_v3 = vld [vmem:[#allocation140_spill] sm:$0xff] }
 0x39e   :  { %v4233_v19 = vcombine.low %v12474_v47, %v12473_v34  ;;  %v10305_v29 = vrot.slane %v3993_v25, %v7361_v51  ;;  %v12480_v34 = vld [vmem:[#allocation134_spill] sm:$0xff] }
 0x39f   :  { %v10273_v12 = vpop.permute.xlu1 %6195  ;;  %v10275_v56 = vpop.permute.xlu0 %6257  ;;  %v12483_v25 = vld [vmem:[#allocation138_spill] sm:$0xff] }
 0x3a0   :  { %12469 = vst [vmem:[#allocation13_spill] sm:$0xff] %v10273_v12  ;;  %12470 = vst [vmem:[#allocation11_spill] sm:$0xff] %v10275_v56  ;;  %v10302_v56 = vrot.slane %v3961_v28, %v7361_v51  ;;  %v10313_v46 = vrot.slane %v4233_v19, %v7361_v51  ;;  %v12481_v28 = vld [vmem:[#allocation132_spill] sm:$0xff]  ;;  %v4537_v58 = vcombine.low %v12483_v25, %v12482_v3 }
 0x3a1   :  { %6407 = vrot.lane.b32.xlu1 %v12471_v37, %s7215_s17  ;;  %6469 = vrot.lane.b32.xlu0 %v12472_v24, %s7216_s18  ;;  %v3741_v37 = vcombine.low %v10289_v55, %v10278_v61  ;;  %v10316_v24 = vrot.slane %v4265_v7, %v7361_v51  ;;  %v4505_v47 = vcombine.low %v12481_v28, %v12480_v34  ;;  %v12487_v7 = vld [vmem:[#allocation177_spill] sm:$0xff]  ;;  %v12489_v34 = vld [vmem:[#allocation183_spill] sm:$0xff] }
 0x3a2   :  { %v4013_v0 = vcombine.low %v10302_v56, %v10305_v29  ;;  %v12490_v28 = vld [vmem:[#allocation181_spill] sm:$0xff]  ;;  %v10347_v59 = vrot.slane %v4537_v58, %v7361_v51 }
 0x3a3   :  { %v10295_v45 = vpop.permute.xlu1 %6199  ;;  %v10297_v12 = vpop.permute.xlu0 %6261  ;;  %v4285_v19 = vcombine.low %v10313_v46, %v10316_v24  ;;  %v4809_v3 = vcombine.low %v12490_v28, %v12489_v34  ;;  %v12497_v34 = vld [vmem:[#allocation225_spill] sm:$0xff] }
 0x3a4   :  { %12477 = vst [vmem:[#allocation7_spill] sm:$0xff] %v10295_v45  ;;  %12478 = vst [vmem:[#allocation5_spill] sm:$0xff] %v10297_v12 }
 0x3a5   :  { %6443 = vrot.lane.b32.xlu1 %v12479_v22, %s7216_s18  ;;  %6505 = vrot.lane.b32.xlu0 %v3741_v37, %s7217_s19  ;;  %v12488_v37 = vld [vmem:[#allocation175_spill] sm:$0xff]  ;;  %v10368_v16 = vrot.slane %v4809_v3, %v7361_v51 }
 0x3a6   :  { %v4777_v22 = vcombine.low %v12488_v37, %v12487_v7  ;;  %v12496_v37 = vld [vmem:[#allocation227_spill] sm:$0xff] }
 0x3a7   :  { %v10322_v45 = vpop.permute.xlu1 %6203  ;;  %v10324_v12 = vpop.permute.xlu0 %6265  ;;  %v5081_v28 = vcombine.low %v12497_v34, %v12496_v37  ;;  %v12503_v37 = vld [vmem:[#allocation263_spill] sm:$0xff]  ;;  %v12504_v34 = vld [vmem:[#allocation261_spill] sm:$0xff] }
 0x3a8   :  { %12484 = vst [vmem:[#allocation285_spill] sm:$0xff] %v10322_v45  ;;  %12485 = vst [vmem:[#allocation283_spill] sm:$0xff] %v10324_v12  ;;  %v10344_v12 = vrot.slane %v4505_v47, %v7361_v51  ;;  %v5353_v3 = vcombine.low %v12504_v34, %v12503_v37 }
 0x3a9   :  { %6447 = vrot.lane.b32.xlu1 %v12486_v40, %s7216_s18  ;;  %6509 = vrot.lane.b32.xlu0 %v4013_v0, %s7217_s19  ;;  %v12494_v0 = vld [vmem:[#allocation221_spill] sm:$0xff]  ;;  %v12495_v40 = vld [vmem:[#allocation219_spill] sm:$0xff] }
 0x3aa   :  { %v5049_v7 = vcombine.low %v12495_v40, %v12494_v0  ;;  %v4557_v58 = vcombine.low %v10344_v12, %v10347_v59  ;;  %v12501_v0 = vld [vmem:[#allocation259_spill] sm:$0xff]  ;;  %v12502_v40 = vld [vmem:[#allocation257_spill] sm:$0xff]  ;;  %v10410_v63 = vrot.slane %v5353_v3, %v7361_v51 }
 0x3ab   :  { %v10339_v25 = vpop.permute.xlu1 %6207  ;;  %v10341_v45 = vpop.permute.xlu0 %6269 }
 0x3ac   :  { %12491 = vst [vmem:[#allocation49_spill] sm:$0xff] %v10339_v25  ;;  %12492 = vst [vmem:[#allocation47_spill] sm:$0xff] %v10341_v45  ;;  %v10365_v45 = vrot.slane %v4777_v22, %v7361_v51  ;;  %v5321_v22 = vcombine.low %v12502_v40, %v12501_v0  ;;  %v12509_v0 = vld [vmem:[#allocation293_spill] sm:$0xff]  ;;  %v12510_v40 = vld [vmem:[#allocation291_spill] sm:$0xff] }
 0x3ad   :  { %6451 = vrot.lane.b32.xlu1 %v12493_v18, %s7216_s18  ;;  %6513 = vrot.lane.b32.xlu0 %v4285_v19, %s7217_s19  ;;  %v10376_v19 = vrot.slane %v5049_v7, %v7361_v51  ;;  %v10379_v18 = vrot.slane %v5081_v28, %v7361_v51  ;;  %v12507_v28 = vld [vmem:[#allocation289_spill] sm:$0xff]  ;;  %v5625_v37 = vcombine.low %v12510_v40, %v12509_v0  ;;  %v12516_v0 = vld [vmem:[#allocation32_spill] sm:$0xff] }
 0x3ae   :  { %v4829_v13 = vcombine.low %v10365_v45, %v10368_v16  ;;  %v10407_v54 = vrot.slane %v5321_v22, %v7361_v51 }
 0x3af   :  { %v10358_v25 = vpop.permute.xlu1 %6211  ;;  %v10360_v47 = vpop.permute.xlu0 %6273  ;;  %v5101_v7 = vcombine.low %v10376_v19, %v10379_v18  ;;  %v10431_v4 = vrot.slane %v5625_v37, %v7361_v51 }
 0x3b0   :  { %12498 = vst [vmem:[#allocation55_spill] sm:$0xff] %v10358_v25  ;;  %12499 = vst [vmem:[#allocation53_spill] sm:$0xff] %v10360_v47  ;;  %v5373_v3 = vcombine.low %v10407_v54, %v10410_v63 }
 0x3b1   :  { %6455 = vrot.lane.b32.xlu1 %v12500_v32, %s7216_s18  ;;  %6517 = vrot.lane.b32.xlu0 %v4557_v58, %s7217_s19  ;;  %v12508_v58 = vld [vmem:[#allocation287_spill] sm:$0xff] }
 0x3b2   :  { %v5593_v32 = vcombine.low %v12508_v58, %v12507_v28  ;;  %v12515_v58 = vld [vmem:[#allocation34_spill] sm:$0xff] }
 0x3b3   :  { %v10385_v25 = vpop.permute.xlu1 %6215  ;;  %v10387_v47 = vpop.permute.xlu0 %6277  ;;  %v3857_v40 = vcombine.low %v12516_v0, %v12515_v58  ;;  %v12524_v58 = vld [vmem:[#allocation76_spill] sm:$0xff]  ;;  %v12525_v0 = vld [vmem:[#allocation74_spill] sm:$0xff] }
 0x3b4   :  { %12505 = vst [vmem:[#allocation91_spill] sm:$0xff] %v10385_v25  ;;  %v10428_v20 = vrot.slane %v5593_v32, %v7361_v51  ;;  %v4129_v37 = vcombine.low %v12525_v0, %v12524_v58  ;;  %v12532_v58 = vld [vmem:[#allocation116_spill] sm:$0xff] }
 0x3b5   :  { %6459 = vrot.lane.b32.xlu1 %v12506_v44, %s7216_s18  ;;  %6521 = vrot.lane.b32.xlu0 %v4829_v13, %s7217_s19  ;;  %v12513_v13 = vld [vmem:[#allocation28_spill] sm:$0xff]  ;;  %v12514_v44 = vld [vmem:[#allocation26_spill] sm:$0xff] }
 0x3b6   :  { %v3825_v28 = vcombine.low %v12514_v44, %v12513_v13  ;;  %v12522_v13 = vld [vmem:[#allocation70_spill] sm:$0xff]  ;;  %v12523_v44 = vld [vmem:[#allocation68_spill] sm:$0xff]  ;;  %v5645_v33 = vcombine.low %v10428_v20, %v10431_v4  ;;  %v10475_v60 = vrot.slane %v4129_v37, %v7361_v51 }
 0x3b7   :  { %v10402_v34 = vpop.permute.xlu1 %6251  ;;  %v10404_v25 = vpop.permute.xlu0 %6313  ;;  %v4097_v32 = vcombine.low %v12523_v44, %v12522_v13  ;;  %v12531_v44 = vld [vmem:[#allocation118_spill] sm:$0xff] }
 0x3b8   :  { %12511 = vst [vmem:[#allocation89_spill] sm:$0xff] %v10402_v34  ;;  %v4401_v0 = vcombine.low %v12532_v58, %v12531_v44  ;;  %v12541_v58 = vld [vmem:[#allocation205_spill] sm:$0xff] }
 0x3b9   :  { %6463 = vrot.lane.b32.xlu1 %v12512_v57, %s7216_s18  ;;  %6525 = vrot.lane.b32.xlu0 %v5101_v7, %s7217_s19  ;;  %v10439_v7 = vrot.slane %v3825_v28, %v7361_v51  ;;  %v10442_v57 = vrot.slane %v3857_v40, %v7361_v51  ;;  %v3742_v40 = vcombine.high %v10289_v55, %v10278_v61  ;;  %v12537_v61 = vld [vmem:[#allocation161_spill] sm:$0xff]  ;;  %v12538_v55 = vld [vmem:[#allocation159_spill] sm:$0xff] }
 0x3ba   :  { %v10472_v15 = vrot.slane %v4097_v32, %v7361_v51  ;;  %v12542_v32 = vld [vmem:[#allocation203_spill] sm:$0xff] }
 0x3bb   :  { %v10421_v34 = vpop.permute.xlu1 %6255  ;;  %v10423_v22 = vpop.permute.xlu0 %6317  ;;  %12520 = vst [vmem:[#allocation133_spill] sm:$0xff] %v10439_v7  ;;  %12521 = vst [vmem:[#allocation131_spill] sm:$0xff] %v10442_v57  ;;  %v3877_v28 = vcombine.low %v10439_v7, %v10442_v57  ;;  %v4673_v57 = vcombine.low %v12538_v55, %v12537_v61 }
 0x3bc   :  { %12517 = vst [vmem:[#allocation97_spill] sm:$0xff] %v10421_v34  ;;  %12518 = vst [vmem:[#allocation95_spill] sm:$0xff] %v10423_v22 }
 0x3bd   :  { %6467 = vrot.lane.b32.xlu1 %v12519_v9, %s7216_s18  ;;  %6529 = vrot.lane.b32.xlu0 %v5373_v3, %s7217_s19  ;;  %v12529_v3 = vld [vmem:[#allocation112_spill] sm:$0xff]  ;;  %v12530_v9 = vld [vmem:[#allocation110_spill] sm:$0xff]  ;;  %v10507_v55 = vrot.slane %v4673_v57, %v7361_v51  ;;  %v4286_v57 = vcombine.high %v10313_v46, %v10316_v24  ;;  %v4830_v24 = vcombine.high %v10365_v45, %v10368_v16 }
 0x3be   :  { %v4369_v13 = vcombine.low %v12530_v9, %v12529_v3  ;;  %v12539_v3 = vld [vmem:[#allocation199_spill] sm:$0xff]  ;;  %v12540_v9 = vld [vmem:[#allocation197_spill] sm:$0xff] }
 0x3bf   :  { %v10448_v34 = vpop.permute.xlu1 %6259  ;;  %v10450_v22 = vpop.permute.xlu0 %6321  ;;  %v4913_v44 = vcombine.low %v12540_v9, %v12539_v3 }
 0x3c0   :  { %12526 = vst [vmem:[#allocation139_spill] sm:$0xff] %v10448_v34  ;;  %12527 = vst [vmem:[#allocation137_spill] sm:$0xff] %v10450_v22 }
 0x3c1   :  { %6471 = vrot.lane.b32.xlu1 %v12528_v39, %s7216_s18  ;;  %6533 = vrot.lane.b32.xlu0 %v5645_v33, %s7217_s19  ;;  %v12535_v33 = vld [vmem:[#allocation155_spill] sm:$0xff]  ;;  %v12536_v39 = vld [vmem:[#allocation153_spill] sm:$0xff]  ;;  %v10510_v3 = vrot.slane %v4913_v44, %v7361_v51 }
 0x3c2   :  { %v4641_v7 = vcombine.low %v12536_v39, %v12535_v33  ;;  %v4149_v33 = vcombine.low %v10472_v15, %v10475_v60  ;;  %v4014_v39 = vcombine.high %v10302_v56, %v10305_v29  ;;  %v12544_v29 = vld [vmem:[#allocation241_spill] sm:$0xff] }
 0x3c3   :  { %v10467_v34 = vpop.permute.xlu1 %6263  ;;  %v10469_v22 = vpop.permute.xlu0 %6325  ;;  %v12548_v44 = vld [vmem:[#allocation245_spill] sm:$0xff] }
 0x3c4   :  { %12533 = vst [vmem:[#allocation176_spill] sm:$0xff] %v10467_v34  ;;  %12534 = vst [vmem:[#allocation174_spill] sm:$0xff] %v10469_v22  ;;  %v4945_v34 = vcombine.low %v12542_v32, %v12541_v58  ;;  %v10504_v61 = vrot.slane %v4641_v7, %v7361_v51  ;;  %v12547_v32 = vld [vmem:[#allocation247_spill] sm:$0xff] }
 0x3c5   :  { %6507 = vrot.lane.b32.xlu1 %v3877_v28, %s7217_s19  ;;  %6569 = vrot.lane.b32.xlu0 %v3742_v40, %s7218_s20  ;;  %v10496_v28 = vrot.slane %v4369_v13, %v7361_v51  ;;  %v10499_v40 = vrot.slane %v4401_v0, %v7361_v51  ;;  %v12545_v13 = vld [vmem:[#allocation239_spill] sm:$0xff] }
 0x3c6   :  { %v10513_v56 = vrot.slane %v4945_v34, %v7361_v51  ;;  %v5185_v0 = vcombine.low %v12545_v13, %v12544_v29  ;;  %v12549_v34 = vld [vmem:[#allocation297_spill] sm:$0xff]  ;;  %v4558_v13 = vcombine.high %v10344_v12, %v10347_v59  ;;  %v4693_v46 = vcombine.low %v10504_v61, %v10507_v55 }
 0x3c7   :  { %v10487_v22 = vpop.permute.xlu1 %6267  ;;  %v10489_v37 = vpop.permute.xlu0 %6329  ;;  %v4421_v7 = vcombine.low %v10496_v28, %v10499_v40  ;;  %v12552_v59 = vld [vmem:[#allocation17_spill] sm:$0xff] }
 0x3c8   :  { %12543 = vst [vmem:[#allocation182_spill] sm:$0xff] %v10487_v22  ;;  %v4965_v12 = vcombine.low %v10510_v3, %v10513_v56  ;;  %v10560_v16 = vrot.slane %v5185_v0, %v7361_v51 }
 0x3c9   :  { %6511 = vrot.lane.b32.xlu1 %v4149_v33, %s7217_s19  ;;  %6573 = vrot.lane.b32.xlu0 %v4014_v39, %s7218_s20  ;;  %v5217_v33 = vcombine.low %v12548_v44, %v12547_v32  ;;  %v12550_v39 = vld [vmem:[#allocation298_spill] sm:$0xff] }
 0x3ca   :  { %v12551_v22 = vcombine.low %v12549_v34, %v12550_v39 }
 0x3cb   :  { %v10517_v9 = vpop.permute.xlu1 %6271  ;;  %v10519_v58 = vpop.permute.xlu0 %6333 }
 0x3cc   :  { %12546 = vst [vmem:[#allocation180_spill] sm:$0xff] %v10517_v9  ;;  %v6760_v29 = vsel %vm6745_vm0, %v12551_v22, %v9580_v43  ;;  %v12553_v22 = vld [vmem:[#allocation20_spill] sm:$0xff] }
 0x3cd   :  { %v6777_v9 = vsel %vm6762_vm1, %v6760_v29, %v9663_v49  ;;  %6515 = vrot.lane.b32.xlu1 %v4421_v7, %s7217_s19  ;;  %6577 = vrot.lane.b32.xlu0 %v4286_v57, %s7218_s20  ;;  %v5102_v49 = vcombine.high %v10376_v19, %v10379_v18  ;;  %v12554_v7 = vcombine.low %v12552_v59, %v12553_v22 }
 0x3ce   :  { %v6794_v43 = vsel %vm6779_vm2, %v6777_v9, %v9747_v6  ;;  %v12555_v9 = vld [vmem:[#allocation273_spill] sm:$0xff] }
 0x3cf   :  { %v6746_v57 = vsel %vm6745_vm0, %v12554_v7, %v9404_v48  ;;  %v6811_v32 = vsel %vm6796_vm3, %v6794_v43, %v9903_v26  ;;  %v10555_v45 = vpop.permute.xlu1 %6275  ;;  %v10557_v6 = vpop.permute.xlu0 %6337  ;;  %v10567_v48 = vrot.slane %v5217_v33, %v7361_v51  ;;  %v12556_v26 = vld [vmem:[#allocation271_spill] sm:$0xff]  ;;  %v12560_v43 = vld [vmem:[#allocation62_spill] sm:$0xff] }
 0x3d0   :  { %v6763_v19 = vsel %vm6762_vm1, %v6746_v57, %v9592_v10  ;;  %v6828_v18 = vsel %vm6813_vm4, %v6811_v32, %v10061_v52  ;;  %v5457_v44 = vcombine.low %v12556_v26, %v12555_v9  ;;  %v12557_v10 = vld [vmem:[#allocation277_spill] sm:$0xff]  ;;  %v12558_v52 = vld [vmem:[#allocation275_spill] sm:$0xff]  ;;  %v12566_v26 = vld [vmem:[#allocation104_spill] sm:$0xff] }
 0x3d1   :  { %v6780_v34 = vsel %vm6779_vm2, %v6763_v19, %v9672_v50  ;;  %v6845_v0 = vsel %vm6830_vm5, %v6828_v18, %v10146_v35  ;;  %6519 = vrot.lane.b32.xlu1 %v4693_v46, %s7217_s19  ;;  %6581 = vrot.lane.b32.xlu0 %v4558_v13, %s7218_s20  ;;  %v5489_v39 = vcombine.low %v12558_v52, %v12557_v10  ;;  %v12559_v50 = vld [vmem:[#allocation60_spill] sm:$0xff]  ;;  %v12563_v32 = vld [vmem:[#allocation303_spill] sm:$0xff] }
 0x3d2   :  { %v6797_v33 = vsel %vm6796_vm3, %v6780_v34, %v9759_v27  ;;  %v6862_v29 = vsel %vm6847_vm6, %v6845_v0, %v10231_v62  ;;  %v12561_v59 = vcombine.low %v12559_v50, %v12560_v43  ;;  %v12570_v50 = vld [vmem:[#allocation144_spill] sm:$0xff]  ;;  %v12571_v43 = vld [vmem:[#allocation146_spill] sm:$0xff] }
 0x3d3   :  { %v6814_v46 = vsel %vm6813_vm4, %v6797_v33, %v9920_v8  ;;  %v6879_v13 = vsel %vm6864_vm7, %v6862_v29, %v10387_v47  ;;  %v10592_v22 = vpop.permute.xlu1 %6279  ;;  %v6342_v27 = vpop.permute.xlu0 %6341  ;;  %v10619_v9 = vrot.slane %v5489_v39, %v7361_v51 }
 0x3d4   :  { %v6748_v35 = vsel %vm6745_vm0, %v12561_v59, %v9430_v11  ;;  %v6831_v7 = vsel %vm6830_vm5, %v6814_v46, %v10076_v23  ;;  %v10599_v57 = vsel %vm6881_vm8, %v6879_v13, %v6342_v27  ;;  %v5237_v11 = vcombine.low %v10560_v16, %v10567_v48  ;;  %v12562_v23 = vld [vmem:[#allocation305_spill] sm:$0xff] }
 0x3d5   :  { %v6765_v62 = vsel %vm6762_vm1, %v6748_v35, %v9604_v53  ;;  %v6848_v47 = vsel %vm6847_vm6, %v6831_v7, %v10155_v31  ;;  %6523 = vrot.lane.b32.xlu1 %v4965_v12, %s7217_s19  ;;  %6585 = vrot.lane.b32.xlu0 %v4830_v24, %s7218_s20  ;;  %v10610_v53 = vrot.slane %v5457_v44, %v7361_v51  ;;  %v12564_v31 = vld [vmem:[#allocation147_spill] sm:$0xff]  ;;  %v12565_v24 = vld [vmem:[#allocation102_spill] sm:$0xff] }
 0x3d6   :  { %v6782_v8 = vsel %vm6779_vm2, %v6765_v62, %v9681_v42  ;;  %v5729_v19 = vcombine.low %v12563_v32, %v12562_v23  ;;  %v6865_v42 = vsel %vm6864_vm7, %v6848_v47, %v10243_v17  ;;  %v5761_v12 = vcombine.low %v12564_v31, %v9218_v41  ;;  %v12573_v35 = vld [vmem:[#allocation119_spill] sm:$0xff]  ;;  %v12575_v62 = vld [vmem:[#allocation210_spill] sm:$0xff] }
 0x3d7   :  { %v6799_v18 = vsel %vm6796_vm3, %v6782_v8, %v9773_v36  ;;  %v12567_v44 = vcombine.low %v12565_v24, %v12566_v26  ;;  %v6882_v36 = vsel %vm6881_vm8, %v6865_v42, %v10404_v25  ;;  %v10632_v10 = vpop.permute.xlu1 %6315  ;;  %v6378_v17 = vpop.permute.xlu0 %6377  ;;  %v5374_v25 = vcombine.high %v10407_v54, %v10410_v63  ;;  %v12574_v63 = vld [vmem:[#allocation95_spill] sm:$0xff]  ;;  %v12577_v23 = vld [vmem:[#allocation94_spill] sm:$0xff] }
 0x3d8   :  { %v6816_v0 = vsel %vm6813_vm4, %v6799_v18, %v9939_v38  ;;  %v10639_v39 = vsel %vm6898_vm9, %v6882_v36, %v6378_v17  ;;  %v5509_v29 = vcombine.low %v10610_v53, %v10619_v9  ;;  %v12572_v59 = vcombine.low %v12570_v50, %v12571_v43  ;;  %v12580_v31 = vld [vmem:[#allocation11_spill] sm:$0xff]  ;;  %v12581_v26 = vld [vmem:[#allocation42_spill] sm:$0xff]  ;;  %v12585_v17 = vld [vmem:[#allocation113_spill] sm:$0xff] }
 0x3d9   :  { %v6750_v34 = vsel %vm6745_vm0, %v12567_v44, %v9459_v14  ;;  %v6833_v41 = vsel %vm6830_vm5, %v6816_v0, %v10084_v1  ;;  %6527 = vrot.lane.b32.xlu1 %v5237_v11, %s7217_s19  ;;  %6589 = vrot.lane.b32.xlu0 %v5102_v49, %s7218_s20  ;;  %v12568_v1 = vld [vmem:[#allocation252_spill] sm:$0xff]  ;;  %v10670_v27 = vrot.slane %v5761_v12, %v7361_v51  ;;  %v12576_v11 = vld [vmem:[#allocation22_spill] sm:$0xff]  ;;  %v12582_v44 = vld [vmem:[#allocation187_spill] sm:$0xff] }
 0x3da   :  { %v6767_v52 = vsel %vm6762_vm1, %v6750_v34, %v9614_v30  ;;  %v6850_v38 = vsel %vm6847_vm6, %v6833_v41, %v10165_v21  ;;  %v12569_v21 = vld [vmem:[#allocation41_spill] sm:$0xff]  ;;  %v5646_v24 = vcombine.high %v10428_v20, %v10431_v4  ;;  %v12583_v34 = vld [vmem:[#allocation191_spill] sm:$0xff]  ;;  %v12588_v4 = vld [vmem:[#allocation64_spill] sm:$0xff] }
 0x3db   :  { %v6784_v14 = vsel %vm6779_vm2, %v6767_v52, %v9690_v2  ;;  %v6867_v33 = vsel %vm6864_vm7, %v6850_v38, %v12568_v1  ;;  %v10656_v2 = vrot.slane %v5729_v19, %v7361_v51  ;;  %v6752_v49 = vsel %vm6745_vm0, %v12572_v59, %v12569_v21  ;;  %v10667_v46 = vpop.permute.xlu1 %6319  ;;  %v6382_v13 = vpop.permute.xlu0 %6381  ;;  %v12578_v19 = vld [vmem:[#allocation299_spill] sm:$0xff]  ;;  %v12586_v41 = vld [vmem:[#allocation137_spill] sm:$0xff]  ;;  %v12589_v21 = vld [vmem:[#allocation142_spill] sm:$0xff] }
 0x3dc   :  { %v6801_v30 = vsel %vm6796_vm3, %v6784_v14, %v9791_v5  ;;  %v6884_v5 = vsel %vm6881_vm8, %v6867_v33, %v12574_v63  ;;  %v6769_v7 = vsel %vm6762_vm1, %v6752_v49, %v12575_v62  ;;  %v12579_v51 = vld [vmem:[#allocation223_spill] sm:$0xff]  ;;  %v12584_v0 = vcombine.low %v12582_v44, %v12583_v34  ;;  %v12595_v62 = vld [vmem:[#allocation234_spill] sm:$0xff] }
 0x3dd   :  { %v6818_v54 = vsel %vm6813_vm4, %v6801_v30, %v12573_v35  ;;  %v10677_v47 = vsel %vm6898_vm9, %v6884_v5, %v6382_v13  ;;  %v6786_v32 = vsel %vm6779_vm2, %v6769_v7, %v12577_v23  ;;  %6531 = vrot.lane.b32.xlu1 %v5509_v29, %s7217_s19  ;;  %6593 = vrot.lane.b32.xlu0 %v5374_v25, %s7218_s20  ;;  %v12587_v1 = vld [vmem:[#allocation15_spill] sm:$0xff]  ;;  %v12602_v44 = vld [vmem:[#allocation106_spill] sm:$0xff] }
 0x3de   :  { %v6835_v8 = vsel %vm6830_vm5, %v6818_v54, %v12576_v11  ;;  %v6803_v42 = vsel %vm6796_vm3, %v6786_v32, %v12579_v51  ;;  %v6754_v36 = vsel %vm6745_vm0, %v12584_v0, %v12581_v26  ;;  %v5781_v30 = vcombine.low %v10656_v2, %v10670_v27  ;;  %v12590_v43 = vld [vmem:[#allocation43_spill] sm:$0xff]  ;;  %v12592_v54 = vld [vmem:[#allocation5_spill] sm:$0xff]  ;;  %v12598_v32 = vld [vmem:[#allocation174_spill] sm:$0xff] }
 0x3df   :  { %v6852_v18 = vsel %vm6847_vm6, %v6835_v8, %v12578_v19  ;;  %v6820_v52 = vsel %vm6813_vm4, %v6803_v42, %v12585_v17  ;;  %v10700_v38 = vpop.permute.xlu1 %6323  ;;  %v6386_v25 = vpop.permute.xlu0 %6385  ;;  %v6771_v20 = vsel %vm6762_vm1, %v6754_v36, %v12587_v1  ;;  %v12591_v49 = vld [vmem:[#allocation35_spill] sm:$0xff]  ;;  %v12597_v8 = vld [vmem:[#allocation162_spill] sm:$0xff]  ;;  %v12603_v36 = vld [vmem:[#allocation136_spill] sm:$0xff] }
 0x3e0   :  { %v6869_v12 = vsel %vm6864_vm7, %v6852_v18, %v12580_v31  ;;  %v6837_v33 = vsel %vm6830_vm5, %v6820_v52, %v12588_v4  ;;  %v6788_v50 = vsel %vm6779_vm2, %v6771_v20, %v12589_v21  ;;  %v12593_v5 = vld [vmem:[#allocation83_spill] sm:$0xff]  ;;  %v12600_v31 = vld [vmem:[#allocation133_spill] sm:$0xff] }
 0x3e1   :  { %v6886_v14 = vsel %vm6881_vm8, %v6869_v12, %v12586_v41  ;;  %v6854_v59 = vsel %vm6847_vm6, %v6837_v33, %v12590_v43  ;;  %6535 = vrot.lane.b32.xlu1 %v5781_v30, %s7217_s19  ;;  %6597 = vrot.lane.b32.xlu0 %v5646_v24, %s7218_s20  ;;  %v6805_v35 = vsel %vm6796_vm3, %v6788_v50, %v12591_v49  ;;  %v12594_v13 = vld [vmem:[#allocation231_spill] sm:$0xff]  ;;  %v12601_v24 = vld [vmem:[#allocation9_spill] sm:$0xff]  ;;  %v12612_v43 = vld [vmem:[#allocation268_spill] sm:$0xff] }
 0x3e2   :  { %v10709_v29 = vsel %vm6898_vm9, %v6886_v14, %v6386_v25  ;;  %v6871_v63 = vsel %vm6864_vm7, %v6854_v59, %v12592_v54  ;;  %v12596_v7 = vcombine.low %v12594_v13, %v12595_v62  ;;  %v6822_v23 = vsel %vm6813_vm4, %v6805_v35, %v12597_v8  ;;  %v12599_v42 = vld [vmem:[#allocation131_spill] sm:$0xff]  ;;  %v12604_v52 = vld [vmem:[#allocation85_spill] sm:$0xff]  ;;  %v12606_v25 = vld [vmem:[#allocation24_spill] sm:$0xff] }
 0x3e3   :  { %v6888_v19 = vsel %vm6881_vm8, %v6871_v63, %v12598_v32  ;;  %v10730_v18 = vpop.permute.xlu1 %6327  ;;  %v6390_v51 = vpop.permute.xlu0 %6389  ;;  %v3878_v12 = vcombine.high %v12600_v31, %v12599_v42  ;;  %v6839_v34 = vsel %vm6830_vm5, %v6822_v23, %v12602_v44  ;;  %v12605_v14 = vld [vmem:[#allocation23_spill] sm:$0xff]  ;;  %v12608_v1 = vld [vmem:[#allocation29_spill] sm:$0xff]  ;;  %v12614_v35 = vld [vmem:[#allocation156_spill] sm:$0xff]  ;;  %v4150_v62 = vcombine.high %v10472_v15, %v10475_v60 }
 0x3e4   :  { %v6756_v11 = vsel %vm6745_vm0, %v12596_v7, %v12593_v5  ;;  %v10739_v0 = vsel %vm6898_vm9, %v6888_v19, %v6390_v51  ;;  %v6856_v41 = vsel %vm6847_vm6, %v6839_v34, %v12604_v52  ;;  %v12607_v30 = vcombine.low %v12605_v14, %v12606_v25  ;;  %v12609_v4 = vld [vmem:[#allocation283_spill] sm:$0xff]  ;;  %v12610_v21 = vld [vmem:[#allocation125_spill] sm:$0xff]  ;;  %v12620_v15 = vld [vmem:[#allocation66_spill] sm:$0xff] }
 0x3e5   :  { %v6773_v26 = vsel %vm6762_vm1, %v6756_v11, %v12601_v24  ;;  %6571 = vrot.lane.b32.xlu1 %v3878_v12, %s7218_s20  ;;  %v6873_v33 = vsel %vm6864_vm7, %v6856_v41, %v12609_v4  ;;  %v12611_v50 = vld [vmem:[#allocation265_spill] sm:$0xff]  ;;  %v12618_v42 = vld [vmem:[#allocation127_spill] sm:$0xff]  ;;  %v12624_v34 = vld [vmem:[#allocation206_spill] sm:$0xff] }
 0x3e6   :  { %v6790_v17 = vsel %vm6779_vm2, %v6773_v26, %v12603_v36  ;;  %6633 = vrot.lane.b32.xlu0 %v12607_v30, %s7219_s21  ;;  %v12613_v59 = vcombine.low %v12611_v50, %v12612_v43  ;;  %v6890_v63 = vsel %vm6881_vm8, %v6873_v33, %v10489_v37  ;;  %v12615_v7 = vld [vmem:[#allocation57_spill] sm:$0xff]  ;;  %v12623_v26 = vld [vmem:[#allocation47_spill] sm:$0xff]  ;;  %v4422_v30 = vcombine.high %v10496_v28, %v10499_v40  ;;  %v12627_v4 = vld [vmem:[#allocation192_spill] sm:$0xff] }
 0x3e7   :  { %v6807_v20 = vsel %vm6796_vm3, %v6790_v17, %v12608_v1  ;;  %v10763_v5 = vpop.permute.xlu1 %6331  ;;  %v6394_v13 = vpop.permute.xlu0 %6393  ;;  %v12616_v8 = vld [vmem:[#allocation149_spill] sm:$0xff]  ;;  %v12625_v1 = vld [vmem:[#allocation58_spill] sm:$0xff]  ;;  %v12629_v50 = vld [vmem:[#allocation195_spill] sm:$0xff] }
 0x3e8   :  { %v6758_v49 = vsel %vm6745_vm0, %v12613_v59, %v12610_v21  ;;  %v6824_v54 = vsel %vm6813_vm4, %v6807_v20, %v12614_v35  ;;  %v10772_v32 = vsel %vm6898_vm9, %v6890_v63, %v6394_v13  ;;  %v12617_v19 = vld [vmem:[#allocation185_spill] sm:$0xff]  ;;  %v12626_v20 = vld [vmem:[#allocation188_spill] sm:$0xff]  ;;  %v12631_v35 = vld [vmem:[#allocation170_spill] sm:$0xff] }
 0x3e9   :  { %v6775_v11 = vsel %vm6762_vm1, %v6758_v49, %v12615_v7  ;;  %v6841_v23 = vsel %vm6830_vm5, %v6824_v54, %v12616_v8  ;;  %6575 = vrot.lane.b32.xlu1 %v4150_v62, %s7218_s20  ;;  %v12619_v31 = vld [vmem:[#allocation65_spill] sm:$0xff]  ;;  %v12628_v33 = vcombine.low %v12626_v20, %v12627_v4  ;;  %v12630_v49 = vld [vmem:[#allocation184_spill] sm:$0xff]  ;;  %v12632_v28 = vld [vmem:[#allocation107_spill] sm:$0xff] }
 0x3ea   :  { %v6792_v51 = vsel %vm6779_vm2, %v6775_v11, %v12617_v19  ;;  %v6858_v37 = vsel %vm6847_vm6, %v6841_v23, %v12618_v42  ;;  %v12621_v60 = vcombine.low %v12619_v31, %v12620_v15  ;;  %v12622_v12 = vld [vmem:[#allocation77_spill] sm:$0xff]  ;;  %v12633_v40 = vld [vmem:[#allocation108_spill] sm:$0xff]  ;;  %v12635_v13 = vld [vmem:[#allocation78_spill] sm:$0xff] }
 0x3eb   :  { %v6809_v24 = vsel %vm6796_vm3, %v6792_v51, %v12622_v12  ;;  %v6875_v44 = vsel %vm6864_vm7, %v6858_v37, %v12623_v26  ;;  %v10791_v52 = vpop.permute.xlu1 %6335  ;;  %v6398_v41 = vpop.permute.xlu0 %6397  ;;  %v6761_v21 = vsel %vm6745_vm0, %v12628_v33, %v12625_v1  ;;  %v12634_v63 = vcombine.low %v12632_v28, %v12633_v40  ;;  %v12636_v7 = vld [vmem:[#allocation53_spill] sm:$0xff]  ;;  %v12637_v8 = vld [vmem:[#allocation84_spill] sm:$0xff]  ;;  %v12638_v23 = vld [vmem:[#allocation38_spill] sm:$0xff] }
 0x3ec   :  { %6637 = vrot.lane.b32.xlu0 %v12621_v60, %s7219_s21  ;;  %v6826_v36 = vsel %vm6813_vm4, %v6809_v24, %v12624_v34  ;;  %v6892_v17 = vsel %vm6881_vm8, %v6875_v44, %v10519_v58  ;;  %v6778_v58 = vsel %vm6762_vm1, %v6761_v21, %v12630_v49  ;;  %v12639_v19 = vld [vmem:[#allocation40_spill] sm:$0xff]  ;;  %v12641_v37 = vld [vmem:[#allocation201_spill] sm:$0xff]  ;;  %v4694_v44 = vcombine.high %v10504_v61, %v10507_v55  ;;  %v12642_v34 = vld [vmem:[#allocation51_spill] sm:$0xff] }
 0x3ed   :  { %v6843_v43 = vsel %vm6830_vm5, %v6826_v36, %v12629_v50  ;;  %v10803_v59 = vsel %vm6898_vm9, %v6892_v17, %v6398_v41  ;;  %6579 = vrot.lane.b32.xlu1 %v4422_v30, %s7218_s20  ;;  %v6795_v62 = vsel %vm6779_vm2, %v6778_v58, %v12635_v13  ;;  %v12640_v51 = vcombine.low %v12638_v23, %v12639_v19  ;;  %v12643_v17 = vld [vmem:[#allocation193_spill] sm:$0xff]  ;;  %v12644_v1 = vld [vmem:[#allocation179_spill] sm:$0xff]  ;;  %v12646_v33 = vld [vmem:[#allocation150_spill] sm:$0xff] }
 0x3ee   :  { %v6860_v54 = vsel %vm6847_vm6, %v6843_v43, %v12631_v35  ;;  %v6812_v60 = vsel %vm6796_vm3, %v6795_v62, %v12641_v37  ;;  %v12645_v4 = vld [vmem:[#allocation217_spill] sm:$0xff]  ;;  %v12647_v61 = vld [vmem:[#allocation151_spill] sm:$0xff]  ;;  %v12651_v58 = vld [vmem:[#allocation126_spill] sm:$0xff]  ;;  %v4966_v19 = vcombine.high %v10510_v3, %v10513_v56 }
 0x3ef   :  { %v6877_v11 = vsel %vm6864_vm7, %v6860_v54, %v12636_v7  ;;  %v6747_v42 = vsel %vm6745_vm0, %v12640_v51, %v12637_v8  ;;  %v10827_v24 = vpop.permute.xlu1 %6339  ;;  %v6402_v26 = vpop.permute.xlu0 %6401  ;;  %v6829_v41 = vsel %vm6813_vm4, %v6812_v60, %v12643_v17  ;;  %v12648_v55 = vcombine.low %v12646_v33, %v12647_v61  ;;  %v12649_v21 = vld [vmem:[#allocation71_spill] sm:$0xff]  ;;  %v12652_v35 = vld [vmem:[#allocation80_spill] sm:$0xff]  ;;  %v12653_v54 = vld [vmem:[#allocation82_spill] sm:$0xff] }
 0x3f0   :  { %6641 = vrot.lane.b32.xlu0 %v12634_v63, %s7219_s21  ;;  %v6894_v12 = vsel %vm6881_vm8, %v6877_v11, %v10557_v6  ;;  %v6764_v36 = vsel %vm6762_vm1, %v6747_v42, %v12642_v34  ;;  %v6846_v6 = vsel %vm6830_vm5, %v6829_v41, %v12645_v4  ;;  %v12650_v43 = vld [vmem:[#allocation91_spill] sm:$0xff]  ;;  %v12654_v63 = vcombine.low %v12652_v35, %v12653_v54  ;;  %v12655_v62 = vld [vmem:[#allocation200_spill] sm:$0xff]  ;;  %v12657_v37 = vld [vmem:[#allocation237_spill] sm:$0xff] }
 0x3f1   :  { %v10836_v30 = vsel %vm6898_vm9, %v6894_v12, %v6402_v26  ;;  %v6781_v20 = vsel %vm6779_vm2, %v6764_v36, %v12644_v1  ;;  %6583 = vrot.lane.b32.xlu1 %v4694_v44, %s7218_s20  ;;  %v6863_v49 = vsel %vm6847_vm6, %v6846_v6, %v12650_v43  ;;  %v12656_v51 = vld [vmem:[#allocation52_spill] sm:$0xff]  ;;  %v12658_v44 = vld [vmem:[#allocation178_spill] sm:$0xff]  ;;  %v12659_v34 = vld [vmem:[#allocation215_spill] sm:$0xff] }
 0x3f2   :  { %v6798_v50 = vsel %vm6796_vm3, %v6781_v20, %v12649_v21  ;;  %v6749_v13 = vsel %vm6745_vm0, %v12654_v63, %v12651_v58  ;;  %v6880_v11 = vsel %vm6864_vm7, %v6863_v49, %v10592_v22  ;;  %v12660_v3 = vld [vmem:[#allocation190_spill] sm:$0xff]  ;;  %v12663_v41 = vld [vmem:[#allocation72_spill] sm:$0xff]  ;;  %v12664_v20 = vld [vmem:[#allocation89_spill] sm:$0xff]  ;;  %v5238_v63 = vcombine.high %v10560_v16, %v10567_v48 }
 0x3f3   :  { %v6815_v7 = vsel %vm6813_vm4, %v6798_v50, %v12655_v62  ;;  %v6344_v8 = vpop.permute.xlu1 %6343  ;;  %v6406_v23 = vpop.permute.xlu0 %6405  ;;  %v6766_v42 = vsel %vm6762_vm1, %v6749_v13, %v12656_v51  ;;  %v12661_v56 = vld [vmem:[#allocation194_spill] sm:$0xff]  ;;  %v12665_v4 = vld [vmem:[#allocation168_spill] sm:$0xff]  ;;  %v12669_v43 = vld [vmem:[#allocation243_spill] sm:$0xff] }
 0x3f4   :  { %6645 = vrot.lane.b32.xlu0 %v12648_v55, %s7219_s21  ;;  %v6832_v60 = vsel %vm6830_vm5, %v6815_v7, %v12657_v37  ;;  %v10867_v12 = vsel %vm6881_vm8, %v6880_v11, %v6344_v8  ;;  %v10871_v26 = vsel %vm6898_vm9, %v10599_v57, %v6406_v23  ;;  %v6783_v22 = vsel %vm6779_vm2, %v6766_v42, %v12658_v44  ;;  %v12666_v6 = vld [vmem:[#allocation122_spill] sm:$0xff]  ;;  %v12667_v55 = vld [vmem:[#allocation124_spill] sm:$0xff]  ;;  %v12671_v7 = vld [vmem:[#allocation235_spill] sm:$0xff] }
 0x3f5   :  { %v6849_v36 = vsel %vm6847_vm6, %v6832_v60, %v12659_v34  ;;  %6587 = vrot.lane.b32.xlu1 %v4966_v19, %s7218_s20  ;;  %v12662_v17 = vcombine.low %v12660_v3, %v12661_v56  ;;  %v6800_v1 = vsel %vm6796_vm3, %v6783_v22, %v12663_v41  ;;  %v12668_v21 = vcombine.low %v12666_v6, %v12667_v55  ;;  %v12670_v13 = vld [vmem:[#allocation100_spill] sm:$0xff]  ;;  %v12672_v19 = vld [vmem:[#allocation229_spill] sm:$0xff] }
 0x3f6   :  { %v6866_v57 = vsel %vm6864_vm7, %v6849_v36, %v12664_v20  ;;  %v6817_v49 = vsel %vm6813_vm4, %v6800_v1, %v12669_v43  ;;  %v12673_v51 = vld [vmem:[#allocation253_spill] sm:$0xff]  ;;  %v12675_v48 = vld [vmem:[#allocation236_spill] sm:$0xff]  ;;  %v12683_v20 = vld [vmem:[#allocation242_spill] sm:$0xff] }
 0x3f7   :  { %v6751_v50 = vsel %vm6745_vm0, %v12668_v21, %v12665_v4  ;;  %v6883_v58 = vsel %vm6881_vm8, %v6866_v57, %v10632_v10  ;;  %v6380_v35 = vpop.permute.xlu1 %6379  ;;  %v6442_v54 = vpop.permute.xlu0 %6441  ;;  %v6834_v11 = vsel %vm6830_vm5, %v6817_v49, %v12671_v7  ;;  %v12674_v16 = vld [vmem:[#allocation233_spill] sm:$0xff]  ;;  %v12677_v60 = vld [vmem:[#allocation120_spill] sm:$0xff]  ;;  %v5510_v21 = vcombine.high %v10610_v53, %v10619_v9  ;;  %v12688_v53 = vld [vmem:[#allocation267_spill] sm:$0xff] }
 0x3f8   :  { %6649 = vrot.lane.b32.xlu0 %v12662_v17, %s7219_s21  ;;  %v6768_v62 = vsel %vm6762_vm1, %v6751_v50, %v12670_v13  ;;  %v10902_v8 = vsel %vm6898_vm9, %v6883_v58, %v6380_v35  ;;  %v10906_v23 = vsel %vm6915_vm10, %v10639_v39, %v6442_v54  ;;  %v6851_v42 = vsel %vm6847_vm6, %v6834_v11, %v12673_v51  ;;  %v12678_v22 = vld [vmem:[#allocation97_spill] sm:$0xff]  ;;  %v12681_v17 = vld [vmem:[#allocation167_spill] sm:$0xff]  ;;  %v12691_v11 = vld [vmem:[#allocation114_spill] sm:$0xff] }
 0x3f9   :  { %v6785_v10 = vsel %vm6779_vm2, %v6768_v62, %v12672_v19  ;;  %6591 = vrot.lane.b32.xlu1 %v5238_v63, %s7218_s20  ;;  %v12676_v37 = vcombine.low %v12674_v16, %v12675_v48  ;;  %v6868_v39 = vsel %vm6864_vm7, %v6851_v42, %v12678_v22  ;;  %v12679_v34 = vld [vmem:[#allocation169_spill] sm:$0xff]  ;;  %v12684_v50 = vld [vmem:[#allocation99_spill] sm:$0xff]  ;;  %v12686_v63 = vld [vmem:[#allocation228_spill] sm:$0xff] }
 0x3fa   :  { %v6802_v44 = vsel %vm6796_vm3, %v6785_v10, %v12677_v60  ;;  %v12680_v36 = vld [vmem:[#allocation165_spill] sm:$0xff]  ;;  %v6885_v4 = vsel %vm6881_vm8, %v6868_v39, %v10667_v46  ;;  %v12692_v10 = vld [vmem:[#allocation139_spill] sm:$0xff]  ;;  %v12693_v51 = vld [vmem:[#allocation214_spill] sm:$0xff] }
 0x3fb   :  { %v12682_v41 = vcombine.low %v12680_v36, %v12681_v17  ;;  %v6819_v57 = vsel %vm6813_vm4, %v6802_v44, %v12683_v20  ;;  %v6384_v6 = vpop.permute.xlu1 %6383  ;;  %v6446_v55 = vpop.permute.xlu0 %6445  ;;  %v12685_v49 = vld [vmem:[#allocation301_spill] sm:$0xff] }
 0x3fc   :  { %6653 = vrot.lane.b32.xlu0 %v12676_v37, %s7219_s21  ;;  %v6836_v58 = vsel %vm6830_vm5, %v6819_v57, %v12685_v49  ;;  %v10937_v35 = vsel %vm6898_vm9, %v6885_v4, %v6384_v6  ;;  %v10941_v54 = vsel %vm6915_vm10, %v10677_v47, %v6446_v55  ;;  %v12687_v13 = vld [vmem:[#allocation13_spill] sm:$0xff]  ;;  %v12699_v57 = vld [vmem:[#allocation44_spill] sm:$0xff] }
 0x3fd   :  { %v6753_v1 = vsel %vm6745_vm0, %v12682_v41, %v12679_v34  ;;  %v6853_v62 = vsel %vm6847_vm6, %v6836_v58, %v12687_v13  ;;  %6595 = vrot.lane.b32.xlu1 %v5510_v21, %s7218_s20  ;;  %v12689_v9 = vld [vmem:[#allocation269_spill] sm:$0xff]  ;;  %v5782_v41 = vcombine.high %v10656_v2, %v10670_v27  ;;  %v12700_v21 = vld [vmem:[#allocation222_spill] sm:$0xff]  ;;  %v12702_v2 = vld [vmem:[#allocation296_spill] sm:$0xff] }
 0x3fe   :  { %v6770_v43 = vsel %vm6762_vm1, %v6753_v1, %v12684_v50  ;;  %v12690_v7 = vcombine.low %v12688_v53, %v12689_v9  ;;  %v6870_v47 = vsel %vm6864_vm7, %v6853_v62, %v12692_v10  ;;  %v12694_v42 = vld [vmem:[#allocation209_spill] sm:$0xff]  ;;  %v12701_v50 = vld [vmem:[#allocation7_spill] sm:$0xff]  ;;  %v12703_v27 = vld [vmem:[#allocation300_spill] sm:$0xff] }
 0x3ff   :  { %v6787_v46 = vsel %vm6779_vm2, %v6770_v43, %v12686_v63  ;;  %v12695_v37 = vld [vmem:[#allocation213_spill] sm:$0xff]  ;;  %v6887_v34 = vsel %vm6881_vm8, %v6870_v47, %v10700_v38  ;;  %v6388_v36 = vpop.permute.xlu1 %6387  ;;  %v6450_v17 = vpop.permute.xlu0 %6449  ;;  %v12704_v49 = vcombine.low %v12702_v2, %v12703_v27  ;;  %v12705_v58 = vld [vmem:[#allocation163_spill] sm:$0xff]  ;;  %v12707_v13 = vld [vmem:[#allocation16_spill] sm:$0xff] }
 0x400   :  { %6657 = vrot.lane.b32.xlu0 %v12690_v7, %s7219_s21  ;;  %v6804_v19 = vsel %vm6796_vm3, %v6787_v46, %v12691_v11  ;;  %v12696_v60 = vcombine.low %v12694_v42, %v12695_v37  ;;  %v12697_v22 = vld [vmem:[#allocation21_spill] sm:$0xff]  ;;  %v10972_v6 = vsel %vm6898_vm9, %v6887_v34, %v6388_v36  ;;  %v10976_v55 = vsel %vm6915_vm10, %v10709_v29, %v6450_v17  ;;  %v12706_v46 = vld [vmem:[#allocation176_spill] sm:$0xff]  ;;  %v12709_v7 = vld [vmem:[#allocation251_spill] sm:$0xff] }
 0x401   :  { %v6821_v39 = vsel %vm6813_vm4, %v6804_v19, %v12697_v22  ;;  %v12698_v1 = vld [vmem:[#allocation93_spill] sm:$0xff]  ;;  %6599 = vrot.lane.b32.xlu1 %v5782_v41, %s7218_s20  ;;  %v12711_v10 = vld [vmem:[#allocation63_spill] sm:$0xff]  ;;  %v12713_v22 = vld [vmem:[#allocation86_spill] sm:$0xff] }
 0x402   :  { %v6755_v44 = vsel %vm6745_vm0, %v12696_v60, %v12693_v51  ;;  %v6838_v4 = vsel %vm6830_vm5, %v6821_v39, %v12699_v57  ;;  %v12708_v62 = vld [vmem:[#allocation249_spill] sm:$0xff]  ;;  %v12714_v17 = vld [vmem:[#allocation36_spill] sm:$0xff]  ;;  %v12717_v57 = vld [vmem:[#allocation46_spill] sm:$0xff] }
 0x403   :  { %v6772_v20 = vsel %vm6762_vm1, %v6755_v44, %v12698_v1  ;;  %v6855_v43 = vsel %vm6847_vm6, %v6838_v4, %v12701_v50  ;;  %v12710_v11 = vcombine.low %v12708_v62, %v12709_v7  ;;  %v6392_v42 = vpop.permute.xlu1 %6391  ;;  %v6454_v37 = vpop.permute.xlu0 %6453  ;;  %v12712_v60 = vld [vmem:[#allocation141_spill] sm:$0xff]  ;;  %v12721_v50 = vld [vmem:[#allocation182_spill] sm:$0xff] }
 0x404   :  { %v6789_v38 = vsel %vm6779_vm2, %v6772_v20, %v12700_v21  ;;  %6661 = vrot.lane.b32.xlu0 %v12704_v49, %s7219_s21  ;;  %v6872_v29 = vsel %vm6864_vm7, %v6855_v43, %v12706_v46  ;;  %v11009_v36 = vsel %vm6915_vm10, %v10739_v0, %v6454_v37  ;;  %v12715_v1 = vld [vmem:[#allocation285_spill] sm:$0xff]  ;;  %v12719_v21 = vcombine.high %v12605_v14, %v12606_v25  ;;  %v12722_v49 = vld [vmem:[#allocation10_spill] sm:$0xff] }
 0x405   :  { %v6806_v63 = vsel %vm6796_vm3, %v6789_v38, %v12705_v58  ;;  %v6757_v19 = vsel %vm6745_vm0, %v12710_v11, %v12707_v13  ;;  %v6889_v51 = vsel %vm6881_vm8, %v6872_v29, %v10730_v18  ;;  %v12716_v20 = vld [vmem:[#allocation45_spill] sm:$0xff]  ;;  %v12723_v58 = vld [vmem:[#allocation279_spill] sm:$0xff]  ;;  %v12729_v37 = vld [vmem:[#allocation30_spill] sm:$0xff] }
 0x406   :  { %v6823_v47 = vsel %vm6813_vm4, %v6806_v63, %v12711_v10  ;;  %v6774_v44 = vsel %vm6762_vm1, %v6757_v19, %v12712_v60  ;;  %v11005_v34 = vsel %vm6898_vm9, %v6889_v51, %v6392_v42  ;;  %v12718_v4 = vcombine.low %v12716_v20, %v12717_v57  ;;  %v12720_v38 = vld [vmem:[#allocation157_spill] sm:$0xff]  ;;  %v12724_v63 = vld [vmem:[#allocation282_spill] sm:$0xff]  ;;  %v12727_v11 = vld [vmem:[#allocation135_spill] sm:$0xff] }
 0x407   :  { %v6840_v39 = vsel %vm6830_vm5, %v6823_v47, %v12713_v22  ;;  %v6791_v41 = vsel %vm6779_vm2, %v6774_v44, %v12714_v17  ;;  %v12725_v46 = vcombine.low %v12723_v58, %v12724_v63  ;;  %v12726_v13 = vld [vmem:[#allocation105_spill] sm:$0xff]  ;;  %v6396_v14 = vpop.permute.xlu1 %6395  ;;  %v6458_v25 = vpop.permute.xlu0 %6457  ;;  %v12728_v10 = vld [vmem:[#allocation128_spill] sm:$0xff]  ;;  %v12739_v63 = vld [vmem:[#allocation55_spill] sm:$0xff] }
 0x408   :  { %v6857_v18 = vsel %vm6847_vm6, %v6840_v39, %v12715_v1  ;;  %6635 = vrot.lane.b32.xlu1 %v12718_v4, %s7219_s21  ;;  %6697 = vrot.lane.b32.xlu0 %v12719_v21, %s7220_s22  ;;  %v6808_v0 = vsel %vm6796_vm3, %v6791_v41, %v12720_v38  ;;  %v6924_v42 = vsel %vm6915_vm10, %v10772_v32, %v6458_v25  ;;  %v12730_v44 = vld [vmem:[#allocation49_spill] sm:$0xff]  ;;  %v12732_v39 = vld [vmem:[#allocation88_spill] sm:$0xff]  ;;  %v12735_v1 = vld [vmem:[#allocation207_spill] sm:$0xff] }
 0x409   :  { %v6874_v43 = vsel %vm6864_vm7, %v6857_v18, %v12721_v50  ;;  %v6759_v29 = vsel %vm6745_vm0, %v12725_v46, %v12722_v49  ;;  %v6825_v62 = vsel %vm6813_vm4, %v6808_v0, %v12726_v13  ;;  %v12734_v41 = vcombine.high %v12619_v31, %v12620_v15  ;;  %v12736_v32 = vld [vmem:[#allocation180_spill] sm:$0xff]  ;;  %v12738_v49 = vld [vmem:[#allocation171_spill] sm:$0xff]  ;;  %v12741_v13 = vld [vmem:[#allocation130_spill] sm:$0xff] }
 0x40a   :  { %v6891_v7 = vsel %vm6881_vm8, %v6874_v43, %v10763_v5  ;;  %v6776_v19 = vsel %vm6762_vm1, %v6759_v29, %v12727_v11  ;;  %v6842_v47 = vsel %vm6830_vm5, %v6825_v62, %v12728_v10  ;;  %v12731_v5 = vld [vmem:[#allocation87_spill] sm:$0xff]  ;;  %v12737_v21 = vld [vmem:[#allocation148_spill] sm:$0xff]  ;;  %v12740_v29 = vld [vmem:[#allocation129_spill] sm:$0xff] }
 0x40b   :  { %v6908_v51 = vsel %vm6898_vm9, %v6891_v7, %v6396_v14  ;;  %v6793_v60 = vsel %vm6779_vm2, %v6776_v19, %v12729_v37  ;;  %v6859_v22 = vsel %vm6847_vm6, %v6842_v47, %v12730_v44  ;;  %v12733_v17 = vcombine.low %v12731_v5, %v12732_v39  ;;  %v6400_v50 = vpop.permute.xlu1 %6399  ;;  %v6462_v43 = vpop.permute.xlu0 %6461  ;;  %v12744_v10 = vld [vmem:[#allocation172_spill] sm:$0xff]  ;;  %v12745_v47 = vld [vmem:[#allocation173_spill] sm:$0xff] }
 0x40c   :  { %6701 = vrot.lane.b32.xlu0 %v12734_v41, %s7220_s22  ;;  %v6810_v18 = vsel %vm6796_vm3, %v6793_v60, %v12735_v1  ;;  %v6876_v4 = vsel %vm6864_vm7, %v6859_v22, %v12736_v32  ;;  %v6926_v15 = vsel %vm6915_vm10, %v10803_v59, %v6462_v43  ;;  %v12742_v62 = vcombine.low %v12740_v29, %v12741_v13  ;;  %v12749_v44 = vld [vmem:[#allocation216_spill] sm:$0xff]  ;;  %v12753_v1 = vld [vmem:[#allocation255_spill] sm:$0xff] }
 0x40d   :  { %6639 = vrot.lane.b32.xlu1 %v12733_v17, %s7219_s21  ;;  %v6827_v38 = vsel %vm6813_vm4, %v6810_v18, %v12737_v21  ;;  %v6893_v0 = vsel %vm6881_vm8, %v6876_v4, %v10791_v52  ;;  %v12743_v52 = vcombine.high %v12632_v28, %v12633_v40  ;;  %v12746_v37 = vcombine.low %v12744_v10, %v12745_v47  ;;  %v12757_v21 = vld [vmem:[#allocation284_spill] sm:$0xff]  ;;  %v12761_v43 = vld [vmem:[#allocation307_spill] sm:$0xff] }
 0x40e   :  { %v6844_v58 = vsel %vm6830_vm5, %v6827_v38, %v12738_v49  ;;  %v6910_v31 = vsel %vm6898_vm9, %v6893_v0, %v6400_v50  ;;  %v12747_v28 = vcombine.high %v12646_v33, %v12647_v61  ;;  %v12751_v17 = vcombine.high %v12660_v3, %v12661_v56 }
 0x40f   :  { %v6861_v46 = vsel %vm6847_vm6, %v6844_v58, %v12739_v63  ;;  %v6404_v59 = vpop.permute.xlu1 %6403  ;;  %v6466_v25 = vpop.permute.xlu0 %6465  ;;  %v12755_v3 = vcombine.high %v12674_v16, %v12675_v48  ;;  %v12759_v0 = vcombine.high %v12688_v53, %v12689_v9  ;;  %v12763_v58 = vcombine.high %v12702_v2, %v12703_v27 }
 0x410   :  { %6705 = vrot.lane.b32.xlu0 %v12743_v52, %s7220_s22  ;;  %v6878_v7 = vsel %vm6864_vm7, %v6861_v46, %v10555_v45  ;;  %v6928_v19 = vsel %vm6915_vm10, %v10836_v30, %v6466_v25  ;;  %v12748_v30 = vld [vmem:[#allocation212_spill] sm:$0xff]  ;;  %v12765_v27 = vcombine.high %v12731_v5, %v12732_v39  ;;  %v12767_v5 = vcombine.high %v12744_v10, %v12745_v47 }
 0x411   :  { %6643 = vrot.lane.b32.xlu1 %v12742_v62, %s7219_s21  ;;  %v6895_v14 = vsel %vm6881_vm8, %v6878_v7, %v10827_v24  ;;  %v12750_v22 = vcombine.low %v12748_v30, %v12749_v44 }
 0x412   :  { %v6912_v11 = vsel %vm6898_vm9, %v6895_v14, %v6404_v59 }
 0x413   :  { %v6408_v45 = vpop.permute.xlu1 %6407  ;;  %v6470_v40 = vpop.permute.xlu0 %6469 }
 0x414   :  { %6709 = vrot.lane.b32.xlu0 %v12747_v28, %s7220_s22  ;;  %v6914_v24 = vsel %vm6898_vm9, %v10867_v12, %v6408_v45  ;;  %v6930_v60 = vsel %vm6915_vm10, %v10871_v26, %v6470_v40  ;;  %v12752_v26 = vld [vmem:[#allocation254_spill] sm:$0xff] }
 0x415   :  { %6647 = vrot.lane.b32.xlu1 %v12746_v37, %s7219_s21  ;;  %v12754_v18 = vcombine.low %v12752_v26, %v12753_v1  ;;  %v12769_v10 = vcombine.high %v12752_v26, %v12753_v1 }
 0x417   :  { %v6444_v33 = vpop.permute.xlu1 %6443  ;;  %v6506_v61 = vpop.permute.xlu0 %6505 }
 0x418   :  { %6713 = vrot.lane.b32.xlu0 %v12751_v17, %s7220_s22  ;;  %v6917_v41 = vsel %vm6915_vm10, %v10902_v8, %v6444_v33  ;;  %v11109_v12 = vsel %vm6932_vm11, %v10906_v23, %v6506_v61  ;;  %v12756_v23 = vld [vmem:[#allocation281_spill] sm:$0xff] }
 0x419   :  { %6651 = vrot.lane.b32.xlu1 %v12750_v22, %s7219_s21  ;;  %v12758_v38 = vcombine.low %v12756_v23, %v12757_v21  ;;  %v12770_v45 = vcombine.high %v12756_v23, %v12757_v21 }
 0x41b   :  { %v6448_v56 = vpop.permute.xlu1 %6447  ;;  %v6510_v32 = vpop.permute.xlu0 %6509 }
 0x41c   :  { %6717 = vrot.lane.b32.xlu0 %v12755_v3, %s7220_s22  ;;  %v6919_v4 = vsel %vm6915_vm10, %v10937_v35, %v6448_v56  ;;  %v11123_v8 = vsel %vm6932_vm11, %v10941_v54, %v6510_v32  ;;  %v12760_v54 = vld [vmem:[#allocation306_spill] sm:$0xff] }
 0x41d   :  { %6655 = vrot.lane.b32.xlu1 %v12754_v18, %s7219_s21  ;;  %v12762_v49 = vcombine.low %v12760_v54, %v12761_v43 }
 0x41f   :  { %v6452_v16 = vpop.permute.xlu1 %6451  ;;  %v6514_v48 = vpop.permute.xlu0 %6513 }
 0x420   :  { %6721 = vrot.lane.b32.xlu0 %v12759_v0, %s7220_s22  ;;  %v6921_v50 = vsel %vm6915_vm10, %v10972_v6, %v6452_v16  ;;  %v11137_v35 = vsel %vm6932_vm11, %v10976_v55, %v6514_v48  ;;  %v12764_v55 = vcombine.high %v12716_v20, %v12717_v57  ;;  %v12766_v20 = vcombine.high %v12740_v29, %v12741_v13 }
 0x421   :  { %6659 = vrot.lane.b32.xlu1 %v12758_v38, %s7219_s21  ;;  %v12768_v29 = vcombine.high %v12748_v30, %v12749_v44  ;;  %v12771_v30 = vcombine.high %v12760_v54, %v12761_v43 }
 0x423   :  { %v6456_v53 = vpop.permute.xlu1 %6455  ;;  %v6518_v9 = vpop.permute.xlu0 %6517 }
 0x424   :  { %6725 = vrot.lane.b32.xlu0 %v12763_v58, %s7220_s22  ;;  %v6923_v63 = vsel %vm6915_vm10, %v11005_v34, %v6456_v53  ;;  %v11151_v6 = vsel %vm6932_vm11, %v11009_v36, %v6518_v9  ;;  %v12772_v58 = vlaneseq }
 0x425   :  { %6663 = vrot.lane.b32.xlu1 %v12762_v49, %s7219_s21 }
 0x426   :  { %v7001_v53 = vand.u32 127, %v12772_v58 }
 0x427   :  { %v6460_v46 = vpop.permute.xlu1 %6459  ;;  %v6522_v62 = vpop.permute.xlu0 %6521 }
 0x428   :  { %v6925_v52 = vsel %vm6915_vm10, %v6908_v51, %v6460_v46  ;;  %v11159_v2 = vsel %vm6932_vm11, %v6924_v42, %v6522_v62 }
 0x429   :  { %6699 = vrot.lane.b32.xlu1 %v12764_v55, %s7220_s22  ;;  %v7006_v55 = vand.u32 7, %v7001_v53 }
 0x42b   :  { %v6464_v34 = vpop.permute.xlu1 %6463  ;;  %v6526_v36 = vpop.permute.xlu0 %6525 }
 0x42c   :  { %v6927_v7 = vsel %vm6915_vm10, %v6910_v31, %v6464_v34  ;;  %v11167_v14 = vsel %vm6932_vm11, %v6926_v15, %v6526_v36 }
 0x42d   :  { %6703 = vrot.lane.b32.xlu1 %v12765_v27, %s7220_s22 }
 0x42f   :  { %v6468_v57 = vpop.permute.xlu1 %6467  ;;  %v6530_v51 = vpop.permute.xlu0 %6529 }
 0x430   :  { %v6929_v42 = vsel %vm6915_vm10, %v6912_v11, %v6468_v57  ;;  %v11175_v59 = vsel %vm6932_vm11, %v6928_v19, %v6530_v51 }
 0x431   :  { %6707 = vrot.lane.b32.xlu1 %v12766_v20, %s7220_s22 }
 0x433   :  { %v6472_v39 = vpop.permute.xlu1 %6471  ;;  %v6534_v31 = vpop.permute.xlu0 %6533 }
 0x434   :  { %v6931_v15 = vsel %vm6915_vm10, %v6914_v24, %v6472_v39  ;;  %v11183_v25 = vsel %vm6932_vm11, %v6930_v60, %v6534_v31 }
 0x435   :  { %6711 = vrot.lane.b32.xlu1 %v12767_v5, %s7220_s22 }
 0x437   :  { %v6508_v13 = vpop.permute.xlu1 %6507  ;;  %v6570_v11 = vpop.permute.xlu0 %6569 }
 0x438   :  { %v11190_v19 = vsel %vm6932_vm11, %v6917_v41, %v6508_v13  ;;  %v6950_v51 = vsel %vm6949_vm12, %v11109_v12, %v6570_v11 }
 0x439   :  { %6715 = vrot.lane.b32.xlu1 %v12768_v29, %s7220_s22 }
 0x43b   :  { %v6512_v47 = vpop.permute.xlu1 %6511  ;;  %v6574_v37 = vpop.permute.xlu0 %6573 }
 0x43c   :  { %v11197_v28 = vsel %vm6932_vm11, %v6919_v4, %v6512_v47  ;;  %v6952_v29 = vsel %vm6949_vm12, %v11123_v8, %v6574_v37 }
 0x43d   :  { %6719 = vrot.lane.b32.xlu1 %v12769_v10, %s7220_s22 }
 0x43f   :  { %v6516_v40 = vpop.permute.xlu1 %6515  ;;  %v6578_v24 = vpop.permute.xlu0 %6577 }
 0x440   :  { %v11204_v60 = vsel %vm6932_vm11, %v6921_v50, %v6516_v40 }
 0x441   :  { %6723 = vrot.lane.b32.xlu1 %v12770_v45, %s7220_s22 }
 0x443   :  { %v6520_v44 = vpop.permute.xlu1 %6519  ;;  %v11210_v22 = vpop.permute.xlu0 %6581 }
 0x444   :  { %v11213_v17 = vsel %vm6932_vm11, %v6923_v63, %v6520_v44 }
 0x445   :  { %6727 = vrot.lane.b32.xlu1 %v12771_v30, %s7220_s22  ;;  %v6954_v30 = vsel %vm6949_vm12, %v11137_v35, %v6578_v24 }
 0x447   :  { %v6524_v33 = vpop.permute.xlu1 %6523  ;;  %v11215_v61 = vpop.permute.xlu0 %6585 }
 0x448   :  { %v11218_v41 = vsel %vm6932_vm11, %v6925_v52, %v6524_v33  ;;  %v7014_v52 = vcvt.s32.f32 %v7006_v55 }
 0x44a   :  { %v7015_v36 = vmul.f32 0.5714286, %v7014_v52 }
 0x44b   :  { %v6528_v26 = vpop.permute.xlu1 %6527  ;;  %v11220_v1 = vpop.permute.xlu0 %6589 }
 0x44c   :  { %v11223_v18 = vsel %vm6932_vm11, %v6927_v7, %v6528_v26  ;;  %v11256_v57 = vadd.f32 -2.0, %v7015_v36 }
 0x44f   :  { %v6532_v3 = vpop.permute.xlu1 %6531  ;;  %v11225_v56 = vpop.permute.xlu0 %6593 }
 0x450   :  { %v11228_v32 = vsel %vm6932_vm11, %v6929_v42, %v6532_v3 }
 0x453   :  { %v6536_v4 = vpop.permute.xlu1 %6535  ;;  %v11230_v23 = vpop.permute.xlu0 %6597 }
 0x454   :  { %v11233_v21 = vsel %vm6932_vm11, %v6931_v15, %v6536_v4 }
 0x457   :  { %v11235_v38 = vpop.permute.xlu1 %6571 }
 0x458   :  { %v6634_v0 = vpop.permute.xlu0 %6633 }
 0x459   :  { %v6967_v42 = vsel %vm6966_vm13, %v6950_v51, %v6634_v0  ;;  %v6958_v51 = vsel %vm6949_vm12, %v11159_v2, %v11215_v61 }
 0x45b   :  { %v11237_v16 = vpop.permute.xlu1 %6575 }
 0x45e   :  { %v6638_v48 = vpop.permute.xlu0 %6637 }
 0x45f   :  { %v11239_v50 = vpop.permute.xlu1 %6579  ;;  %v6969_v13 = vsel %vm6966_vm13, %v6952_v29, %v6638_v48  ;;  %v6956_v48 = vsel %vm6949_vm12, %v11151_v6, %v11210_v22 }
 0x462   :  { %v6642_v54 = vpop.permute.xlu0 %6641 }
 0x463   :  { %v11241_v43 = vpop.permute.xlu1 %6583  ;;  %v6971_v44 = vsel %vm6966_vm13, %v6954_v30, %v6642_v54 }
 0x466   :  { %v6646_v49 = vpop.permute.xlu0 %6645 }
 0x467   :  { %v11244_v9 = vpop.permute.xlu1 %6587  ;;  %v6973_v58 = vsel %vm6966_vm13, %v6956_v48, %v6646_v49 }
 0x46a   :  { %v6650_v63 = vpop.permute.xlu0 %6649 }
 0x46b   :  { %v11246_v46 = vpop.permute.xlu1 %6591 }
 0x46e   :  { %v6654_v62 = vpop.permute.xlu0 %6653 }
 0x46f   :  { %v11248_v27 = vpop.permute.xlu1 %6595 }
 0x472   :  { %v11250_v34 = vpop.permute.xlu0 %6657 }
 0x473   :  { %v11252_v7 = vpop.permute.xlu1 %6599 }
 0x476   :  { %v11254_v20 = vpop.permute.xlu0 %6661 }
 0x47a   :  { %v11261_v5 = vpop.permute.xlu1 %6635  ;;  %v6698_v39 = vpop.permute.xlu0 %6697 }
 0x47b   :  { %v6984_v31 = vsel %vm6983_vm14, %v6967_v42, %v6698_v39  ;;  %v6975_v42 = vsel %vm6966_vm13, %v6958_v51, %v6650_v63 }
 0x47c   :  { %v7017_v15 = vsub.f32 %v6984_v31, %v11256_v57 }
 0x47e   :  { %v7033_v10 = vmul.f32 %v7017_v15, %v7017_v15  ;;  %v6702_v45 = vpop.permute.xlu0 %6701 }
 0x47f   :  { %v11268_v47 = vpop.permute.xlu1 %6639  ;;  %v6986_v12 = vsel %vm6983_vm14, %v6969_v13, %v6702_v45  ;;  %v6960_v13 = vsel %vm6949_vm12, %v11167_v14, %v11220_v1 }
 0x480   :  { %v7049_v11 = vmul.f32 -3.0625, %v7033_v10  ;;  %v7019_v40 = vsub.f32 %v6986_v12, %v11256_v57  ;;  %v6977_v2 = vsel %vm6966_vm13, %v6960_v13, %v6654_v62 }
 0x482   :  { %v7065_v33 = vmul.f32 1.442695, %v7049_v11  ;;  %v7035_v26 = vmul.f32 %v7019_v40, %v7019_v40  ;;  %v6706_v8 = vpop.permute.xlu0 %6705 }
 0x483   :  { %v11275_v3 = vpop.permute.xlu1 %6643  ;;  %v6988_v37 = vsel %vm6983_vm14, %v6971_v44, %v6706_v8  ;;  %v6962_v44 = vsel %vm6949_vm12, %v11175_v59, %v11225_v56  ;;  %v6964_v59 = vsel %vm6949_vm12, %v11183_v25, %v11230_v23  ;;  %v6951_v25 = vsel %vm6949_vm12, %v11190_v19, %v11235_v38 }
 0x484   :  { %7148 = vpow2.f32 %v7065_v33  ;;  %v7051_v4 = vmul.f32 -3.0625, %v7035_v26  ;;  %v7021_v0 = vsub.f32 %v6988_v37, %v11256_v57  ;;  %v6979_v1 = vsel %vm6966_vm13, %v6962_v44, %v11250_v34 }
 0x485   :  { %v6981_v34 = vsel %vm6966_vm13, %v6964_v59, %v11254_v20  ;;  %v6968_v20 = vsel %vm6966_vm13, %v6951_v25, %v11261_v5  ;;  %v6957_v44 = vsel %vm6949_vm12, %v11213_v17, %v11241_v43  ;;  %v6963_v25 = vsel %vm6949_vm12, %v11228_v32, %v11248_v27 }
 0x486   :  { %v7069_v35 = vmul.f32 1.442695, %v7051_v4  ;;  %v7037_v24 = vmul.f32 %v7021_v0, %v7021_v0  ;;  %v6710_v53 = vpop.permute.xlu0 %6709 }
 0x487   :  { %v11283_v54 = vpop.permute.xlu1 %6647  ;;  %v6990_v55 = vsel %vm6983_vm14, %v6973_v58, %v6710_v53 }
 0x488   :  { %7150 = vpow2.f32 %v7069_v35  ;;  %v7053_v52 = vmul.f32 -3.0625, %v7037_v24  ;;  %v7023_v36 = vsub.f32 %v6990_v55, %v11256_v57 }
 0x48a   :  { %v7073_v6 = vmul.f32 1.442695, %v7053_v52  ;;  %v7039_v22 = vmul.f32 %v7023_v36, %v7023_v36  ;;  %v6714_v39 = vpop.permute.xlu0 %6713 }
 0x48b   :  { %v11291_v49 = vpop.permute.xlu1 %6651  ;;  %v6992_v31 = vsel %vm6983_vm14, %v6975_v42, %v6714_v39 }
 0x48c   :  { %7152 = vpow2.f32 %v7073_v6  ;;  %v7055_v15 = vmul.f32 -3.0625, %v7039_v22  ;;  %v7025_v29 = vsub.f32 %v6992_v31, %v11256_v57  ;;  %v6953_v31 = vsel %vm6949_vm12, %v11197_v28, %v11237_v16 }
 0x48d   :  { %v6970_v19 = vsel %vm6966_vm13, %v6953_v31, %v11268_v47 }
 0x48e   :  { %v7149_v10 = vpop.eup %7148  ;;  %v7077_v61 = vmul.f32 1.442695, %v7055_v15  ;;  %v7041_v63 = vmul.f32 %v7025_v29, %v7025_v29  ;;  %v6718_v12 = vpop.permute.xlu0 %6717 }
 0x48f   :  { %v11299_v45 = vpop.permute.xlu1 %6655  ;;  %7097 = vst [vmem:[#allocation2] sm:$0xff] %v7149_v10  ;;  %v6994_v11 = vsel %vm6983_vm14, %v6977_v2, %v6718_v12 }
 0x490   :  { %7154 = vpow2.f32 %v7077_v61  ;;  %v7057_v40 = vmul.f32 -3.0625, %v7041_v63  ;;  %v7027_v30 = vsub.f32 %v6994_v11, %v11256_v57  ;;  %v6955_v61 = vsel %vm6949_vm12, %v11204_v60, %v11239_v50 }
 0x491   :  { %v6972_v28 = vsel %vm6966_vm13, %v6955_v61, %v11275_v3  ;;  %v6974_v60 = vsel %vm6966_vm13, %v6957_v44, %v11283_v54 }
 0x492   :  { %v7151_v14 = vpop.eup %7150  ;;  %v7081_v62 = vmul.f32 1.442695, %v7057_v40  ;;  %v7043_v33 = vmul.f32 %v7027_v30, %v7027_v30  ;;  %v6722_v8 = vpop.permute.xlu0 %6721 }
 0x493   :  { %v11308_v26 = vpop.permute.xlu1 %6659  ;;  %7099 = vst [vmem:[#allocation2 + $0x10] sm:$0xff] %v7151_v14  ;;  %v6996_v37 = vsel %vm6983_vm14, %v6979_v1, %v6722_v8 }
 0x494   :  { %7156 = vpow2.f32 %v7081_v62  ;;  %v7059_v4 = vmul.f32 -3.0625, %v7043_v33  ;;  %v7029_v0 = vsub.f32 %v6996_v37, %v11256_v57  ;;  %v6959_v37 = vsel %vm6949_vm12, %v11218_v41, %v11244_v9 }
 0x495   :  { %v6976_v17 = vsel %vm6966_vm13, %v6959_v37, %v11291_v49 }
 0x496   :  { %v7153_v56 = vpop.eup %7152  ;;  %v7085_v48 = vmul.f32 1.442695, %v7059_v4  ;;  %v7045_v58 = vmul.f32 %v7029_v0, %v7029_v0  ;;  %v6726_v24 = vpop.permute.xlu0 %6725 }
 0x497   :  { %v11317_v35 = vpop.permute.xlu1 %6663  ;;  %7101 = vst [vmem:[#allocation2 + $0x20] sm:$0xff] %v7153_v56  ;;  %v6998_v53 = vsel %vm6983_vm14, %v6981_v34, %v6726_v24 }
 0x498   :  { %7158 = vpow2.f32 %v7085_v48  ;;  %v7061_v55 = vmul.f32 -3.0625, %v7045_v58  ;;  %v7031_v52 = vsub.f32 %v6998_v53, %v11256_v57  ;;  %v6961_v48 = vsel %vm6949_vm12, %v11223_v18, %v11246_v46 }
 0x499   :  { %v6978_v41 = vsel %vm6966_vm13, %v6961_v48, %v11299_v45  ;;  %v6980_v18 = vsel %vm6966_vm13, %v6963_v25, %v11308_v26 }
 0x49a   :  { %v7155_v23 = vpop.eup %7154  ;;  %v7089_v36 = vmul.f32 1.442695, %v7061_v55  ;;  %v7047_v51 = vmul.f32 %v7031_v52, %v7031_v52 }
 0x49b   :  { %v6700_v42 = vpop.permute.xlu1 %6699  ;;  %7103 = vst [vmem:[#allocation2 + $0x30] sm:$0xff] %v7155_v23 }
 0x49c   :  { %v6985_v6 = vsel %vm6983_vm14, %v6968_v20, %v6700_v42  ;;  %7160 = vpow2.f32 %v7089_v36  ;;  %v7063_v22 = vmul.f32 -3.0625, %v7047_v51 }
 0x49d   :  { %v7018_v39 = vsub.f32 %v6985_v6, %v11256_v57  ;;  %v6965_v6 = vsel %vm6949_vm12, %v11233_v21, %v11252_v7 }
 0x49e   :  { %v7157_v15 = vpop.eup %7156  ;;  %v7093_v38 = vmul.f32 1.442695, %v7063_v22  ;;  %v6982_v32 = vsel %vm6966_vm13, %v6965_v6, %v11317_v35 }
 0x49f   :  { %v7034_v5 = vmul.f32 %v7018_v39, %v7018_v39  ;;  %v6704_v29 = vpop.permute.xlu1 %6703  ;;  %7105 = vst [vmem:[#allocation2 + $0x40] sm:$0xff] %v7157_v15 }
 0x4a0   :  { %v6987_v13 = vsel %vm6983_vm14, %v6970_v19, %v6704_v29  ;;  %7162 = vpow2.f32 %v7093_v38 }
 0x4a1   :  { %v7050_v10 = vmul.f32 -3.0625, %v7034_v5  ;;  %v7020_v2 = vsub.f32 %v6987_v13, %v11256_v57 }
 0x4a2   :  { %v7159_v63 = vpop.eup %7158 }
 0x4a3   :  { %v7067_v16 = vmul.f32 1.442695, %v7050_v10  ;;  %v7036_v47 = vmul.f32 %v7020_v2, %v7020_v2  ;;  %v6708_v12 = vpop.permute.xlu1 %6707  ;;  %7107 = vst [vmem:[#allocation2 + $0x50] sm:$0xff] %v7159_v63 }
 0x4a4   :  { %v6989_v11 = vsel %vm6983_vm14, %v6972_v28, %v6708_v12 }
 0x4a5   :  { %7164 = vpow2.f32 %v7067_v16  ;;  %v7052_v40 = vmul.f32 -3.0625, %v7036_v47  ;;  %v7022_v30 = vsub.f32 %v6989_v11, %v11256_v57 }
 0x4a6   :  { %v7161_v14 = vpop.eup %7160 }
 0x4a7   :  { %v7071_v50 = vmul.f32 1.442695, %v7052_v40  ;;  %v7038_v3 = vmul.f32 %v7022_v30, %v7022_v30  ;;  %v6712_v1 = vpop.permute.xlu1 %6711  ;;  %7109 = vst [vmem:[#allocation2 + $0x60] sm:$0xff] %v7161_v14 }
 0x4a8   :  { %v6991_v62 = vsel %vm6983_vm14, %v6974_v60, %v6712_v1 }
 0x4a9   :  { %7166 = vpow2.f32 %v7071_v50  ;;  %v7054_v33 = vmul.f32 -3.0625, %v7038_v3  ;;  %v7024_v8 = vsub.f32 %v6991_v62, %v11256_v57 }
 0x4aa   :  { %v7163_v4 = vpop.eup %7162 }
 0x4ab   :  { %v7075_v43 = vmul.f32 1.442695, %v7054_v33  ;;  %v7040_v54 = vmul.f32 %v7024_v8, %v7024_v8  ;;  %v6716_v0 = vpop.permute.xlu1 %6715  ;;  %7111 = vst [vmem:[#allocation2 + $0x70] sm:$0xff] %v7163_v4 }
 0x4ac   :  { %v6993_v59 = vsel %vm6983_vm14, %v6976_v17, %v6716_v0 }
 0x4ad   :  { %7168 = vpow2.f32 %v7075_v43  ;;  %v7056_v56 = vmul.f32 -3.0625, %v7040_v54  ;;  %v7026_v34 = vsub.f32 %v6993_v59, %v11256_v57 }
 0x4af   :  { %v7165_v58 = vpop.eup %7164  ;;  %v7079_v9 = vmul.f32 1.442695, %v7056_v56  ;;  %v7042_v49 = vmul.f32 %v7026_v34, %v7026_v34  ;;  %v6720_v24 = vpop.permute.xlu1 %6719 }
 0x4b0   :  { %7098 = vst [vmem:[#allocation2 + $0x8] sm:$0xff] %v7165_v58  ;;  %v6995_v53 = vsel %vm6983_vm14, %v6978_v41, %v6720_v24 }
 0x4b1   :  { %7170 = vpow2.f32 %v7079_v9  ;;  %v7058_v55 = vmul.f32 -3.0625, %v7042_v49  ;;  %v7028_v52 = vsub.f32 %v6995_v53, %v11256_v57 }
 0x4b3   :  { %v7167_v23 = vpop.eup %7166  ;;  %v7083_v46 = vmul.f32 1.442695, %v7058_v55  ;;  %v7044_v45 = vmul.f32 %v7028_v52, %v7028_v52  ;;  %v6724_v20 = vpop.permute.xlu1 %6723 }
 0x4b4   :  { %7100 = vst [vmem:[#allocation2 + $0x18] sm:$0xff] %v7167_v23  ;;  %v6997_v36 = vsel %vm6983_vm14, %v6980_v18, %v6724_v20 }
 0x4b5   :  { %7172 = vpow2.f32 %v7083_v46  ;;  %v7060_v51 = vmul.f32 -3.0625, %v7044_v45  ;;  %v7030_v42 = vsub.f32 %v6997_v36, %v11256_v57 }
 0x4b7   :  { %v7169_v22 = vpop.eup %7168  ;;  %v7087_v27 = vmul.f32 1.442695, %v7060_v51  ;;  %v7046_v26 = vmul.f32 %v7030_v42, %v7030_v42  ;;  %v6728_v39 = vpop.permute.xlu1 %6727 }
 0x4b8   :  { %7102 = vst [vmem:[#allocation2 + $0x28] sm:$0xff] %v7169_v22  ;;  %v6999_v31 = vsel %vm6983_vm14, %v6982_v32, %v6728_v39 }
 0x4b9   :  { %7174 = vpow2.f32 %v7087_v27  ;;  %v7062_v15 = vmul.f32 -3.0625, %v7046_v26  ;;  %v7032_v19 = vsub.f32 %v6999_v31, %v11256_v57 }
 0x4bb   :  { %v7171_v38 = vpop.eup %7170  ;;  %v7091_v5 = vmul.f32 1.442695, %v7062_v15  ;;  %v7048_v29 = vmul.f32 %v7032_v19, %v7032_v19 }
 0x4bc   :  { %7104 = vst [vmem:[#allocation2 + $0x38] sm:$0xff] %v7171_v38 }
 0x4bd   :  { %7176 = vpow2.f32 %v7091_v5  ;;  %v7064_v21 = vmul.f32 -3.0625, %v7048_v29 }
 0x4bf   :  { %v7173_v7 = vpop.eup %7172  ;;  %v7095_v13 = vmul.f32 1.442695, %v7064_v21 }
 0x4c0   :  { %7106 = vst [vmem:[#allocation2 + $0x48] sm:$0xff] %v7173_v7 }
 0x4c1   :  { %7178 = vpow2.f32 %v7095_v13 }
 0x4c3   :  { %v7175_v35 = vpop.eup %7174 }
 0x4c4   :  { %7108 = vst [vmem:[#allocation2 + $0x58] sm:$0xff] %v7175_v35 }
 0x4c7   :  { %v7177_v10 = vpop.eup %7176 }
 0x4c8   :  { %7110 = vst [vmem:[#allocation2 + $0x68] sm:$0xff] %v7177_v10 }
 0x4cb   :  { %v7179_v2 = vpop.eup %7178 }
 0x4cc   :  { %7112 = vst [vmem:[#allocation2 + $0x78] sm:$0xff] %v7179_v2 }
 0x4cd   :  { %7191 = shalt.err (!%p7188_p4)
}
 0x4ce   :  { %s7192_s28 = scalar_lea.hbm %s11391_s1, 2048 }
 0x4cf   :  { %p7193_p5 = scmp.ne.s32.totalorder %s11391_s1, %s7192_s28  ;;  %p7196_p6 = scmp.lt.u32.totalorder %s7192_s28, %s11391_s1 }
 0x4d1   :  { %p7198_p7 = pnand %p7196_p6, %p7193_p5 }
 0x4d3   :  { %7201 = shalt.err (!%p7198_p7)
}
 0x4d4   :  { %s7222_s4 = smov 128  }
 0x4d5   :  { %7124 = dma.vmem_to_hbm [thread:$0]  %s7119_s24, 2048, %s11391_s1, [#allocation3], %s7222_s4, %s7222_s4, %s7206_s0  }
 0x4d6   :  { %7202 = dma.done.wait [#allocation3], 2048  }
 0x4d7   :  { %7203 = vsyncadd [#allocation3], 4294965248 }
 0x4d8   :  { %7128 = vsyncpa [#allocation3], 1 }

</bundles_post_ra>
